<compile_context>
chip_gen: v7x
topology: tpu7x:2x2x1
jax: 0.10.0
libtpu: 0.0.40
codegen_flags: <defaults>
</compile_context>

<pallas_src>
import functools

import jax
import jax.numpy as jnp
from jax.experimental import pallas as pl
from jax.experimental.pallas import tpu as pltpu


# ----------------------------- Pallas kernels ------------------------------

def _conv1_gemm_lrelu_kernel(x_ref, w_ref, b_ref, o_ref, *, slope):
    """One M-tile of:  leaky_relu(patches @ w + b)."""
    y = jnp.dot(x_ref[...], w_ref[...], preferred_element_type=jnp.float32)
    y = y + b_ref[...]                                   # (1, Cout) broadcast
    o_ref[...] = jnp.where(y >= 0.0, y, slope * y).astype(o_ref.dtype)


def _conv2_bn_lrelu_conv3_kernel(p2_ref, w2_ref, b2_ref, g_ref, beta_ref,
                                 w3_ref, sel_ref, b3_ref, o_ref, *, slope, eps):
    """Fused discriminator tail, fully resident in VMEM:

        y2     = patches2 @ w2 + b2            (conv2, k=4, s=2, p=1)
        y2     = leaky_relu(batchnorm(y2))     (training-mode batch statistics)
        logits = sum_{spatial,c} y2 * w3 + b3  (conv3, k=4, s=1, p=0 covers the
                                                whole 4^3 map -> one logit/sample)
    """
    y = jnp.dot(p2_ref[...], w2_ref[...], preferred_element_type=jnp.float32)
    y = y + b2_ref[...]

    # BatchNorm3d (training-mode forward): per-channel stats over all rows
    # (= N*D*H*W).  All rows stay in this single invocation on purpose; tiling M
    # would need a cross-tile sum/sum-sq accumulator or stats become per-tile.
    mean = jnp.mean(y, axis=0, keepdims=True)
    var = jnp.mean((y - mean) ** 2, axis=0, keepdims=True)      # biased variance
    # Fold (mean, var, gamma, beta) into a single per-channel scale/shift so the
    # big (M2, C2) tile only sees one multiply and one add.
    scale = g_ref[...] * jax.lax.rsqrt(var + eps)                # (1, C2)
    shift = beta_ref[...] - mean * scale                         # (1, C2)
    y = y * scale + shift
    y = jnp.where(y >= 0.0, y, slope * y)
    # TODO(synk): BatchNorm running_mean / running_var momentum updates are
    # stateful training-side bookkeeping and do not affect this forward output.

    # conv3 epilogue: per-sample full contraction (no extra kernel / im2col).
    z = y * w3_ref[...]                                          # (M2, C2)
    per_sample = jnp.dot(sel_ref[...], z,
                         preferred_element_type=jnp.float32)     # (N, C2)
    logits = jnp.sum(per_sample, axis=1, keepdims=True) + b3_ref[...]
    o_ref[...] = logits.astype(o_ref.dtype)


def _vmem_spec():
    return pl.BlockSpec(memory_space=pltpu.MemorySpace.VMEM)


# ------------------------- pallas_call wrappers -----------------------------

def _pick_block_m(m):
    for cand in (512, 256, 128):        # 512-row tiles: ~128 KiB/input tile, VMEM-safe
        if m % cand == 0:
            return cand
    return m                            # fallback: whole array as one block


def conv1_gemm(patches, w_mat, b_row, *, slope=0.2):
    """conv1 + bias + LeakyReLU as an M-tiled GEMM (grid over rows)."""
    m, k = patches.shape
    cout = w_mat.shape[1]
    tm = _pick_block_m(m)
    return pl.pallas_call(
        functools.partial(_conv1_gemm_lrelu_kernel, slope=slope),
        out_shape=jax.ShapeDtypeStruct((m, cout), jnp.float32),
        grid_spec=pltpu.PrefetchScalarGridSpec(
            num_scalar_prefetch=0,
            grid=(m // tm,),
            in_specs=[pl.BlockSpec((tm, k), lambda i: (i, 0)),
                      pl.BlockSpec((k, cout), lambda i: (0, 0)),
                      pl.BlockSpec((1, cout), lambda i: (0, 0))],
            out_specs=pl.BlockSpec((tm, cout), lambda i: (i, 0))),
        compiler_params=pltpu.CompilerParams(
            dimension_semantics=("parallel",),       # shard M over v7x's 2 TensorCores
            vmem_limit_bytes=32 * 1024 * 1024),
    )(patches, w_mat, b_row)


def conv2_bn_lrelu_conv3(p2, w2m, b2r, gammar, betar, w3t, sel, b3r, *,
                         slope=0.2, eps=1e-5):
    """conv2 + BN + LeakyReLU + conv3 fused in one VMEM-resident kernel."""
    n = sel.shape[0]
    return pl.pallas_call(
        functools.partial(_conv2_bn_lrelu_conv3_kernel, slope=slope, eps=eps),
        out_shape=jax.ShapeDtypeStruct((n, 1), jnp.float32),
        in_specs=[_vmem_spec() for _ in range(8)],
        out_specs=_vmem_spec(),
        compiler_params=pltpu.CompilerParams(vmem_limit_bytes=32 * 1024 * 1024),
    )(p2, w2m, b2r, gammar, betar, w3t, sel, b3r)


# ------------------------------ JAX glue ------------------------------------

def _im2col_3d(x, k, stride, pad):
    """x: (N, D, H, W, C) -> (N*Do*Ho*Wo, k^3*C), patch order (dz, dy, dx, c)."""
    N, D, H, W, C = x.shape
    xp = jnp.pad(x, ((0, 0), (pad, pad), (pad, pad), (pad, pad), (0, 0)))
    Do = (D + 2 * pad - k) // stride + 1
    Ho = (H + 2 * pad - k) // stride + 1
    Wo = (W + 2 * pad - k) // stride + 1
    cols = []
    for dz in range(k):
        for dy in range(k):
            for dx in range(k):
                cols.append(xp[:, dz:dz + Do * stride:stride,
                                  dy:dy + Ho * stride:stride,
                                  dx:dx + Wo * stride:stride, :])
    p = jnp.stack(cols, axis=4)                        # (N, Do, Ho, Wo, k^3, C)
    p = p.reshape(N * Do * Ho * Wo, k * k * k * C)
    return p, (N, Do, Ho, Wo)


# --------------------------- parameter handling ------------------------------

def _conv_init(key, cin, cout, k):
    """PyTorch-style kaiming-uniform-ish init; returns (OIDHW weight, bias)."""
    k1, k2 = jax.random.split(key)
    fan_in = cin * k ** 3
    bound = 1.0 / (fan_in ** 0.5)
    w = jax.random.uniform(k1, (cout, cin, k, k, k), jnp.float32, -bound, bound)
    b = jax.random.uniform(k2, (cout,), jnp.float32, -bound, bound)
    return w, b


def _to_matmul_layout(w):
    """OIDHW -> (kD*kH*kW*Cin, Cout), matching im2col row order (dz, dy, dx, ci)."""
    cout, cin, kd, kh, kw = w.shape
    return jnp.transpose(w, (2, 3, 4, 1, 0)).reshape(kd * kh * kw * cin, cout)


def init_discriminator3d_params(key, in_channels=1, feature_maps=32):
    k1, k2, k3 = jax.random.split(key, 3)
    w1, b1 = _conv_init(k1, in_channels, feature_maps, 4)
    w2, b2 = _conv_init(k2, feature_maps, feature_maps * 2, 4)
    w3, b3 = _conv_init(k3, feature_maps * 2, 1, 4)
    gamma = jnp.ones((feature_maps * 2,), jnp.float32)    # BatchNorm3d defaults
    beta = jnp.zeros((feature_maps * 2,), jnp.float32)
    return dict(w1=w1, b1=b1, w2=w2, b2=b2, w3=w3, b3=b3, gamma=gamma, beta=beta)


def prepare_params(p):
    """One-time weight-layout transforms, hoisted OUT of the per-step forward."""
    return dict(
        w1m=_to_matmul_layout(p["w1"]),                      # (k^3*Cin, 32)
        b1r=p["b1"].reshape(1, -1),
        w2m=_to_matmul_layout(p["w2"]),                      # (k^3*32, 64)
        b2r=p["b2"].reshape(1, -1),
        gammar=p["gamma"].reshape(1, -1),
        betar=p["beta"].reshape(1, -1),
        # conv3 weight as (spatial = 4^3, C2), row order (dz, dy, dx) to match y2 rows
        w3m=jnp.transpose(p["w3"][0], (1, 2, 3, 0)).reshape(4 * 4 * 4, -1),
        b3r=p["b3"].reshape(1, 1),
    )


# ------------------------------ forward pass --------------------------------

def discriminator3d_forward(x_ncdhw, mp, *, slope=0.2, eps=1e-5):
    """x_ncdhw: (N, C, D, H, W) like PyTorch.  Returns flattened logits (N,)."""
    x = jnp.transpose(x_ncdhw, (0, 2, 3, 4, 1)).astype(jnp.float32)    # -> NDHWC
    n = x.shape[0]

    # ---- layer 1: Conv3d(k4,s2,p1) + LeakyReLU  (Pallas kernel A, M-tiled grid)
    p1, (_, d1, h1, w1o) = _im2col_3d(x, 4, 2, 1)
    y1 = conv1_gemm(p1, mp["w1m"], mp["b1r"], slope=slope)
    y1 = y1.reshape(n, d1, h1, w1o, -1)

    # ---- layers 2 + 3 (+ BN + LeakyReLU): ONE fused Pallas kernel B
    p2, (_, d2, h2, w2o) = _im2col_3d(y1, 4, 2, 1)
    spatial2 = d2 * h2 * w2o
    # The fused conv3 epilogue requires conv3's 4^3 window to cover the entire
    # layer-2 output (i.e. 16^3 network input -> one logit per sample).
    assert (d2, h2, w2o) == (4, 4, 4), "fused tail expects a 16^3 spatial input"
    # Row-group selector (constant-folded by XLA) and the conv3 weight broadcast
    # to all samples; both tiny (<= 32 KiB).
    sel = jnp.repeat(jnp.eye(n, dtype=jnp.float32), spatial2, axis=1)   # (N, M2)
    w3t = jnp.tile(mp["w3m"], (n, 1))                                   # (M2, C2)
    logits = conv2_bn_lrelu_conv3(p2, mp["w2m"], mp["b2r"], mp["gammar"],
                                  mp["betar"], w3t, sel, mp["b3r"],
                                  slope=slope, eps=eps)                 # (N, 1)
    return logits.reshape(-1)                                           # view(-1)


# ------------------------------ reference -----------------------------------

def discriminator3d_reference(x_ncdhw, p, slope=0.2, eps=1e-5):
    dn = ("NCDHW", "OIDHW", "NCDHW")
    x = x_ncdhw.astype(jnp.float32)
    y = jax.lax.conv_general_dilated(x, p["w1"], (2, 2, 2), [(1, 1)] * 3,
                                     dimension_numbers=dn)
    y = y + p["b1"].reshape(1, -1, 1, 1, 1)
    y = jnp.where(y >= 0, y, slope * y)

    y = jax.lax.conv_general_dilated(y, p["w2"], (2, 2, 2), [(1, 1)] * 3,
                                     dimension_numbers=dn)
    y = y + p["b2"].reshape(1, -1, 1, 1, 1)
    mean = jnp.mean(y, axis=(0, 2, 3, 4), keepdims=True)
    var = jnp.mean((y - mean) ** 2, axis=(0, 2, 3, 4), keepdims=True)
    y = (y - mean) * jax.lax.rsqrt(var + eps)
    y = y * p["gamma"].reshape(1, -1, 1, 1, 1) + p["beta"].reshape(1, -1, 1, 1, 1)
    y = jnp.where(y >= 0, y, slope * y)

    y = jax.lax.conv_general_dilated(y, p["w3"], (1, 1, 1), [(0, 0)] * 3,
                                     dimension_numbers=dn)
    y = y + p["b3"].reshape(1, -1, 1, 1, 1)
    return y.reshape(-1)


# --------------------------------- main --------------------------------------

if __name__ == "__main__":
    key = jax.random.PRNGKey(0)
    k_x, k_p = jax.random.split(key)

    # small shapes: batch=2, in_channels=1, spatial 16x16x16  (PyTorch NCDHW)
    x = jax.random.normal(k_x, (2, 1, 16, 16, 16), jnp.float32)
    params = init_discriminator3d_params(k_p, in_channels=1, feature_maps=32)
    mp = prepare_params(params)      # layout transforms hoisted out of the step

    fwd = jax.jit(discriminator3d_forward)
    out = jax.block_until_ready(fwd(x, mp))

    ref = jax.block_until_ready(discriminator3d_reference(x, params))

    assert out.shape == (2,), f"unexpected output shape {out.shape}"
    assert jnp.allclose(out, ref, rtol=1e-4, atol=2e-4), (out, ref)

    print("KERNEL_OK")
</pallas_src>

<mosaic_0001>
module attributes {stable_mosaic.version = 11 : i64} {
  func.func @_conv1_gemm_lrelu_kernel(%arg0: i32, %arg1: memref<512x64xf32, #tpu.memory_space<vmem>>, %arg2: memref<64x32xf32, #tpu.memory_space<vmem>>, %arg3: memref<1x32xf32, #tpu.memory_space<vmem>>, %arg4: memref<512x32xf32, #tpu.memory_space<vmem>>) attributes {dimension_semantics = [#tpu.dimension_semantics<parallel>], iteration_bounds = array<i64: 2>, scalar_prefetch = 0 : i64, scratch_operands = 0 : i64, tpu.core_type = #tpu.core_type<tc>, window_params = [{transform_indices = @transform_0, window_bounds = array<i64: 512, 64>}, {pipeline_mode = #tpu.pipeline_mode<synchronous>, transform_indices = @transform_1, window_bounds = array<i64: 64, 32>}, {pipeline_mode = #tpu.pipeline_mode<synchronous>, transform_indices = @transform_2, window_bounds = array<i64: 1, 32>}, {transform_indices = @transform_3, window_bounds = array<i64: 512, 32>}]} {
    %c0 = arith.constant 0 : index
    %c0_0 = arith.constant 0 : index
    %0 = vector.load %arg1[%c0, %c0_0] : memref<512x64xf32, #tpu.memory_space<vmem>>, vector<512x64xf32>
    %c0_1 = arith.constant 0 : index
    %c0_2 = arith.constant 0 : index
    %1 = vector.load %arg2[%c0_1, %c0_2] : memref<64x32xf32, #tpu.memory_space<vmem>>, vector<64x32xf32>
    %cst = arith.constant dense<0.000000e+00> : vector<512x32xf32>
    %2 = tpu.matmul %0, %1, %cst {dimension_numbers = #tpu.dot_dimension_numbers<[1], [0], [0], [1], [0, 0, 1, 1], [], []>} : vector<512x64xf32>, vector<64x32xf32>, vector<512x32xf32> -> vector<512x32xf32>
    %c0_3 = arith.constant 0 : index
    %c0_4 = arith.constant 0 : index
    %3 = vector.load %arg3[%c0_3, %c0_4] : memref<1x32xf32, #tpu.memory_space<vmem>>, vector<1x32xf32>
    %4 = vector.broadcast %3 : vector<1x32xf32> to vector<512x32xf32>
    %5 = arith.addf %2, %4 : vector<512x32xf32>
    %cst_5 = arith.constant 0.000000e+00 : f32
    %6 = vector.broadcast %cst_5 : f32 to vector<512x32xf32>
    %7 = arith.cmpf oge, %5, %6 : vector<512x32xf32>
    %cst_6 = arith.constant 2.000000e-01 : f32
    %8 = vector.broadcast %cst_6 : f32 to vector<512x32xf32>
    %9 = arith.mulf %8, %5 : vector<512x32xf32>
    %10 = arith.select %7, %5, %9 : vector<512x32xi1>, vector<512x32xf32>
    %c0_7 = arith.constant 0 : index
    %c0_8 = arith.constant 0 : index
    %11 = vector.load %arg4[%c0_7, %c0_8] : memref<512x32xf32, #tpu.memory_space<vmem>>, vector<512x32xf32>
    tpu.vector_store %arg4[%c0_7, %c0_8], %10 {strides = array<i32>} : memref<512x32xf32, #tpu.memory_space<vmem>>, vector<512x32xf32>,
    return
  }
  func.func @transform_0(%arg0: i32) -> (i32, i32) {
    %c0_i32 = arith.constant 0 : i32
    %c0_i32_0 = arith.constant 0 : i32
    return %arg0, %c0_i32 : i32, i32
  }
  func.func @transform_1(%arg0: i32) -> (i32, i32) {
    %c0_i32 = arith.constant 0 : i32
    %c0_i32_0 = arith.constant 0 : i32
    %c0_i32_1 = arith.constant 0 : i32
    return %c0_i32, %c0_i32_0 : i32, i32
  }
  func.func @transform_2(%arg0: i32) -> (i32, i32) {
    %c0_i32 = arith.constant 0 : i32
    %c0_i32_0 = arith.constant 0 : i32
    %c0_i32_1 = arith.constant 0 : i32
    return %c0_i32, %c0_i32_0 : i32, i32
  }
  func.func @transform_3(%arg0: i32) -> (i32, i32) {
    %c0_i32 = arith.constant 0 : i32
    %c0_i32_0 = arith.constant 0 : i32
    return %arg0, %c0_i32 : i32, i32
  }
}

module attributes {stable_mosaic.version = 11 : i64} {
  func.func @_conv2_bn_lrelu_conv3_kernel(%arg0: memref<128x2048xf32, #tpu.memory_space<vmem>>, %arg1: memref<2048x64xf32, #tpu.memory_space<vmem>>, %arg2: memref<1x64xf32, #tpu.memory_space<vmem>>, %arg3: memref<1x64xf32, #tpu.memory_space<vmem>>, %arg4: memref<1x64xf32, #tpu.memory_space<vmem>>, %arg5: memref<128x64xf32, #tpu.memory_space<vmem>>, %arg6: memref<2x128xf32, #tpu.memory_space<vmem>>, %arg7: memref<1x1xf32, #tpu.memory_space<vmem>>, %arg8: memref<2x1xf32, #tpu.memory_space<vmem>>) attributes {dimension_semantics = [], scalar_prefetch = 0 : i64, scratch_operands = 0 : i64, tpu.core_type = #tpu.core_type<tc>} {
    %c0 = arith.constant 0 : index
    %c0_0 = arith.constant 0 : index
    %0 = vector.load %arg0[%c0, %c0_0] : memref<128x2048xf32, #tpu.memory_space<vmem>>, vector<128x2048xf32>
    %c0_1 = arith.constant 0 : index
    %c0_2 = arith.constant 0 : index
    %1 = vector.load %arg1[%c0_1, %c0_2] : memref<2048x64xf32, #tpu.memory_space<vmem>>, vector<2048x64xf32>
    %cst = arith.constant dense<0.000000e+00> : vector<128x64xf32>
    %2 = tpu.matmul %0, %1, %cst {dimension_numbers = #tpu.dot_dimension_numbers<[1], [0], [0], [1], [0, 0, 1, 1], [], []>} : vector<128x2048xf32>, vector<2048x64xf32>, vector<128x64xf32> -> vector<128x64xf32>
    %c0_3 = arith.constant 0 : index
    %c0_4 = arith.constant 0 : index
    %3 = vector.load %arg2[%c0_3, %c0_4] : memref<1x64xf32, #tpu.memory_space<vmem>>, vector<1x64xf32>
    %4 = vector.broadcast %3 : vector<1x64xf32> to vector<128x64xf32>
    %5 = arith.addf %2, %4 : vector<128x64xf32>
    %cst_5 = arith.constant dense<0.000000e+00> : vector<64xf32>
    %6 = vector.multi_reduction <add>, %5, %cst_5 [0] : vector<128x64xf32> to vector<64xf32>
    %7 = vector.shape_cast %6 : vector<64xf32> to vector<1x64xf32>
    %cst_6 = arith.constant 1.280000e+02 : f32
    %8 = vector.broadcast %cst_6 : f32 to vector<1x64xf32>
    %9 = arith.divf %7, %8 : vector<1x64xf32>
    %10 = vector.broadcast %9 : vector<1x64xf32> to vector<128x64xf32>
    %11 = arith.subf %5, %10 : vector<128x64xf32>
    %12 = arith.mulf %11, %11 : vector<128x64xf32>
    %cst_7 = arith.constant dense<0.000000e+00> : vector<64xf32>
    %13 = vector.multi_reduction <add>, %12, %cst_7 [0] : vector<128x64xf32> to vector<64xf32>
    %14 = vector.shape_cast %13 : vector<64xf32> to vector<1x64xf32>
    %cst_8 = arith.constant 1.280000e+02 : f32
    %15 = vector.broadcast %cst_8 : f32 to vector<1x64xf32>
    %16 = arith.divf %14, %15 : vector<1x64xf32>
    %c0_9 = arith.constant 0 : index
    %c0_10 = arith.constant 0 : index
    %17 = vector.load %arg3[%c0_9, %c0_10] : memref<1x64xf32, #tpu.memory_space<vmem>>, vector<1x64xf32>
    %cst_11 = arith.constant 9.99999974E-6 : f32
    %18 = vector.broadcast %cst_11 : f32 to vector<1x64xf32>
    %19 = arith.addf %16, %18 : vector<1x64xf32>
    %20 = math.rsqrt %19 : vector<1x64xf32>
    %21 = arith.mulf %17, %20 : vector<1x64xf32>
    %c0_12 = arith.constant 0 : index
    %c0_13 = arith.constant 0 : index
    %22 = vector.load %arg4[%c0_12, %c0_13] : memref<1x64xf32, #tpu.memory_space<vmem>>, vector<1x64xf32>
    %23 = arith.mulf %9, %21 : vector<1x64xf32>
    %24 = arith.subf %22, %23 : vector<1x64xf32>
    %25 = vector.broadcast %21 : vector<1x64xf32> to vector<128x64xf32>
    %26 = arith.mulf %5, %25 : vector<128x64xf32>
    %27 = vector.broadcast %24 : vector<1x64xf32> to vector<128x64xf32>
    %28 = arith.addf %26, %27 : vector<128x64xf32>
    %cst_14 = arith.constant 0.000000e+00 : f32
    %29 = vector.broadcast %cst_14 : f32 to vector<128x64xf32>
    %30 = arith.cmpf oge, %28, %29 : vector<128x64xf32>
    %cst_15 = arith.constant 2.000000e-01 : f32
    %31 = vector.broadcast %cst_15 : f32 to vector<128x64xf32>
    %32 = arith.mulf %31, %28 : vector<128x64xf32>
    %33 = arith.select %30, %28, %32 : vector<128x64xi1>, vector<128x64xf32>
    %c0_16 = arith.constant 0 : index
    %c0_17 = arith.constant 0 : index
    %34 = vector.load %arg5[%c0_16, %c0_17] : memref<128x64xf32, #tpu.memory_space<vmem>>, vector<128x64xf32>
    %35 = arith.mulf %33, %34 : vector<128x64xf32>
    %c0_18 = arith.constant 0 : index
    %c0_19 = arith.constant 0 : index
    %36 = vector.load %arg6[%c0_18, %c0_19] : memref<2x128xf32, #tpu.memory_space<vmem>>, vector<2x128xf32>
    %cst_20 = arith.constant dense<0.000000e+00> : vector<2x64xf32>
    %37 = tpu.matmul %36, %35, %cst_20 {dimension_numbers = #tpu.dot_dimension_numbers<[1], [0], [0], [1], [0, 0, 1, 1], [], []>} : vector<2x128xf32>, vector<128x64xf32>, vector<2x64xf32> -> vector<2x64xf32>
    %cst_21 = arith.constant dense<0.000000e+00> : vector<2xf32>
    %38 = vector.multi_reduction <add>, %37, %cst_21 [1] : vector<2x64xf32> to vector<2xf32>
    %39 = vector.shape_cast %38 : vector<2xf32> to vector<2x1xf32>
    %c0_22 = arith.constant 0 : index
    %c0_23 = arith.constant 0 : index
    %40 = vector.load %arg7[%c0_22, %c0_23] : memref<1x1xf32, #tpu.memory_space<vmem>>, vector<1x1xf32>
    %41 = vector.broadcast %40 : vector<1x1xf32> to vector<2x1xf32>
    %42 = arith.addf %39, %41 : vector<2x1xf32>
    %c0_24 = arith.constant 0 : index
    %c0_25 = arith.constant 0 : index
    %43 = vector.load %arg8[%c0_24, %c0_25] : memref<2x1xf32, #tpu.memory_space<vmem>>, vector<2x1xf32>
    tpu.vector_store %arg8[%c0_24, %c0_25], %42 {strides = array<i32>} : memref<2x1xf32, #tpu.memory_space<vmem>>, vector<2x1xf32>,
    return
  }
}

</mosaic_0001>

<bundles_post_ra>
// kernel: discriminator3d_forward.2
= control target key start
LH: loop header
LB: loop body
LE: loop exit
PB: predicated region body
PF: predicated region fallthrough
CT: control target
= control target key end

     0   :  { %8 = vsyncpa [#allocation3], 0  ;;  %s2051_s0 = inlined_call_operand.hbm [shape: f32[1024,64], index: 0, kind: input, shape index: {}]   ;;  %s2052_s1 = inlined_call_operand.vmem [shape: f32[64,32], index: 1, kind: input, shape index: {}]   ;;  %s2053_s2 = inlined_call_operand.vmem [shape: f32[1,32], index: 2, kind: input, shape index: {}]   ;;  %s2054_s3 = inlined_call_operand.vmem [shape: f32[1024,32], index: 3, kind: output, shape index: {}]  }
   0x1   :  { %10 = vsyncpa [#allocation3 + $0x1], 0  ;;  %s1591_s12 = smov 0   ;;  %s1593_s13 = smov 0  }
   0x2   :  { %s1595_s14 = smov 0   ;;  %s1597_s15 = smov 0  }
   0x3 LB: > { %s1174_s16 = sadd.s32 4294967295, %s1566_s15   ;;  %s1611_s17 = sadd.s32 1, %s1566_s15   ;;  %s1566_s15 = sphi %s1597_s15, %s2061_s15   ;;  %s1562_s14 = sphi %s1595_s14, %s2060_s14   ;;  %s1558_s13 = sphi %s1593_s13, %s2059_s13   ;;  %s1554_s12 = sphi %s1591_s12, %s2058_s12  }
   0x4   : > { %s20_s18 = ssub.s32 %s1566_s15, %s1611_s17  ;;  %s23_s19 = sadd.s32 1, %s1562_s14 }
   0x5   : > { %p21_p0 = scmp.eq.s32.totalorder %s20_s18, 0  ;;  %p30_p1 = scmp.ne.s32.totalorder %s1562_s14, %s1558_s13 }
   0x6   : > { %p31_p2 = scmp.eq.s32.totalorder %s1566_s15, 0  ;;  %p36_p3 = scmp.ne.s32.totalorder %s1558_s13, %s1554_s12 }
   0x7   : > { %s1621_s20 = scalar_select %p21_p0, %s1562_s14, %s23_s19  }
   0x8   : > { %p32_p4 = por %p31_p2, %p30_p1  ;;  %p37_p5 = scmp.eq.s32.totalorder %s1174_s16, 0 }
   0x9   : > { %p1467_p6 = scmp.lt.s32.totalorder %s1566_s15, 2  ;;  %s134_s22 = sand.u32 1, %s1562_s14  }
   0xa   : > { %p1626_p7 = por %p37_p5, %p36_p3  ;;  %s1178_s23 = sshll.u32 %s134_s22, 9 }
   0xb   : > { %s1252_s24 = sshll.u32 %s1566_s15, 13  ;;  %s138_s28 = scalar_lea.vmem [#allocation2], %s1178_s23 }
   0xc   : > { %s1635_s27 = scalar_lea.hbm %s2051_s0, %s1252_s24  ;;  %s145_s29 = sshll.u32 %s138_s28, 4  ;;  %s1637_s29 = int_to_ptr.vmem [resolvable:$true] %s145_s29 }
   0xd   : > { %p1639_p8 = pnand %p1467_p6, %p32_p4  ;;  %s1644_s4 = scalar_lea.sflag [#allocation3], %s134_s22 }
   0xe   : > { %s1502_s5 = scalar_lea.hbm %s1635_s27, 8192  ;;  %s1507_s8 = scalar_lea.hbm %s2051_s0, 16384 }
   0xf   : > { %p1503_p10 = scmp.ne.s32.totalorder %s1635_s27, %s1502_s5  ;;  %p1504_p11 = pneg %p1639_p8 }
  0x10   : > { %p1508_p0 = scmp.lt.u32.totalorder %s1635_s27, %s2051_s0  ;;  %p1509_p1 = scmp.lt.u32.totalorder %s1507_s8, %s1502_s5 }
  0x11   : > { %p1505_p12 = pnand %p1504_p11, %p1503_p10  ;;  %p1511_p3 = scmp.lt.u32.totalorder %s1502_s5, %s1635_s27 }
  0x12   : > { %p1510_p2 = por %p1509_p1, %p1508_p0 }
  0x13   : > { %p1506_p13 = pneg %p1505_p12 }
  0x14   : > { %p1512_p4 = por %p1511_p3, %p1510_p2 }
  0x16   : > { %p1513_p5 = pnand %p1512_p4, %p1506_p13 }
  0x18   : > { %1516 = shalt.err (!%p1513_p5)
}
  0x19   : > { %s1517_s11 = scalar_lea.vmem %s1637_s29, 8192  ;;  %s1568_s12 = smov [#allocation2]  }
  0x1a   : > { %p1518_p6 = scmp.ne.s32.totalorder %s1637_s29, %s1517_s11  ;;  %s1522_s18 = sshll.u32 %s1568_s12, 4  ;;  %s1523_s18 = int_to_ptr.vmem [resolvable:$false] %s1522_s18 }
  0x1b   : > { %s1524_s19 = scalar_lea.vmem %s1523_s18, 16384  ;;  %p1525_p9 = scmp.lt.s32.totalorder %s1637_s29, %s1523_s18 }
  0x1c   : > { %p1520_p10 = pnand %p1518_p6, %p1504_p11  ;;  %p1526_p0 = scmp.lt.s32.totalorder %s1524_s19, %s1517_s11 }
  0x1e   : > { %p1521_p12 = pneg %p1520_p10  ;;  %p1527_p1 = por %p1526_p0, %p1525_p9 }
  0x20   : > { %p1528_p2 = pnand %p1527_p1, %p1521_p12 }
  0x22   : > { %1531 = shalt.err (!%p1528_p2)
}
  0x23   : > { %s1569_s22 = smov 128   ;;  %s1570_s23 = smov 8  }
  0x24   : > { %1466 = dma.hbm_to_vmem [thread:$0]  (!%p1639_p8), %s1635_s27, 8192, %s1637_s29, %s1644_s4, %s1569_s22, %s1569_s22, %s1570_s23  }
  0x25   : > { %p153_p11 = scmp.lt.s32.totalorder %s1566_s15, 3  ;;  %p2057_p13 = scmp.ge.s32.totalorder %s1566_s15, 1 }
  0x27   : > { %p154_p3 = pnand %p2057_p13, %p153_p11 }
  0x28   : > { %s159_s24 = sand.u32 (!%p154_p3), 1, %s1558_s13  }
  0x29   : > { %157 = sbr.rel (%p154_p3) target bundleno = 350 (0x15e), region = 32  ;;  %s1182_s25 = sshll.u32 (!%p154_p3), %s159_s24, 9 }
  0x2a   : > { %s160_s26 = scalar_lea.sflag (!%p154_p3), [#allocation3], %s159_s24  ;;  %s1676_s28 = scalar_lea.vmem (!%p154_p3), [#allocation2], %s1182_s25 }
  0x30   : > { %1549 = dma.done.wait (%p1626_p7), %s160_s26, 8192  }
  0x31   : > { %1551 = vsyncadd (%p1626_p7), %s160_s26, 4294959104  ;;  %v257_v0 = vld [vmem:[%s2052_s1] sm:$0xff]  ;;  %v258_v1 = vld [vmem:[%s2052_s1 + $0x8] sm:$0xff]  ;;  %vm272_vm0 = vcmask 523264   ;;  %s1183_s23 = sshll.u32 %s1174_s16, 6  ;;  %vm1042_vm1 = vcmask 261120  }
  0x32   : > { %v259_v2 = vld [vmem:[%s2052_s1 + $0x10] sm:$0xff]  ;;  %v1437_v3 = vpack.c.bf16 %v258_v1, %v257_v0  ;;  %v260_v4 = vld [vmem:[%s2052_s1 + $0x18] sm:$0xff]  ;;  %v261_v6 = vld [vmem:[%s2052_s1 + $0x20] sm:$0xff]  ;;  %p188_p7 = scmp.lt.s32.totalorder %s1183_s23, 127 }
  0x33   : > { %v1441_v5 = vpack.c.bf16 %v260_v4, %v259_v2  ;;  %v262_v7 = vld [vmem:[%s2052_s1 + $0x28] sm:$0xff]  ;;  %v193_v8 = vld [vmem:[%s1676_s28] sm:$0xff]  ;;  %v263_v11 = vld [vmem:[%s2052_s1 + $0x30] sm:$0xff] }
  0x34   : > { %1438 = vmatprep.subr.bf16.mxu0 %v1437_v3  ;;  %1453 = vmatprep.subr.bf16.mxu1 %v1437_v3  ;;  %v225_v9 = vld [vmem:[%s1676_s28 + $0x100] sm:$0xff]  ;;  %v1445_v10 = vpack.c.bf16 %v262_v7, %v261_v6  ;;  %v264_v12 = vld [vmem:[%s2052_s1 + $0x38] sm:$0xff]  ;;  %v194_v14 = vld [vmem:[%s1676_s28 + $0x8] sm:$0xff]  ;;  %s2063_s23 = smov (!%p188_p7, %s1183_s23), 127 }
  0x35   : > { %1440 = vmatpush3.bf16.msra.mxu0 %v1437_v3  ;;  %1457 = vmatpush3.bf16.msra.mxu1 %v1437_v3  ;;  %v1449_v13 = vpack.c.bf16 %v264_v12, %v263_v11  ;;  %v226_v15 = vld [vmem:[%s1676_s28 + $0x108] sm:$0xff]  ;;  %v195_v16 = vld [vmem:[%s1676_s28 + $0x10] sm:$0xff]  ;;  %v196_v18 = vld [vmem:[%s1676_s28 + $0x18] sm:$0xff]  ;;  %s1184_s26 = sshll.u32 %s2063_s23, 3 }
  0x36   : > { %1442 = vmatprep.subr.bf16.mxu0 %v1441_v5  ;;  %1454 = vmatprep.subr.bf16.mxu1 %v1441_v5  ;;  %v227_v17 = vld [vmem:[%s1676_s28 + $0x110] sm:$0xff]  ;;  %v228_v19 = vld [vmem:[%s1676_s28 + $0x118] sm:$0xff]  ;;  %v197_v20 = vld [vmem:[%s1676_s28 + $0x20] sm:$0xff] }
  0x37   : > { %1341 = vmatprep.mubr.msk.f32.mxu0 %vm272_vm0, %v193_v8  ;;  %1389 = vmatprep.mubr.msk.f32.mxu1 %vm272_vm0, %v225_v9  ;;  %v229_v21 = vld [vmem:[%s1676_s28 + $0x120] sm:$0xff]  ;;  %v198_v22 = vld [vmem:[%s1676_s28 + $0x28] sm:$0xff]  ;;  %v199_v24 = vld [vmem:[%s1676_s28 + $0x30] sm:$0xff] }
  0x38   : > { %v230_v23 = vld [vmem:[%s1676_s28 + $0x128] sm:$0xff]  ;;  %v231_v25 = vld [vmem:[%s1676_s28 + $0x130] sm:$0xff]  ;;  %v200_v26 = vld [vmem:[%s1676_s28 + $0x38] sm:$0xff] }
  0x39   : > { %1444 = vmatpush3.bf16.msra.mxu0 %v1441_v5  ;;  %1458 = vmatpush3.bf16.msra.mxu1 %v1441_v5  ;;  %v232_v27 = vld [vmem:[%s1676_s28 + $0x138] sm:$0xff]  ;;  %v201_v28 = vld [vmem:[%s1676_s28 + $0x40] sm:$0xff]  ;;  %v202_v30 = vld [vmem:[%s1676_s28 + $0x48] sm:$0xff] }
  0x3a   : > { %1446 = vmatprep.subr.bf16.mxu0 %v1445_v10  ;;  %1455 = vmatprep.subr.bf16.mxu1 %v1445_v10  ;;  %v233_v29 = vld [vmem:[%s1676_s28 + $0x140] sm:$0xff]  ;;  %v234_v31 = vld [vmem:[%s1676_s28 + $0x148] sm:$0xff]  ;;  %v203_v32 = vld [vmem:[%s1676_s28 + $0x50] sm:$0xff] }
  0x3b   : > { %v235_v33 = vld [vmem:[%s1676_s28 + $0x150] sm:$0xff]  ;;  %v204_v34 = vld [vmem:[%s1676_s28 + $0x58] sm:$0xff]  ;;  %v205_v36 = vld [vmem:[%s1676_s28 + $0x60] sm:$0xff] }
  0x3c   : > { %v236_v35 = vld [vmem:[%s1676_s28 + $0x158] sm:$0xff]  ;;  %v237_v37 = vld [vmem:[%s1676_s28 + $0x160] sm:$0xff]  ;;  %v206_v38 = vld [vmem:[%s1676_s28 + $0x68] sm:$0xff] }
  0x3d   : > { %1448 = vmatpush3.bf16.msra.mxu0 %v1445_v10  ;;  %1459 = vmatpush3.bf16.msra.mxu1 %v1445_v10  ;;  %v238_v39 = vld [vmem:[%s1676_s28 + $0x168] sm:$0xff]  ;;  %v207_v40 = vld [vmem:[%s1676_s28 + $0x70] sm:$0xff]  ;;  %v208_v42 = vld [vmem:[%s1676_s28 + $0x78] sm:$0xff] }
  0x3e   : > { %1450 = vmatprep.subr.bf16.mxu0 %v1449_v13  ;;  %1456 = vmatprep.subr.bf16.mxu1 %v1449_v13  ;;  %v239_v41 = vld [vmem:[%s1676_s28 + $0x170] sm:$0xff]  ;;  %v240_v43 = vld [vmem:[%s1676_s28 + $0x178] sm:$0xff]  ;;  %v209_v44 = vld [vmem:[%s1676_s28 + $0x80] sm:$0xff] }
  0x3f   : > { %v241_v45 = vld [vmem:[%s1676_s28 + $0x180] sm:$0xff]  ;;  %v210_v46 = vld [vmem:[%s1676_s28 + $0x88] sm:$0xff]  ;;  %v211_v48 = vld [vmem:[%s1676_s28 + $0x90] sm:$0xff] }
  0x40   : > { %v242_v47 = vld [vmem:[%s1676_s28 + $0x188] sm:$0xff]  ;;  %v243_v49 = vld [vmem:[%s1676_s28 + $0x190] sm:$0xff]  ;;  %v212_v50 = vld [vmem:[%s1676_s28 + $0x98] sm:$0xff] }
  0x41   : > { %1452 = vmatpush3.bf16.msra.mxu0 %v1449_v13  ;;  %1460 = vmatpush3.bf16.msra.mxu1 %v1449_v13  ;;  %v244_v51 = vld [vmem:[%s1676_s28 + $0x198] sm:$0xff]  ;;  %v213_v52 = vld [vmem:[%s1676_s28 + $0xa0] sm:$0xff]  ;;  %v214_v54 = vld [vmem:[%s1676_s28 + $0xa8] sm:$0xff] }
  0x42   : > { %v245_v53 = vld [vmem:[%s1676_s28 + $0x1a0] sm:$0xff]  ;;  %v246_v55 = vld [vmem:[%s1676_s28 + $0x1a8] sm:$0xff]  ;;  %v215_v56 = vld [vmem:[%s1676_s28 + $0xb0] sm:$0xff] }
  0x43   : > { %v247_v57 = vld [vmem:[%s1676_s28 + $0x1b0] sm:$0xff]  ;;  %v216_v58 = vld [vmem:[%s1676_s28 + $0xb8] sm:$0xff]  ;;  %v217_v60 = vld [vmem:[%s1676_s28 + $0xc0] sm:$0xff] }
  0x44   : > { %1342 = vmatmul.mubr.msk.f32.vlgmr.msra.gmra.mrb[0].mxu0 %vm272_vm0, %v194_v14  ;;  %1390 = vmatmul.mubr.msk.f32.vlgmr.msra.gmra.mrb[0].mxu1 %vm272_vm0, %v226_v15  ;;  %v248_v59 = vld [vmem:[%s1676_s28 + $0x1b8] sm:$0xff]  ;;  %v249_v61 = vld [vmem:[%s1676_s28 + $0x1c0] sm:$0xff]  ;;  %v218_v62 = vld [vmem:[%s1676_s28 + $0xc8] sm:$0xff] }
  0x45   : > { %1344 = vmatprep.mubr.msk.f32.mxu0 %vm272_vm0, %v195_v16  ;;  %1392 = vmatprep.mubr.msk.f32.mxu1 %vm272_vm0, %v227_v17  ;;  %v250_v63 = vld [vmem:[%s1676_s28 + $0x1c8] sm:$0xff]  ;;  %v219_v0 = vld [vmem:[%s1676_s28 + $0xd0] sm:$0xff]  ;;  %v220_v2 = vld [vmem:[%s1676_s28 + $0xd8] sm:$0xff] }
  0x46   : > { %v251_v1 = vld [vmem:[%s1676_s28 + $0x1d0] sm:$0xff]  ;;  %v252_v3 = vld [vmem:[%s1676_s28 + $0x1d8] sm:$0xff]  ;;  %v221_v4 = vld [vmem:[%s1676_s28 + $0xe0] sm:$0xff] }
  0x47   : > { %v253_v5 = vld [vmem:[%s1676_s28 + $0x1e0] sm:$0xff]  ;;  %v222_v6 = vld [vmem:[%s1676_s28 + $0xe8] sm:$0xff]  ;;  %v223_v8 = vld [vmem:[%s1676_s28 + $0xf0] sm:$0xff] }
  0x48   : > { %1345 = vmatmul.mubr.msk.f32.gmra.mrb[2].mxu0 %vm272_vm0, %v196_v18  ;;  %1393 = vmatmul.mubr.msk.f32.gmra.mrb[2].mxu1 %vm272_vm0, %v228_v19  ;;  %v254_v7 = vld [vmem:[%s1676_s28 + $0x1e8] sm:$0xff]  ;;  %v255_v9 = vld [vmem:[%s1676_s28 + $0x1f0] sm:$0xff]  ;;  %v224_v10 = vld [vmem:[%s1676_s28 + $0xf8] sm:$0xff] }
  0x49   : > { %1347 = vmatprep.mubr.msk.f32.mxu0 %vm272_vm0, %v197_v20  ;;  %1395 = vmatprep.mubr.msk.f32.mxu1 %vm272_vm0, %v229_v21  ;;  %v256_v11 = vld [vmem:[%s1676_s28 + $0x1f8] sm:$0xff]  ;;  %v1839_v12 = vld [vmem:[%s2053_s2] ss:$0 sm:$0xff]  ;;  %s1848_s28 = scalar_lea.vmem %s2054_s3, %s1184_s26 }
  0x4c   : > { %1348 = vmatmul.mubr.msk.f32.gmra.mrb[4].mxu0 %vm272_vm0, %v198_v22  ;;  %1396 = vmatmul.mubr.msk.f32.gmra.mrb[4].mxu1 %vm272_vm0, %v230_v23 }
  0x4d   : > { %1350 = vmatprep.mubr.msk.f32.mxu0 %vm272_vm0, %v199_v24  ;;  %1398 = vmatprep.mubr.msk.f32.mxu1 %vm272_vm0, %v231_v25 }
  0x50   : > { %1351 = vmatmul.mubr.msk.f32.gmra.mrb[6].mxu0 %vm272_vm0, %v200_v26  ;;  %1399 = vmatmul.mubr.msk.f32.gmra.mrb[6].mxu1 %vm272_vm0, %v232_v27 }
  0x51   : > { %1353 = vmatprep.mubr.msk.f32.mxu0 %vm272_vm0, %v201_v28  ;;  %1401 = vmatprep.mubr.msk.f32.mxu1 %vm272_vm0, %v233_v29 }
  0x54   : > { %1354 = vmatmul.mubr.msk.f32.gmra.mrb[8].mxu0 %vm272_vm0, %v202_v30  ;;  %1402 = vmatmul.mubr.msk.f32.gmra.mrb[8].mxu1 %vm272_vm0, %v234_v31 }
  0x55   : > { %1356 = vmatprep.mubr.msk.f32.mxu0 %vm272_vm0, %v203_v32  ;;  %1404 = vmatprep.mubr.msk.f32.mxu1 %vm272_vm0, %v235_v33 }
  0x58   : > { %1357 = vmatmul.mubr.msk.f32.gmra.mrb[10].mxu0 %vm272_vm0, %v204_v34  ;;  %1405 = vmatmul.mubr.msk.f32.gmra.mrb[10].mxu1 %vm272_vm0, %v236_v35 }
  0x59   : > { %1359 = vmatprep.mubr.msk.f32.mxu0 %vm272_vm0, %v205_v36  ;;  %1407 = vmatprep.mubr.msk.f32.mxu1 %vm272_vm0, %v237_v37 }
  0x5c   : > { %1360 = vmatmul.mubr.msk.f32.gmra.mrb[12].mxu0 %vm272_vm0, %v206_v38  ;;  %1408 = vmatmul.mubr.msk.f32.gmra.mrb[12].mxu1 %vm272_vm0, %v238_v39 }
  0x5d   : > { %1362 = vmatprep.mubr.msk.f32.mxu0 %vm272_vm0, %v207_v40  ;;  %1410 = vmatprep.mubr.msk.f32.mxu1 %vm272_vm0, %v239_v41 }
  0x60   : > { %1363 = vmatmul.mubr.msk.f32.gmra.mrb[14].mxu0 %vm272_vm0, %v208_v42  ;;  %1411 = vmatmul.mubr.msk.f32.gmra.mrb[14].mxu1 %vm272_vm0, %v240_v43 }
  0x61   : > { %1365 = vmatprep.mubr.msk.f32.mxu0 %vm272_vm0, %v209_v44  ;;  %1413 = vmatprep.mubr.msk.f32.mxu1 %vm272_vm0, %v241_v45 }
  0x64   : > { %1366 = vmatmul.mubr.msk.f32.gmra.mrb[16].mxu0 %vm272_vm0, %v210_v46  ;;  %1414 = vmatmul.mubr.msk.f32.gmra.mrb[16].mxu1 %vm272_vm0, %v242_v47 }
  0x65   : > { %1368 = vmatprep.mubr.msk.f32.mxu0 %vm272_vm0, %v211_v48  ;;  %1416 = vmatprep.mubr.msk.f32.mxu1 %vm272_vm0, %v243_v49 }
  0x68   : > { %1369 = vmatmul.mubr.msk.f32.gmra.mrb[18].mxu0 %vm272_vm0, %v212_v50  ;;  %1417 = vmatmul.mubr.msk.f32.gmra.mrb[18].mxu1 %vm272_vm0, %v244_v51 }
  0x69   : > { %1371 = vmatprep.mubr.msk.f32.mxu0 %vm272_vm0, %v213_v52  ;;  %1419 = vmatprep.mubr.msk.f32.mxu1 %vm272_vm0, %v245_v53 }
  0x6c   : > { %1372 = vmatmul.mubr.msk.f32.gmra.mrb[20].mxu0 %vm272_vm0, %v214_v54  ;;  %1420 = vmatmul.mubr.msk.f32.gmra.mrb[20].mxu1 %vm272_vm0, %v246_v55 }
  0x6d   : > { %1374 = vmatprep.mubr.msk.f32.mxu0 %vm272_vm0, %v215_v56  ;;  %1422 = vmatprep.mubr.msk.f32.mxu1 %vm272_vm0, %v247_v57 }
  0x70   : > { %1375 = vmatmul.mubr.msk.f32.gmra.mrb[22].mxu0 %vm272_vm0, %v216_v58  ;;  %1423 = vmatmul.mubr.msk.f32.gmra.mrb[22].mxu1 %vm272_vm0, %v248_v59 }
  0x71   : > { %1377 = vmatprep.mubr.msk.f32.mxu0 %vm272_vm0, %v217_v60  ;;  %1425 = vmatprep.mubr.msk.f32.mxu1 %vm272_vm0, %v249_v61 }
  0x74   : > { %1378 = vmatmul.mubr.msk.f32.gmra.mrb[24].mxu0 %vm272_vm0, %v218_v62  ;;  %1426 = vmatmul.mubr.msk.f32.gmra.mrb[24].mxu1 %vm272_vm0, %v250_v63 }
  0x75   : > { %1380 = vmatprep.mubr.msk.f32.mxu0 %vm272_vm0, %v219_v0  ;;  %1428 = vmatprep.mubr.msk.f32.mxu1 %vm272_vm0, %v251_v1 }
  0x78   : > { %1381 = vmatmul.mubr.msk.f32.gmra.mrb[26].mxu0 %vm272_vm0, %v220_v2  ;;  %1429 = vmatmul.mubr.msk.f32.gmra.mrb[26].mxu1 %vm272_vm0, %v252_v3 }
  0x79   : > { %1383 = vmatprep.mubr.msk.f32.mxu0 %vm272_vm0, %v221_v4  ;;  %1431 = vmatprep.mubr.msk.f32.mxu1 %vm272_vm0, %v253_v5 }
  0x7c   : > { %1384 = vmatmul.mubr.msk.f32.gmra.mrb[28].mxu0 %vm272_vm0, %v222_v6  ;;  %1432 = vmatmul.mubr.msk.f32.gmra.mrb[28].mxu1 %vm272_vm0, %v254_v7 }
  0x7d   : > { %1386 = vmatprep.mubr.msk.f32.mxu0 %vm272_vm0, %v223_v8  ;;  %1434 = vmatprep.mubr.msk.f32.mxu1 %vm272_vm0, %v255_v9 }
  0x80   : > { %1387 = vmatmul.mubr.msk.f32.gmra.mrb[30].mxu0 %vm272_vm0, %v224_v10  ;;  %1435 = vmatmul.mubr.msk.f32.gmra.mrb[30].mxu1 %vm272_vm0, %v256_v11 }
 0x117   : > { %v1343_v13 = vpop.f32.mrb[0].mxu0  ;;  %v1391_v14 = vpop.f32.mrb[0].mxu1 }
 0x118   : > { %v537_v15 = vadd.f32 %v1343_v13, %v1839_v12  ;;  %v697_v16 = vadd.f32 %v1391_v14, %v1839_v12  ;;  %v531_v17 = vpop.f32.mrb[1].mxu0  ;;  %v691_v18 = vpop.f32.mrb[1].mxu1 }
 0x119   : > { %v532_v19 = vadd.f32 %v1839_v12, %v531_v17  ;;  %v692_v20 = vadd.f32 %v1839_v12, %v691_v18 }
 0x11a   : > { %vm851_vm2 = vcmp.ge.f32.partialorder %v537_v15, 0.0  ;;  %v915_v21 = vmul.f32 0.2, %v537_v15  ;;  %vm883_vm3 = vcmp.ge.f32.partialorder %v697_v16, 0.0  ;;  %v947_v22 = vmul.f32 0.2, %v697_v16 }
 0x11b   : > { %vm850_vm4 = vcmp.ge.f32.partialorder %v532_v19, 0.0  ;;  %v914_v23 = vmul.f32 0.2, %v532_v19  ;;  %vm882_vm5 = vcmp.ge.f32.partialorder %v692_v20, 0.0  ;;  %v946_v24 = vmul.f32 0.2, %v692_v20 }
 0x11c   : > { %v979_v25 = vsel %vm851_vm2, %v537_v15, %v915_v21  ;;  %v1011_v26 = vsel %vm883_vm3, %v697_v16, %v947_v22  ;;  %v1346_v27 = vpop.f32.mrb[2].mxu0  ;;  %v1394_v28 = vpop.f32.mrb[2].mxu1 }
 0x11d   : > { %1044 = vst.msk [vmem:[%s1848_s28 + $0x8] sm:$0xff] %vm1042_vm1, %v979_v25  ;;  %1076 = vst.msk [vmem:[%s1848_s28 + $0x108] sm:$0xff] %vm1042_vm1, %v1011_v26  ;;  %v978_v29 = vsel %vm850_vm4, %v532_v19, %v914_v23  ;;  %v1010_v30 = vsel %vm882_vm5, %v692_v20, %v946_v24  ;;  %v547_v31 = vadd.f32 %v1346_v27, %v1839_v12  ;;  %v541_v33 = vpop.f32.mrb[3].mxu0  ;;  %v701_v34 = vpop.f32.mrb[3].mxu1 }
 0x11e   : > { %v707_v32 = vadd.f32 %v1394_v28, %v1839_v12  ;;  %1043 = vst.msk [vmem:[%s1848_s28] sm:$0xff] %vm1042_vm1, %v978_v29  ;;  %1075 = vst.msk [vmem:[%s1848_s28 + $0x100] sm:$0xff] %vm1042_vm1, %v1010_v30  ;;  %v542_v35 = vadd.f32 %v1839_v12, %v541_v33  ;;  %v702_v36 = vadd.f32 %v1839_v12, %v701_v34 }
 0x11f   : > { %vm853_vm6 = vcmp.ge.f32.partialorder %v547_v31, 0.0  ;;  %v917_v37 = vmul.f32 0.2, %v547_v31  ;;  %v1349_v43 = vpop.f32.mrb[4].mxu0  ;;  %v1397_v44 = vpop.f32.mrb[4].mxu1 }
 0x120   : > { %vm885_vm7 = vcmp.ge.f32.partialorder %v707_v32, 0.0  ;;  %v949_v38 = vmul.f32 0.2, %v707_v32  ;;  %vm852_vm8 = vcmp.ge.f32.partialorder %v542_v35, 0.0  ;;  %v916_v39 = vmul.f32 0.2, %v542_v35 }
 0x121   : > { %vm884_vm9 = vcmp.ge.f32.partialorder %v702_v36, 0.0  ;;  %v948_v40 = vmul.f32 0.2, %v702_v36  ;;  %v981_v41 = vsel %vm853_vm6, %v547_v31, %v917_v37  ;;  %v557_v47 = vadd.f32 %v1349_v43, %v1839_v12  ;;  %v551_v49 = vpop.f32.mrb[5].mxu0  ;;  %v711_v50 = vpop.f32.mrb[5].mxu1 }
 0x122   : > { %v1013_v42 = vsel %vm885_vm7, %v707_v32, %v949_v38  ;;  %1046 = vst.msk [vmem:[%s1848_s28 + $0x18] sm:$0xff] %vm1042_vm1, %v981_v41  ;;  %v980_v45 = vsel %vm852_vm8, %v542_v35, %v916_v39  ;;  %v717_v48 = vadd.f32 %v1397_v44, %v1839_v12  ;;  %v552_v51 = vadd.f32 %v1839_v12, %v551_v49 }
 0x123   : > { %1078 = vst.msk [vmem:[%s1848_s28 + $0x118] sm:$0xff] %vm1042_vm1, %v1013_v42  ;;  %v1012_v46 = vsel %vm884_vm9, %v702_v36, %v948_v40  ;;  %1045 = vst.msk [vmem:[%s1848_s28 + $0x10] sm:$0xff] %vm1042_vm1, %v980_v45  ;;  %v712_v52 = vadd.f32 %v1839_v12, %v711_v50  ;;  %v1352_v53 = vpop.f32.mrb[6].mxu0  ;;  %v1400_v54 = vpop.f32.mrb[6].mxu1  ;;  %vm855_vm10 = vcmp.ge.f32.partialorder %v557_v47, 0.0 }
 0x124   : > { %1077 = vst.msk [vmem:[%s1848_s28 + $0x110] sm:$0xff] %vm1042_vm1, %v1012_v46  ;;  %v919_v55 = vmul.f32 0.2, %v557_v47  ;;  %vm887_vm11 = vcmp.ge.f32.partialorder %v717_v48, 0.0  ;;  %v951_v56 = vmul.f32 0.2, %v717_v48  ;;  %v567_v61 = vadd.f32 %v1352_v53, %v1839_v12 }
 0x125   : > { %vm854_vm12 = vcmp.ge.f32.partialorder %v552_v51, 0.0  ;;  %v918_v57 = vmul.f32 0.2, %v552_v51  ;;  %vm886_vm13 = vcmp.ge.f32.partialorder %v712_v52, 0.0  ;;  %v950_v58 = vmul.f32 0.2, %v712_v52 }
 0x126   : > { %v983_v59 = vsel %vm855_vm10, %v557_v47, %v919_v55  ;;  %v1015_v60 = vsel %vm887_vm11, %v717_v48, %v951_v56  ;;  %v727_v62 = vadd.f32 %v1400_v54, %v1839_v12  ;;  %v561_v63 = vpop.f32.mrb[7].mxu0  ;;  %v721_v0 = vpop.f32.mrb[7].mxu1  ;;  %vm857_vm14 = vcmp.ge.f32.partialorder %v567_v61, 0.0 }
 0x127   : > { %1048 = vst.msk [vmem:[%s1848_s28 + $0x28] sm:$0xff] %vm1042_vm1, %v983_v59  ;;  %1080 = vst.msk [vmem:[%s1848_s28 + $0x128] sm:$0xff] %vm1042_vm1, %v1015_v60  ;;  %v982_v1 = vsel %vm854_vm12, %v552_v51, %v918_v57  ;;  %v1014_v2 = vsel %vm886_vm13, %v712_v52, %v950_v58  ;;  %v562_v3 = vadd.f32 %v1839_v12, %v561_v63  ;;  %v1355_v5 = vpop.f32.mrb[8].mxu0  ;;  %v1403_v6 = vpop.f32.mrb[8].mxu1  ;;  %v921_v7 = vmul.f32 0.2, %v567_v61 }
 0x128   : > { %v722_v4 = vadd.f32 %v1839_v12, %v721_v0  ;;  %1047 = vst.msk [vmem:[%s1848_s28 + $0x20] sm:$0xff] %vm1042_vm1, %v982_v1  ;;  %1079 = vst.msk [vmem:[%s1848_s28 + $0x120] sm:$0xff] %vm1042_vm1, %v1014_v2  ;;  %vm889_vm15 = vcmp.ge.f32.partialorder %v727_v62, 0.0  ;;  %v953_v8 = vmul.f32 0.2, %v727_v62  ;;  %v577_v14 = vadd.f32 %v1355_v5, %v1839_v12  ;;  %v571_v16 = vpop.f32.mrb[9].mxu0 }
 0x129   : > { %vm856_vm0 = vcmp.ge.f32.partialorder %v562_v3, 0.0  ;;  %v920_v9 = vmul.f32 0.2, %v562_v3  ;;  %v985_v11 = vsel %vm857_vm14, %v567_v61, %v921_v7  ;;  %v737_v15 = vadd.f32 %v1403_v6, %v1839_v12  ;;  %v731_v17 = vpop.f32.mrb[9].mxu1 }
 0x12a   : > { %vm888_vm2 = vcmp.ge.f32.partialorder %v722_v4, 0.0  ;;  %v952_v10 = vmul.f32 0.2, %v722_v4  ;;  %v1017_v13 = vsel %vm889_vm15, %v727_v62, %v953_v8  ;;  %1050 = vst.msk [vmem:[%s1848_s28 + $0x38] sm:$0xff] %vm1042_vm1, %v985_v11  ;;  %v572_v20 = vadd.f32 %v1839_v12, %v571_v16 }
 0x12b   : > { %1082 = vst.msk [vmem:[%s1848_s28 + $0x138] sm:$0xff] %vm1042_vm1, %v1017_v13  ;;  %v984_v18 = vsel %vm856_vm0, %v562_v3, %v920_v9  ;;  %v732_v21 = vadd.f32 %v1839_v12, %v731_v17  ;;  %v1358_v22 = vpop.f32.mrb[10].mxu0  ;;  %v1406_v23 = vpop.f32.mrb[10].mxu1  ;;  %vm859_vm3 = vcmp.ge.f32.partialorder %v577_v14, 0.0  ;;  %v923_v24 = vmul.f32 0.2, %v577_v14 }
 0x12c   : > { %v1016_v19 = vsel %vm888_vm2, %v722_v4, %v952_v10  ;;  %1049 = vst.msk [vmem:[%s1848_s28 + $0x30] sm:$0xff] %vm1042_vm1, %v984_v18  ;;  %vm891_vm4 = vcmp.ge.f32.partialorder %v737_v15, 0.0  ;;  %v955_v25 = vmul.f32 0.2, %v737_v15  ;;  %vm858_vm5 = vcmp.ge.f32.partialorder %v572_v20, 0.0  ;;  %v581_v32 = vpop.f32.mrb[11].mxu0 }
 0x12d   : > { %1081 = vst.msk [vmem:[%s1848_s28 + $0x130] sm:$0xff] %vm1042_vm1, %v1016_v19  ;;  %v922_v26 = vmul.f32 0.2, %v572_v20  ;;  %vm890_vm6 = vcmp.ge.f32.partialorder %v732_v21, 0.0  ;;  %v954_v27 = vmul.f32 0.2, %v732_v21  ;;  %v987_v28 = vsel %vm859_vm3, %v577_v14, %v923_v24 }
 0x12e   : > { %v1019_v29 = vsel %vm891_vm4, %v737_v15, %v955_v25  ;;  %v587_v30 = vadd.f32 %v1358_v22, %v1839_v12  ;;  %v747_v31 = vadd.f32 %v1406_v23, %v1839_v12  ;;  %v741_v33 = vpop.f32.mrb[11].mxu1  ;;  %1052 = vst.msk [vmem:[%s1848_s28 + $0x48] sm:$0xff] %vm1042_vm1, %v987_v28  ;;  %v582_v36 = vadd.f32 %v1839_v12, %v581_v32 }
 0x12f   : > { %1084 = vst.msk [vmem:[%s1848_s28 + $0x148] sm:$0xff] %vm1042_vm1, %v1019_v29  ;;  %v986_v34 = vsel %vm858_vm5, %v572_v20, %v922_v26  ;;  %v1018_v35 = vsel %vm890_vm6, %v732_v21, %v954_v27  ;;  %v742_v37 = vadd.f32 %v1839_v12, %v741_v33  ;;  %v1361_v38 = vpop.f32.mrb[12].mxu0  ;;  %v1409_v39 = vpop.f32.mrb[12].mxu1 }
 0x130   : > { %1051 = vst.msk [vmem:[%s1848_s28 + $0x40] sm:$0xff] %vm1042_vm1, %v986_v34  ;;  %1083 = vst.msk [vmem:[%s1848_s28 + $0x140] sm:$0xff] %vm1042_vm1, %v1018_v35  ;;  %vm861_vm7 = vcmp.ge.f32.partialorder %v587_v30, 0.0  ;;  %v925_v40 = vmul.f32 0.2, %v587_v30  ;;  %vm893_vm8 = vcmp.ge.f32.partialorder %v747_v31, 0.0  ;;  %v597_v46 = vadd.f32 %v1361_v38, %v1839_v12 }
 0x131   : > { %v957_v41 = vmul.f32 0.2, %v747_v31  ;;  %vm860_vm9 = vcmp.ge.f32.partialorder %v582_v36, 0.0  ;;  %v924_v42 = vmul.f32 0.2, %v582_v36  ;;  %vm892_vm10 = vcmp.ge.f32.partialorder %v742_v37, 0.0 }
 0x132   : > { %v956_v43 = vmul.f32 0.2, %v742_v37  ;;  %v989_v44 = vsel %vm861_vm7, %v587_v30, %v925_v40  ;;  %v757_v47 = vadd.f32 %v1409_v39, %v1839_v12  ;;  %v591_v48 = vpop.f32.mrb[13].mxu0  ;;  %v751_v49 = vpop.f32.mrb[13].mxu1  ;;  %vm863_vm11 = vcmp.ge.f32.partialorder %v597_v46, 0.0 }
 0x133   : > { %v1021_v45 = vsel %vm893_vm8, %v747_v31, %v957_v41  ;;  %1054 = vst.msk [vmem:[%s1848_s28 + $0x58] sm:$0xff] %vm1042_vm1, %v989_v44  ;;  %v988_v50 = vsel %vm860_vm9, %v582_v36, %v924_v42  ;;  %v592_v52 = vadd.f32 %v1839_v12, %v591_v48  ;;  %v752_v53 = vadd.f32 %v1839_v12, %v751_v49  ;;  %v1364_v54 = vpop.f32.mrb[14].mxu0  ;;  %v1412_v55 = vpop.f32.mrb[14].mxu1 }
 0x134   : > { %1086 = vst.msk [vmem:[%s1848_s28 + $0x158] sm:$0xff] %vm1042_vm1, %v1021_v45  ;;  %v1020_v51 = vsel %vm892_vm10, %v742_v37, %v956_v43  ;;  %1053 = vst.msk [vmem:[%s1848_s28 + $0x50] sm:$0xff] %vm1042_vm1, %v988_v50  ;;  %v927_v56 = vmul.f32 0.2, %v597_v46  ;;  %vm895_vm12 = vcmp.ge.f32.partialorder %v757_v47, 0.0  ;;  %v607_v62 = vadd.f32 %v1364_v54, %v1839_v12  ;;  %v601_v0 = vpop.f32.mrb[15].mxu0 }
 0x135   : > { %1085 = vst.msk [vmem:[%s1848_s28 + $0x150] sm:$0xff] %vm1042_vm1, %v1020_v51  ;;  %v959_v57 = vmul.f32 0.2, %v757_v47  ;;  %vm862_vm13 = vcmp.ge.f32.partialorder %v592_v52, 0.0  ;;  %v926_v58 = vmul.f32 0.2, %v592_v52  ;;  %v767_v63 = vadd.f32 %v1412_v55, %v1839_v12 }
 0x136   : > { %vm894_vm14 = vcmp.ge.f32.partialorder %v752_v53, 0.0  ;;  %v958_v59 = vmul.f32 0.2, %v752_v53  ;;  %v991_v60 = vsel %vm863_vm11, %v597_v46, %v927_v56  ;;  %v761_v1 = vpop.f32.mrb[15].mxu1  ;;  %v602_v4 = vadd.f32 %v1839_v12, %v601_v0 }
 0x137   : > { %v1023_v61 = vsel %vm895_vm12, %v757_v47, %v959_v57  ;;  %1056 = vst.msk [vmem:[%s1848_s28 + $0x68] sm:$0xff] %vm1042_vm1, %v991_v60  ;;  %v990_v2 = vsel %vm862_vm13, %v592_v52, %v926_v58  ;;  %v762_v5 = vadd.f32 %v1839_v12, %v761_v1  ;;  %v1367_v6 = vpop.f32.mrb[16].mxu0  ;;  %v1415_v7 = vpop.f32.mrb[16].mxu1  ;;  %vm865_vm15 = vcmp.ge.f32.partialorder %v607_v62, 0.0 }
 0x138   : > { %1088 = vst.msk [vmem:[%s1848_s28 + $0x168] sm:$0xff] %vm1042_vm1, %v1023_v61  ;;  %v1022_v3 = vsel %vm894_vm14, %v752_v53, %v958_v59  ;;  %1055 = vst.msk [vmem:[%s1848_s28 + $0x60] sm:$0xff] %vm1042_vm1, %v990_v2  ;;  %v929_v8 = vmul.f32 0.2, %v607_v62  ;;  %vm897_vm0 = vcmp.ge.f32.partialorder %v767_v63, 0.0  ;;  %vm864_vm2 = vcmp.ge.f32.partialorder %v602_v4, 0.0 }
 0x139   : > { %1087 = vst.msk [vmem:[%s1848_s28 + $0x160] sm:$0xff] %vm1042_vm1, %v1022_v3  ;;  %v961_v9 = vmul.f32 0.2, %v767_v63  ;;  %v928_v10 = vmul.f32 0.2, %v602_v4  ;;  %vm896_vm3 = vcmp.ge.f32.partialorder %v762_v5, 0.0  ;;  %v617_v15 = vadd.f32 %v1367_v6, %v1839_v12 }
 0x13a   : > { %v960_v11 = vmul.f32 0.2, %v762_v5  ;;  %v993_v13 = vsel %vm865_vm15, %v607_v62, %v929_v8  ;;  %v777_v16 = vadd.f32 %v1415_v7, %v1839_v12  ;;  %v611_v17 = vpop.f32.mrb[17].mxu0  ;;  %v771_v18 = vpop.f32.mrb[17].mxu1 }
 0x13b   : > { %v1025_v14 = vsel %vm897_vm0, %v767_v63, %v961_v9  ;;  %1058 = vst.msk [vmem:[%s1848_s28 + $0x78] sm:$0xff] %vm1042_vm1, %v993_v13  ;;  %v992_v19 = vsel %vm864_vm2, %v602_v4, %v928_v10  ;;  %v612_v21 = vadd.f32 %v1839_v12, %v611_v17  ;;  %v772_v22 = vadd.f32 %v1839_v12, %v771_v18  ;;  %v1370_v23 = vpop.f32.mrb[18].mxu0  ;;  %v1418_v24 = vpop.f32.mrb[18].mxu1 }
 0x13c   : > { %1090 = vst.msk [vmem:[%s1848_s28 + $0x178] sm:$0xff] %vm1042_vm1, %v1025_v14  ;;  %v1024_v20 = vsel %vm896_vm3, %v762_v5, %v960_v11  ;;  %1057 = vst.msk [vmem:[%s1848_s28 + $0x70] sm:$0xff] %vm1042_vm1, %v992_v19  ;;  %vm867_vm4 = vcmp.ge.f32.partialorder %v617_v15, 0.0  ;;  %v931_v25 = vmul.f32 0.2, %v617_v15  ;;  %vm899_vm5 = vcmp.ge.f32.partialorder %v777_v16, 0.0 }
 0x13d   : > { %1089 = vst.msk [vmem:[%s1848_s28 + $0x170] sm:$0xff] %vm1042_vm1, %v1024_v20  ;;  %v963_v26 = vmul.f32 0.2, %v777_v16  ;;  %vm866_vm6 = vcmp.ge.f32.partialorder %v612_v21, 0.0  ;;  %v930_v27 = vmul.f32 0.2, %v612_v21  ;;  %v627_v31 = vadd.f32 %v1370_v23, %v1839_v12 }
 0x13e   : > { %vm898_vm7 = vcmp.ge.f32.partialorder %v772_v22, 0.0  ;;  %v962_v28 = vmul.f32 0.2, %v772_v22  ;;  %v995_v29 = vsel %vm867_vm4, %v617_v15, %v931_v25  ;;  %v787_v32 = vadd.f32 %v1418_v24, %v1839_v12  ;;  %v621_v33 = vpop.f32.mrb[19].mxu0  ;;  %v781_v34 = vpop.f32.mrb[19].mxu1 }
 0x13f   : > { %v1027_v30 = vsel %vm899_vm5, %v777_v16, %v963_v26  ;;  %1060 = vst.msk [vmem:[%s1848_s28 + $0x88] sm:$0xff] %vm1042_vm1, %v995_v29  ;;  %v994_v35 = vsel %vm866_vm6, %v612_v21, %v930_v27  ;;  %v622_v37 = vadd.f32 %v1839_v12, %v621_v33  ;;  %v782_v38 = vadd.f32 %v1839_v12, %v781_v34  ;;  %v1373_v39 = vpop.f32.mrb[20].mxu0  ;;  %v1421_v40 = vpop.f32.mrb[20].mxu1 }
 0x140   : > { %1092 = vst.msk [vmem:[%s1848_s28 + $0x188] sm:$0xff] %vm1042_vm1, %v1027_v30  ;;  %v1026_v36 = vsel %vm898_vm7, %v772_v22, %v962_v28  ;;  %1059 = vst.msk [vmem:[%s1848_s28 + $0x80] sm:$0xff] %vm1042_vm1, %v994_v35  ;;  %vm869_vm8 = vcmp.ge.f32.partialorder %v627_v31, 0.0  ;;  %v933_v41 = vmul.f32 0.2, %v627_v31  ;;  %vm901_vm9 = vcmp.ge.f32.partialorder %v787_v32, 0.0 }
 0x141   : > { %1091 = vst.msk [vmem:[%s1848_s28 + $0x180] sm:$0xff] %vm1042_vm1, %v1026_v36  ;;  %v965_v42 = vmul.f32 0.2, %v787_v32  ;;  %vm868_vm10 = vcmp.ge.f32.partialorder %v622_v37, 0.0  ;;  %v932_v43 = vmul.f32 0.2, %v622_v37  ;;  %v637_v47 = vadd.f32 %v1373_v39, %v1839_v12 }
 0x142   : > { %vm900_vm11 = vcmp.ge.f32.partialorder %v782_v38, 0.0  ;;  %v964_v44 = vmul.f32 0.2, %v782_v38  ;;  %v997_v45 = vsel %vm869_vm8, %v627_v31, %v933_v41  ;;  %v797_v48 = vadd.f32 %v1421_v40, %v1839_v12  ;;  %v631_v49 = vpop.f32.mrb[21].mxu0  ;;  %v791_v50 = vpop.f32.mrb[21].mxu1 }
 0x143   : > { %v1029_v46 = vsel %vm901_vm9, %v787_v32, %v965_v42  ;;  %1062 = vst.msk [vmem:[%s1848_s28 + $0x98] sm:$0xff] %vm1042_vm1, %v997_v45  ;;  %v996_v51 = vsel %vm868_vm10, %v622_v37, %v932_v43  ;;  %v632_v53 = vadd.f32 %v1839_v12, %v631_v49  ;;  %v792_v54 = vadd.f32 %v1839_v12, %v791_v50  ;;  %v1376_v55 = vpop.f32.mrb[22].mxu0  ;;  %v1424_v56 = vpop.f32.mrb[22].mxu1 }
 0x144   : > { %1094 = vst.msk [vmem:[%s1848_s28 + $0x198] sm:$0xff] %vm1042_vm1, %v1029_v46  ;;  %v1028_v52 = vsel %vm900_vm11, %v782_v38, %v964_v44  ;;  %1061 = vst.msk [vmem:[%s1848_s28 + $0x90] sm:$0xff] %vm1042_vm1, %v996_v51  ;;  %vm871_vm12 = vcmp.ge.f32.partialorder %v637_v47, 0.0  ;;  %v935_v57 = vmul.f32 0.2, %v637_v47  ;;  %vm903_vm13 = vcmp.ge.f32.partialorder %v797_v48, 0.0 }
 0x145   : > { %1093 = vst.msk [vmem:[%s1848_s28 + $0x190] sm:$0xff] %vm1042_vm1, %v1028_v52  ;;  %v967_v58 = vmul.f32 0.2, %v797_v48  ;;  %vm870_vm14 = vcmp.ge.f32.partialorder %v632_v53, 0.0  ;;  %v934_v59 = vmul.f32 0.2, %v632_v53  ;;  %v647_v63 = vadd.f32 %v1376_v55, %v1839_v12 }
 0x146   : > { %vm902_vm15 = vcmp.ge.f32.partialorder %v792_v54, 0.0  ;;  %v966_v60 = vmul.f32 0.2, %v792_v54  ;;  %v999_v61 = vsel %vm871_vm12, %v637_v47, %v935_v57  ;;  %v807_v0 = vadd.f32 %v1424_v56, %v1839_v12  ;;  %v641_v1 = vpop.f32.mrb[23].mxu0  ;;  %v801_v2 = vpop.f32.mrb[23].mxu1 }
 0x147   : > { %v1031_v62 = vsel %vm903_vm13, %v797_v48, %v967_v58  ;;  %1064 = vst.msk [vmem:[%s1848_s28 + $0xa8] sm:$0xff] %vm1042_vm1, %v999_v61  ;;  %v998_v3 = vsel %vm870_vm14, %v632_v53, %v934_v59  ;;  %v642_v5 = vadd.f32 %v1839_v12, %v641_v1  ;;  %v802_v6 = vadd.f32 %v1839_v12, %v801_v2  ;;  %v1379_v7 = vpop.f32.mrb[24].mxu0  ;;  %v1427_v8 = vpop.f32.mrb[24].mxu1 }
 0x148   : > { %1096 = vst.msk [vmem:[%s1848_s28 + $0x1a8] sm:$0xff] %vm1042_vm1, %v1031_v62  ;;  %v1030_v4 = vsel %vm902_vm15, %v792_v54, %v966_v60  ;;  %1063 = vst.msk [vmem:[%s1848_s28 + $0xa0] sm:$0xff] %vm1042_vm1, %v998_v3  ;;  %vm873_vm0 = vcmp.ge.f32.partialorder %v647_v63, 0.0  ;;  %v937_v9 = vmul.f32 0.2, %v647_v63  ;;  %vm905_vm2 = vcmp.ge.f32.partialorder %v807_v0, 0.0 }
 0x149   : > { %1095 = vst.msk [vmem:[%s1848_s28 + $0x1a0] sm:$0xff] %vm1042_vm1, %v1030_v4  ;;  %v969_v10 = vmul.f32 0.2, %v807_v0  ;;  %vm872_vm3 = vcmp.ge.f32.partialorder %v642_v5, 0.0  ;;  %v936_v11 = vmul.f32 0.2, %v642_v5  ;;  %v657_v16 = vadd.f32 %v1379_v7, %v1839_v12 }
 0x14a   : > { %vm904_vm4 = vcmp.ge.f32.partialorder %v802_v6, 0.0  ;;  %v968_v13 = vmul.f32 0.2, %v802_v6  ;;  %v1001_v14 = vsel %vm873_vm0, %v647_v63, %v937_v9  ;;  %v817_v17 = vadd.f32 %v1427_v8, %v1839_v12  ;;  %v651_v18 = vpop.f32.mrb[25].mxu0  ;;  %v811_v19 = vpop.f32.mrb[25].mxu1 }
 0x14b   : > { %v1033_v15 = vsel %vm905_vm2, %v807_v0, %v969_v10  ;;  %1066 = vst.msk [vmem:[%s1848_s28 + $0xb8] sm:$0xff] %vm1042_vm1, %v1001_v14  ;;  %v1000_v20 = vsel %vm872_vm3, %v642_v5, %v936_v11  ;;  %v652_v22 = vadd.f32 %v1839_v12, %v651_v18  ;;  %v812_v23 = vadd.f32 %v1839_v12, %v811_v19  ;;  %v1382_v24 = vpop.f32.mrb[26].mxu0  ;;  %v1430_v25 = vpop.f32.mrb[26].mxu1 }
 0x14c   : > { %1098 = vst.msk [vmem:[%s1848_s28 + $0x1b8] sm:$0xff] %vm1042_vm1, %v1033_v15  ;;  %v1032_v21 = vsel %vm904_vm4, %v802_v6, %v968_v13  ;;  %1065 = vst.msk [vmem:[%s1848_s28 + $0xb0] sm:$0xff] %vm1042_vm1, %v1000_v20  ;;  %vm875_vm5 = vcmp.ge.f32.partialorder %v657_v16, 0.0  ;;  %v939_v26 = vmul.f32 0.2, %v657_v16  ;;  %vm907_vm6 = vcmp.ge.f32.partialorder %v817_v17, 0.0 }
 0x14d   : > { %1097 = vst.msk [vmem:[%s1848_s28 + $0x1b0] sm:$0xff] %vm1042_vm1, %v1032_v21  ;;  %v971_v27 = vmul.f32 0.2, %v817_v17  ;;  %vm874_vm7 = vcmp.ge.f32.partialorder %v652_v22, 0.0  ;;  %v938_v28 = vmul.f32 0.2, %v652_v22  ;;  %v667_v32 = vadd.f32 %v1382_v24, %v1839_v12 }
 0x14e   : > { %vm906_vm8 = vcmp.ge.f32.partialorder %v812_v23, 0.0  ;;  %v970_v29 = vmul.f32 0.2, %v812_v23  ;;  %v1003_v30 = vsel %vm875_vm5, %v657_v16, %v939_v26  ;;  %v827_v33 = vadd.f32 %v1430_v25, %v1839_v12  ;;  %v661_v34 = vpop.f32.mrb[27].mxu0  ;;  %v821_v35 = vpop.f32.mrb[27].mxu1 }
 0x14f   : > { %v1035_v31 = vsel %vm907_vm6, %v817_v17, %v971_v27  ;;  %1068 = vst.msk [vmem:[%s1848_s28 + $0xc8] sm:$0xff] %vm1042_vm1, %v1003_v30  ;;  %v1002_v36 = vsel %vm874_vm7, %v652_v22, %v938_v28  ;;  %v662_v38 = vadd.f32 %v1839_v12, %v661_v34  ;;  %v822_v39 = vadd.f32 %v1839_v12, %v821_v35  ;;  %v1385_v40 = vpop.f32.mrb[28].mxu0  ;;  %v1433_v41 = vpop.f32.mrb[28].mxu1 }
 0x150   : > { %1100 = vst.msk [vmem:[%s1848_s28 + $0x1c8] sm:$0xff] %vm1042_vm1, %v1035_v31  ;;  %v1034_v37 = vsel %vm906_vm8, %v812_v23, %v970_v29  ;;  %1067 = vst.msk [vmem:[%s1848_s28 + $0xc0] sm:$0xff] %vm1042_vm1, %v1002_v36  ;;  %vm877_vm9 = vcmp.ge.f32.partialorder %v667_v32, 0.0  ;;  %v941_v42 = vmul.f32 0.2, %v667_v32  ;;  %vm909_vm10 = vcmp.ge.f32.partialorder %v827_v33, 0.0 }
 0x151   : > { %1099 = vst.msk [vmem:[%s1848_s28 + $0x1c0] sm:$0xff] %vm1042_vm1, %v1034_v37  ;;  %v973_v43 = vmul.f32 0.2, %v827_v33  ;;  %vm876_vm11 = vcmp.ge.f32.partialorder %v662_v38, 0.0  ;;  %v940_v44 = vmul.f32 0.2, %v662_v38  ;;  %v677_v48 = vadd.f32 %v1385_v40, %v1839_v12 }
 0x152   : > { %vm908_vm12 = vcmp.ge.f32.partialorder %v822_v39, 0.0  ;;  %v972_v45 = vmul.f32 0.2, %v822_v39  ;;  %v1005_v46 = vsel %vm877_vm9, %v667_v32, %v941_v42  ;;  %v837_v49 = vadd.f32 %v1433_v41, %v1839_v12  ;;  %v671_v50 = vpop.f32.mrb[29].mxu0  ;;  %v831_v51 = vpop.f32.mrb[29].mxu1 }
 0x153   : > { %v1037_v47 = vsel %vm909_vm10, %v827_v33, %v973_v43  ;;  %1070 = vst.msk [vmem:[%s1848_s28 + $0xd8] sm:$0xff] %vm1042_vm1, %v1005_v46  ;;  %v1004_v52 = vsel %vm876_vm11, %v662_v38, %v940_v44  ;;  %v672_v54 = vadd.f32 %v1839_v12, %v671_v50  ;;  %v832_v55 = vadd.f32 %v1839_v12, %v831_v51  ;;  %v1388_v56 = vpop.f32.mrb[30].mxu0  ;;  %v1436_v57 = vpop.f32.mrb[30].mxu1 }
 0x154   : > { %1102 = vst.msk [vmem:[%s1848_s28 + $0x1d8] sm:$0xff] %vm1042_vm1, %v1037_v47  ;;  %v1036_v53 = vsel %vm908_vm12, %v822_v39, %v972_v45  ;;  %1069 = vst.msk [vmem:[%s1848_s28 + $0xd0] sm:$0xff] %vm1042_vm1, %v1004_v52  ;;  %vm879_vm13 = vcmp.ge.f32.partialorder %v677_v48, 0.0  ;;  %v943_v58 = vmul.f32 0.2, %v677_v48  ;;  %vm911_vm14 = vcmp.ge.f32.partialorder %v837_v49, 0.0 }
 0x155   : > { %1101 = vst.msk [vmem:[%s1848_s28 + $0x1d0] sm:$0xff] %vm1042_vm1, %v1036_v53  ;;  %v975_v59 = vmul.f32 0.2, %v837_v49  ;;  %vm878_vm15 = vcmp.ge.f32.partialorder %v672_v54, 0.0  ;;  %v942_v60 = vmul.f32 0.2, %v672_v54  ;;  %v687_v0 = vadd.f32 %v1388_v56, %v1839_v12 }
 0x156   : > { %vm910_vm0 = vcmp.ge.f32.partialorder %v832_v55, 0.0  ;;  %v974_v61 = vmul.f32 0.2, %v832_v55  ;;  %v1007_v62 = vsel %vm879_vm13, %v677_v48, %v943_v58  ;;  %v847_v1 = vadd.f32 %v1436_v57, %v1839_v12  ;;  %v681_v2 = vpop.f32.mrb[31].mxu0  ;;  %v841_v3 = vpop.f32.mrb[31].mxu1 }
 0x157   : > { %v1039_v63 = vsel %vm911_vm14, %v837_v49, %v975_v59  ;;  %1072 = vst.msk [vmem:[%s1848_s28 + $0xe8] sm:$0xff] %vm1042_vm1, %v1007_v62  ;;  %v1006_v4 = vsel %vm878_vm15, %v672_v54, %v942_v60  ;;  %v682_v6 = vadd.f32 %v1839_v12, %v681_v2  ;;  %v842_v7 = vadd.f32 %v1839_v12, %v841_v3 }
 0x158   : > { %1104 = vst.msk [vmem:[%s1848_s28 + $0x1e8] sm:$0xff] %vm1042_vm1, %v1039_v63  ;;  %v1038_v5 = vsel %vm910_vm0, %v832_v55, %v974_v61  ;;  %1071 = vst.msk [vmem:[%s1848_s28 + $0xe0] sm:$0xff] %vm1042_vm1, %v1006_v4  ;;  %vm881_vm2 = vcmp.ge.f32.partialorder %v687_v0, 0.0  ;;  %v945_v8 = vmul.f32 0.2, %v687_v0  ;;  %vm913_vm3 = vcmp.ge.f32.partialorder %v847_v1, 0.0 }
 0x159   : > { %1103 = vst.msk [vmem:[%s1848_s28 + $0x1e0] sm:$0xff] %vm1042_vm1, %v1038_v5  ;;  %v977_v9 = vmul.f32 0.2, %v847_v1  ;;  %vm880_vm4 = vcmp.ge.f32.partialorder %v682_v6, 0.0  ;;  %v944_v10 = vmul.f32 0.2, %v682_v6 }
 0x15a   : > { %vm912_vm5 = vcmp.ge.f32.partialorder %v842_v7, 0.0  ;;  %v976_v11 = vmul.f32 0.2, %v842_v7  ;;  %v1009_v13 = vsel %vm881_vm2, %v687_v0, %v945_v8 }
 0x15b   : > { %v1041_v14 = vsel %vm913_vm3, %v847_v1, %v977_v9  ;;  %1074 = vst.msk [vmem:[%s1848_s28 + $0xf8] sm:$0xff] %vm1042_vm1, %v1009_v13  ;;  %v1008_v12 = vsel %vm880_vm4, %v682_v6, %v944_v10 }
 0x15c   : > { %1106 = vst.msk [vmem:[%s1848_s28 + $0x1f8] sm:$0xff] %vm1042_vm1, %v1041_v14  ;;  %v1040_v15 = vsel %vm912_vm5, %v842_v7, %v976_v11  ;;  %1073 = vst.msk [vmem:[%s1848_s28 + $0xf0] sm:$0xff] %vm1042_vm1, %v1008_v12 }
 0x15d   : > { %1105 = vst.msk [vmem:[%s1848_s28 + $0x1f0] sm:$0xff] %vm1042_vm1, %v1040_v15 }
 0x15e PF: > { %p13_p8 = scmp.ge.s32.totalorder %s1611_s17, 4   ;;  %s2058_s12 = smov %s1558_s13 }
 0x15f   : > { %s2059_s13 = smov %s1562_s14  ;;  %s2060_s14 = smov %s1621_s20 }
 0x160   : > { %s2061_s15 = smov %s1611_s17  ;;  %15 = sbr.rel (!%p13_p8) target bundleno = 3 (0x3), region = 72 }
 0x167   :  { %1129 = vsyncpa [#allocation3], 1 }
 0x168   :  { %1131 = vsyncpa [#allocation3 + $0x1], 1 }

// kernel: discriminator3d_forward.3
= control target key start
LH: loop header
LB: loop body
LE: loop exit
PB: predicated region body
PF: predicated region fallthrough
CT: control target
= control target key end

     0   :  { %vm1710_vm0 = vcmask 523264   ;;  %vm3020_vm1 = vmmov 0   ;;  %s5007_s1 = inlined_call_operand.vmem [shape: f32[2048,64], index: 1, kind: input, shape index: {}]   ;;  %s5008_s0 = inlined_call_operand.vmem [shape: f32[128,2048], index: 0, kind: input, shape index: {}]   ;;  %s5009_s2 = inlined_call_operand.vmem [shape: f32[1,64], index: 2, kind: input, shape index: {}]   ;;  %s5010_s3 = inlined_call_operand.vmem [shape: f32[1,64], index: 3, kind: input, shape index: {}]   ;;  %s5011_s4 = inlined_call_operand.vmem [shape: f32[1,64], index: 4, kind: input, shape index: {}]   ;;  %s5012_s5 = inlined_call_operand.vmem [shape: f32[128,64], index: 5, kind: input, shape index: {}]   ;;  %s5013_s6 = inlined_call_operand.vmem [shape: f32[2,128], index: 6, kind: input, shape index: {}]   ;;  %s5014_s7 = inlined_call_operand.<no memory space> [shape: f32[1,1], index: 7, kind: input, shape index: {}]   ;;  %s5015_s8 = inlined_call_operand.vmem [shape: f32[2,1], index: 8, kind: output, shape index: {}]  }
   0x1   :  { %v303_v0 = vld [vmem:[%s5007_s1 + $0x80] sm:$0xff]  ;;  %v304_v1 = vld [vmem:[%s5007_s1 + $0x88] sm:$0xff]  ;;  %v305_v11 = vld [vmem:[%s5007_s1 + $0x90] sm:$0xff] }
   0x2   :  { %v287_v2 = vld [vmem:[%s5007_s1] sm:$0xff]  ;;  %v2734_v3 = vpack.c.bf16 %v304_v1, %v303_v0  ;;  %v288_v4 = vld [vmem:[%s5007_s1 + $0x8] sm:$0xff]  ;;  %v306_v13 = vld [vmem:[%s5007_s1 + $0x98] sm:$0xff] }
   0x3   :  { %v335_v5 = vld [vmem:[%s5007_s1 + $0x180] sm:$0xff]  ;;  %v336_v6 = vld [vmem:[%s5007_s1 + $0x188] sm:$0xff]  ;;  %v2736_v7 = vpack.c.bf16 %v288_v4, %v287_v2  ;;  %v289_v14 = vld [vmem:[%s5007_s1 + $0x10] sm:$0xff]  ;;  %v2738_v16 = vpack.c.bf16 %v306_v13, %v305_v11 }
   0x4   :  { %v2766_v8 = vpack.c.bf16 %v336_v6, %v335_v5  ;;  %v319_v9 = vld [vmem:[%s5007_s1 + $0x100] sm:$0xff]  ;;  %v320_v10 = vld [vmem:[%s5007_s1 + $0x108] sm:$0xff]  ;;  %2735 = vmatprep.subr.bf16.mxu0 %v2734_v3  ;;  %v290_v15 = vld [vmem:[%s5007_s1 + $0x18] sm:$0xff] }
   0x5   :  { %v2768_v12 = vpack.c.bf16 %v320_v10, %v319_v9  ;;  %2737 = vmatpush3.bf16.msra.mxu0 %v2736_v7  ;;  %v2740_v17 = vpack.c.bf16 %v290_v15, %v289_v14  ;;  %v337_v18 = vld [vmem:[%s5007_s1 + $0x190] sm:$0xff]  ;;  %v338_v19 = vld [vmem:[%s5007_s1 + $0x198] sm:$0xff]  ;;  %v307_v23 = vld [vmem:[%s5007_s1 + $0xa0] sm:$0xff] }
   0x6   :  { %2767 = vmatprep.subr.bf16.mxu1 %v2766_v8  ;;  %v321_v20 = vld [vmem:[%s5007_s1 + $0x110] sm:$0xff]  ;;  %v2770_v21 = vpack.c.bf16 %v338_v19, %v337_v18  ;;  %v322_v22 = vld [vmem:[%s5007_s1 + $0x118] sm:$0xff]  ;;  %v308_v24 = vld [vmem:[%s5007_s1 + $0xa8] sm:$0xff]  ;;  %2739 = vmatprep.subr.bf16.mxu0 %v2738_v16 }
   0x7   :  { %2769 = vmatpush3.bf16.msra.mxu1 %v2768_v12  ;;  %v2772_v25 = vpack.c.bf16 %v322_v22, %v321_v20  ;;  %v2742_v26 = vpack.c.bf16 %v308_v24, %v307_v23  ;;  %v291_v27 = vld [vmem:[%s5007_s1 + $0x20] sm:$0xff]  ;;  %v292_v28 = vld [vmem:[%s5007_s1 + $0x28] sm:$0xff]  ;;  %v309_v35 = vld [vmem:[%s5007_s1 + $0xb0] sm:$0xff] }
   0x8   :  { %v339_v29 = vld [vmem:[%s5007_s1 + $0x1a0] sm:$0xff]  ;;  %2771 = vmatprep.subr.bf16.mxu1 %v2770_v21  ;;  %v340_v30 = vld [vmem:[%s5007_s1 + $0x1a8] sm:$0xff]  ;;  %v2744_v33 = vpack.c.bf16 %v292_v28, %v291_v27  ;;  %v310_v36 = vld [vmem:[%s5007_s1 + $0xb8] sm:$0xff] }
   0x9   :  { %v323_v31 = vld [vmem:[%s5007_s1 + $0x120] sm:$0xff]  ;;  %v324_v32 = vld [vmem:[%s5007_s1 + $0x128] sm:$0xff]  ;;  %2741 = vmatpush3.bf16.msra.mxu0 %v2740_v17  ;;  %v2774_v34 = vpack.c.bf16 %v340_v30, %v339_v29  ;;  %v293_v37 = vld [vmem:[%s5007_s1 + $0x30] sm:$0xff]  ;;  %v2746_v39 = vpack.c.bf16 %v310_v36, %v309_v35 }
   0xa   :  { %2743 = vmatprep.subr.bf16.mxu0 %v2742_v26  ;;  %v2776_v38 = vpack.c.bf16 %v324_v32, %v323_v31  ;;  %v294_v40 = vld [vmem:[%s5007_s1 + $0x38] sm:$0xff]  ;;  %v341_v41 = vld [vmem:[%s5007_s1 + $0x1b0] sm:$0xff]  ;;  %v311_v46 = vld [vmem:[%s5007_s1 + $0xc0] sm:$0xff] }
   0xb   :  { %2773 = vmatpush3.bf16.msra.mxu1 %v2772_v25  ;;  %v342_v42 = vld [vmem:[%s5007_s1 + $0x1b8] sm:$0xff]  ;;  %v325_v44 = vld [vmem:[%s5007_s1 + $0x130] sm:$0xff]  ;;  %v312_v47 = vld [vmem:[%s5007_s1 + $0xc8] sm:$0xff]  ;;  %v2748_v48 = vpack.c.bf16 %v294_v40, %v293_v37 }
   0xc   :  { %2775 = vmatprep.subr.bf16.mxu1 %v2774_v34  ;;  %v2778_v43 = vpack.c.bf16 %v342_v42, %v341_v41  ;;  %v326_v45 = vld [vmem:[%s5007_s1 + $0x138] sm:$0xff]  ;;  %v343_v49 = vld [vmem:[%s5007_s1 + $0x1c0] sm:$0xff]  ;;  %v344_v50 = vld [vmem:[%s5007_s1 + $0x1c8] sm:$0xff]  ;;  %v2750_v52 = vpack.c.bf16 %v312_v47, %v311_v46 }
   0xd   :  { %2745 = vmatpush3.bf16.msra.mxu0 %v2744_v33  ;;  %v2780_v51 = vpack.c.bf16 %v326_v45, %v325_v44  ;;  %v295_v53 = vld [vmem:[%s5007_s1 + $0x40] sm:$0xff]  ;;  %v296_v54 = vld [vmem:[%s5007_s1 + $0x48] sm:$0xff]  ;;  %v2782_v56 = vpack.c.bf16 %v344_v50, %v343_v49  ;;  %v313_v58 = vld [vmem:[%s5007_s1 + $0xd0] sm:$0xff] }
   0xe   :  { %2747 = vmatprep.subr.bf16.mxu0 %v2746_v39  ;;  %v327_v55 = vld [vmem:[%s5007_s1 + $0x140] sm:$0xff]  ;;  %v328_v57 = vld [vmem:[%s5007_s1 + $0x148] sm:$0xff]  ;;  %v314_v59 = vld [vmem:[%s5007_s1 + $0xd8] sm:$0xff]  ;;  %v2752_v62 = vpack.c.bf16 %v296_v54, %v295_v53 }
   0xf   :  { %2777 = vmatpush3.bf16.msra.mxu1 %v2776_v38  ;;  %v345_v60 = vld [vmem:[%s5007_s1 + $0x1d0] sm:$0xff]  ;;  %v346_v61 = vld [vmem:[%s5007_s1 + $0x1d8] sm:$0xff]  ;;  %v2784_v63 = vpack.c.bf16 %v328_v57, %v327_v55  ;;  %v2754_v0 = vpack.c.bf16 %v314_v59, %v313_v58  ;;  %v315_v6 = vld [vmem:[%s5007_s1 + $0xe0] sm:$0xff] }
  0x10   :  { %2779 = vmatprep.subr.bf16.mxu1 %v2778_v43  ;;  %v297_v1 = vld [vmem:[%s5007_s1 + $0x50] sm:$0xff]  ;;  %v298_v2 = vld [vmem:[%s5007_s1 + $0x58] sm:$0xff]  ;;  %v2786_v4 = vpack.c.bf16 %v346_v61, %v345_v60  ;;  %v316_v7 = vld [vmem:[%s5007_s1 + $0xe8] sm:$0xff] }
  0x11   :  { %2749 = vmatpush3.bf16.msra.mxu0 %v2748_v48  ;;  %v329_v3 = vld [vmem:[%s5007_s1 + $0x150] sm:$0xff]  ;;  %v330_v5 = vld [vmem:[%s5007_s1 + $0x158] sm:$0xff]  ;;  %v347_v8 = vld [vmem:[%s5007_s1 + $0x1e0] sm:$0xff]  ;;  %v2756_v10 = vpack.c.bf16 %v298_v2, %v297_v1  ;;  %v2758_v14 = vpack.c.bf16 %v316_v7, %v315_v6 }
  0x12   :  { %2751 = vmatprep.subr.bf16.mxu0 %v2750_v52  ;;  %v348_v9 = vld [vmem:[%s5007_s1 + $0x1e8] sm:$0xff]  ;;  %v299_v11 = vld [vmem:[%s5007_s1 + $0x60] sm:$0xff]  ;;  %v2788_v13 = vpack.c.bf16 %v330_v5, %v329_v3  ;;  %v317_v19 = vld [vmem:[%s5007_s1 + $0xf0] sm:$0xff] }
  0x13   :  { %2781 = vmatpush3.bf16.msra.mxu1 %v2780_v51  ;;  %v300_v12 = vld [vmem:[%s5007_s1 + $0x68] sm:$0xff]  ;;  %v331_v15 = vld [vmem:[%s5007_s1 + $0x160] sm:$0xff]  ;;  %v2790_v18 = vpack.c.bf16 %v348_v9, %v347_v8  ;;  %v318_v20 = vld [vmem:[%s5007_s1 + $0xf8] sm:$0xff] }
  0x14   :  { %2783 = vmatprep.subr.bf16.mxu1 %v2782_v56  ;;  %v332_v16 = vld [vmem:[%s5007_s1 + $0x168] sm:$0xff]  ;;  %v34_v21 = vld [vmem:[%s5008_s0 + $0x18] sm:$0xff]  ;;  %v349_v22 = vld [vmem:[%s5007_s1 + $0x1f0] sm:$0xff]  ;;  %v2760_v24 = vpack.c.bf16 %v300_v12, %v299_v11  ;;  %v2762_v26 = vpack.c.bf16 %v318_v20, %v317_v19 }
  0x15   :  { %2753 = vmatpush3.bf16.msra.mxu0 %v2752_v62  ;;  %v32_v17 = vld [vmem:[%s5008_s0 + $0x8] sm:$0xff]  ;;  %v350_v23 = vld [vmem:[%s5007_s1 + $0x1f8] sm:$0xff]  ;;  %759 = vmatprep.mubr.f32.mxu1 %v34_v21  ;;  %v2792_v25 = vpack.c.bf16 %v332_v16, %v331_v15  ;;  %v301_v27 = vld [vmem:[%s5007_s1 + $0x70] sm:$0xff] }
  0x16   :  { %2755 = vmatprep.subr.bf16.mxu0 %v2754_v0  ;;  %614 = vmatprep.mubr.f32.mxu0 %v32_v17  ;;  %v302_v28 = vld [vmem:[%s5007_s1 + $0x78] sm:$0xff]  ;;  %v2794_v29 = vpack.c.bf16 %v350_v23, %v349_v22  ;;  %v333_v30 = vld [vmem:[%s5007_s1 + $0x170] sm:$0xff]  ;;  %v31_v34 = vld [vmem:[%s5008_s0] sm:$0xff] }
  0x17   :  { %2785 = vmatpush3.bf16.msra.mxu1 %v2784_v63  ;;  %v334_v31 = vld [vmem:[%s5007_s1 + $0x178] sm:$0xff]  ;;  %v2764_v32 = vpack.c.bf16 %v302_v28, %v301_v27  ;;  %v33_v35 = vld [vmem:[%s5008_s0 + $0x10] sm:$0xff]  ;;  %v48_v36 = vld [vmem:[%s5008_s0 + $0x88] sm:$0xff] }
  0x18   :  { %2787 = vmatprep.subr.bf16.mxu1 %v2786_v4  ;;  %v2796_v33 = vpack.c.bf16 %v334_v31, %v333_v30  ;;  %v50_v37 = vld [vmem:[%s5008_s0 + $0x98] sm:$0xff]  ;;  %v367_v38 = vld [vmem:[%s5007_s1 + $0x280] sm:$0xff]  ;;  %v368_v39 = vld [vmem:[%s5007_s1 + $0x288] sm:$0xff] }
  0x19   :  { %2757 = vmatpush3.bf16.msra.mxu0 %v2756_v10  ;;  %v2798_v40 = vpack.c.bf16 %v368_v39, %v367_v38  ;;  %v351_v41 = vld [vmem:[%s5007_s1 + $0x200] sm:$0xff]  ;;  %v352_v42 = vld [vmem:[%s5007_s1 + $0x208] sm:$0xff]  ;;  %v49_v49 = vld [vmem:[%s5008_s0 + $0x90] sm:$0xff] }
  0x1a   :  { %2759 = vmatprep.subr.bf16.mxu0 %v2758_v14  ;;  %v399_v43 = vld [vmem:[%s5007_s1 + $0x380] sm:$0xff]  ;;  %v2800_v44 = vpack.c.bf16 %v352_v42, %v351_v41  ;;  %v400_v45 = vld [vmem:[%s5007_s1 + $0x388] sm:$0xff]  ;;  %v66_v53 = vld [vmem:[%s5008_s0 + $0x118] sm:$0xff] }
  0x1b   :  { %2789 = vmatpush3.bf16.msra.mxu1 %v2788_v13  ;;  %v383_v46 = vld [vmem:[%s5007_s1 + $0x300] sm:$0xff]  ;;  %v384_v47 = vld [vmem:[%s5007_s1 + $0x308] sm:$0xff]  ;;  %v2830_v51 = vpack.c.bf16 %v400_v45, %v399_v43  ;;  %v369_v54 = vld [vmem:[%s5007_s1 + $0x290] sm:$0xff] }
  0x1c   :  { %2791 = vmatprep.subr.bf16.mxu1 %v2790_v18  ;;  %v47_v48 = vld [vmem:[%s5008_s0 + $0x80] sm:$0xff]  ;;  %v64_v50 = vld [vmem:[%s5008_s0 + $0x108] sm:$0xff]  ;;  %v2832_v52 = vpack.c.bf16 %v384_v47, %v383_v46  ;;  %v370_v55 = vld [vmem:[%s5007_s1 + $0x298] sm:$0xff] }
  0x1d   :  { %2761 = vmatpush3.bf16.msra.mxu0 %v2760_v24  ;;  %v2802_v56 = vpack.c.bf16 %v370_v55, %v369_v54  ;;  %v353_v57 = vld [vmem:[%s5007_s1 + $0x210] sm:$0xff]  ;;  %v354_v58 = vld [vmem:[%s5007_s1 + $0x218] sm:$0xff]  ;;  %v63_v0 = vld [vmem:[%s5008_s0 + $0x100] sm:$0xff] }
  0x1e   :  { %2763 = vmatprep.subr.bf16.mxu0 %v2762_v26  ;;  %v401_v59 = vld [vmem:[%s5007_s1 + $0x390] sm:$0xff]  ;;  %v2804_v60 = vpack.c.bf16 %v354_v58, %v353_v57  ;;  %v402_v61 = vld [vmem:[%s5007_s1 + $0x398] sm:$0xff]  ;;  %v80_v2 = vld [vmem:[%s5008_s0 + $0x188] sm:$0xff] }
  0x1f   :  { %2793 = vmatpush3.bf16.msra.mxu1 %v2792_v25  ;;  %v385_v62 = vld [vmem:[%s5007_s1 + $0x310] sm:$0xff]  ;;  %v386_v63 = vld [vmem:[%s5007_s1 + $0x318] sm:$0xff]  ;;  %v2834_v3 = vpack.c.bf16 %v402_v61, %v401_v59  ;;  %v371_v6 = vld [vmem:[%s5007_s1 + $0x2a0] sm:$0xff] }
  0x20   :  { %2795 = vmatprep.subr.bf16.mxu1 %v2794_v29  ;;  %v65_v1 = vld [vmem:[%s5008_s0 + $0x110] sm:$0xff]  ;;  %v2836_v4 = vpack.c.bf16 %v386_v63, %v385_v62  ;;  %v82_v5 = vld [vmem:[%s5008_s0 + $0x198] sm:$0xff]  ;;  %v372_v7 = vld [vmem:[%s5007_s1 + $0x2a8] sm:$0xff] }
  0x21   :  { %2765 = vmatpush3.bf16.msra.mxu0 %v2764_v32  ;;  %v2806_v8 = vpack.c.bf16 %v372_v7, %v371_v6  ;;  %v355_v9 = vld [vmem:[%s5007_s1 + $0x220] sm:$0xff]  ;;  %v356_v10 = vld [vmem:[%s5007_s1 + $0x228] sm:$0xff]  ;;  %v81_v17 = vld [vmem:[%s5008_s0 + $0x190] sm:$0xff] }
  0x22   :  { %2799 = vmatprep.subr.bf16.mxu0 %v2798_v40  ;;  %v403_v11 = vld [vmem:[%s5007_s1 + $0x3a0] sm:$0xff]  ;;  %v2808_v12 = vpack.c.bf16 %v356_v10, %v355_v9  ;;  %v404_v13 = vld [vmem:[%s5007_s1 + $0x3a8] sm:$0xff]  ;;  %v98_v21 = vld [vmem:[%s5008_s0 + $0x218] sm:$0xff] }
  0x23   :  { %2797 = vmatpush3.bf16.msra.mxu1 %v2796_v33  ;;  %v387_v14 = vld [vmem:[%s5007_s1 + $0x320] sm:$0xff]  ;;  %v388_v15 = vld [vmem:[%s5007_s1 + $0x328] sm:$0xff]  ;;  %v2838_v19 = vpack.c.bf16 %v404_v13, %v403_v11  ;;  %v373_v22 = vld [vmem:[%s5007_s1 + $0x2b0] sm:$0xff] }
  0x24   :  { %615 = vmatmul.mubr.f32.vlgmr.msra.gmra.mrb[0].mxu0 %v31_v34  ;;  %2831 = vmatprep.subr.bf16.mxu1 %v2830_v51  ;;  %v79_v16 = vld [vmem:[%s5008_s0 + $0x180] sm:$0xff]  ;;  %v96_v18 = vld [vmem:[%s5008_s0 + $0x208] sm:$0xff]  ;;  %v2840_v20 = vpack.c.bf16 %v388_v15, %v387_v14  ;;  %v374_v23 = vld [vmem:[%s5007_s1 + $0x2b8] sm:$0xff] }
  0x25   :  { %619 = vmatprep.mubr.f32.mxu0 %v48_v36  ;;  %2801 = vmatpush3.bf16.msra.mxu0 %v2800_v44  ;;  %v2810_v24 = vpack.c.bf16 %v374_v23, %v373_v22  ;;  %v357_v25 = vld [vmem:[%s5007_s1 + $0x230] sm:$0xff]  ;;  %v358_v26 = vld [vmem:[%s5007_s1 + $0x238] sm:$0xff]  ;;  %v95_v32 = vld [vmem:[%s5008_s0 + $0x200] sm:$0xff] }
  0x26   :  { %760 = vmatmul.mubr.f32.vlgmr.msra.gmra.mrb[0].mxu1 %v33_v35  ;;  %2803 = vmatprep.subr.bf16.mxu0 %v2802_v56  ;;  %v405_v27 = vld [vmem:[%s5007_s1 + $0x3b0] sm:$0xff]  ;;  %v2812_v28 = vpack.c.bf16 %v358_v26, %v357_v25  ;;  %v406_v29 = vld [vmem:[%s5007_s1 + $0x3b8] sm:$0xff]  ;;  %v112_v34 = vld [vmem:[%s5008_s0 + $0x288] sm:$0xff] }
  0x27   :  { %764 = vmatprep.mubr.f32.mxu1 %v50_v37  ;;  %2833 = vmatpush3.bf16.msra.mxu1 %v2832_v52  ;;  %v389_v30 = vld [vmem:[%s5007_s1 + $0x330] sm:$0xff]  ;;  %v390_v31 = vld [vmem:[%s5007_s1 + $0x338] sm:$0xff]  ;;  %v2842_v35 = vpack.c.bf16 %v406_v29, %v405_v27  ;;  %v375_v38 = vld [vmem:[%s5007_s1 + $0x2c0] sm:$0xff] }
  0x28   :  { %620 = vmatmul.mubr.f32.gmra.mrb[2].mxu0 %v47_v48  ;;  %2835 = vmatprep.subr.bf16.mxu1 %v2834_v3  ;;  %v97_v33 = vld [vmem:[%s5008_s0 + $0x210] sm:$0xff]  ;;  %v2844_v36 = vpack.c.bf16 %v390_v31, %v389_v30  ;;  %v114_v37 = vld [vmem:[%s5008_s0 + $0x298] sm:$0xff]  ;;  %v376_v39 = vld [vmem:[%s5007_s1 + $0x2c8] sm:$0xff] }
  0x29   :  { %624 = vmatprep.mubr.f32.mxu0 %v64_v50  ;;  %2805 = vmatpush3.bf16.msra.mxu0 %v2804_v60  ;;  %v2814_v40 = vpack.c.bf16 %v376_v39, %v375_v38  ;;  %v359_v41 = vld [vmem:[%s5007_s1 + $0x240] sm:$0xff]  ;;  %v360_v42 = vld [vmem:[%s5007_s1 + $0x248] sm:$0xff]  ;;  %v377_v54 = vld [vmem:[%s5007_s1 + $0x2d0] sm:$0xff] }
  0x2a   :  { %765 = vmatmul.mubr.f32.gmra.mrb[2].mxu1 %v49_v49  ;;  %2807 = vmatprep.subr.bf16.mxu0 %v2806_v8  ;;  %v407_v43 = vld [vmem:[%s5007_s1 + $0x3c0] sm:$0xff]  ;;  %v2816_v44 = vpack.c.bf16 %v360_v42, %v359_v41  ;;  %v408_v45 = vld [vmem:[%s5007_s1 + $0x3c8] sm:$0xff]  ;;  %v113_v49 = vld [vmem:[%s5008_s0 + $0x290] sm:$0xff] }
  0x2b   :  { %769 = vmatprep.mubr.f32.mxu1 %v66_v53  ;;  %2837 = vmatpush3.bf16.msra.mxu1 %v2836_v4  ;;  %v391_v46 = vld [vmem:[%s5007_s1 + $0x340] sm:$0xff]  ;;  %v392_v47 = vld [vmem:[%s5007_s1 + $0x348] sm:$0xff]  ;;  %v2846_v51 = vpack.c.bf16 %v408_v45, %v407_v43  ;;  %v130_v53 = vld [vmem:[%s5008_s0 + $0x318] sm:$0xff] }
  0x2c   :  { %625 = vmatmul.mubr.f32.gmra.mrb[4].mxu0 %v63_v0  ;;  %2839 = vmatprep.subr.bf16.mxu1 %v2838_v19  ;;  %v111_v48 = vld [vmem:[%s5008_s0 + $0x280] sm:$0xff]  ;;  %v128_v50 = vld [vmem:[%s5008_s0 + $0x308] sm:$0xff]  ;;  %v2848_v52 = vpack.c.bf16 %v392_v47, %v391_v46  ;;  %v378_v55 = vld [vmem:[%s5007_s1 + $0x2d8] sm:$0xff] }
  0x2d   :  { %629 = vmatprep.mubr.f32.mxu0 %v80_v2  ;;  %2809 = vmatpush3.bf16.msra.mxu0 %v2808_v12  ;;  %v2818_v56 = vpack.c.bf16 %v378_v55, %v377_v54  ;;  %v361_v57 = vld [vmem:[%s5007_s1 + $0x250] sm:$0xff]  ;;  %v362_v58 = vld [vmem:[%s5007_s1 + $0x258] sm:$0xff]  ;;  %v127_v0 = vld [vmem:[%s5008_s0 + $0x300] sm:$0xff] }
  0x2e   :  { %770 = vmatmul.mubr.f32.gmra.mrb[4].mxu1 %v65_v1  ;;  %2811 = vmatprep.subr.bf16.mxu0 %v2810_v24  ;;  %v409_v59 = vld [vmem:[%s5007_s1 + $0x3d0] sm:$0xff]  ;;  %v2820_v60 = vpack.c.bf16 %v362_v58, %v361_v57  ;;  %v410_v61 = vld [vmem:[%s5007_s1 + $0x3d8] sm:$0xff]  ;;  %v144_v2 = vld [vmem:[%s5008_s0 + $0x388] sm:$0xff] }
  0x2f   :  { %774 = vmatprep.mubr.f32.mxu1 %v82_v5  ;;  %2841 = vmatpush3.bf16.msra.mxu1 %v2840_v20  ;;  %v393_v62 = vld [vmem:[%s5007_s1 + $0x350] sm:$0xff]  ;;  %v394_v63 = vld [vmem:[%s5007_s1 + $0x358] sm:$0xff]  ;;  %v2850_v3 = vpack.c.bf16 %v410_v61, %v409_v59  ;;  %v379_v6 = vld [vmem:[%s5007_s1 + $0x2e0] sm:$0xff] }
  0x30   :  { %630 = vmatmul.mubr.f32.gmra.mrb[6].mxu0 %v79_v16  ;;  %2843 = vmatprep.subr.bf16.mxu1 %v2842_v35  ;;  %v129_v1 = vld [vmem:[%s5008_s0 + $0x310] sm:$0xff]  ;;  %v2852_v4 = vpack.c.bf16 %v394_v63, %v393_v62  ;;  %v146_v5 = vld [vmem:[%s5008_s0 + $0x398] sm:$0xff]  ;;  %v380_v7 = vld [vmem:[%s5007_s1 + $0x2e8] sm:$0xff] }
  0x31   :  { %634 = vmatprep.mubr.f32.mxu0 %v96_v18  ;;  %2813 = vmatpush3.bf16.msra.mxu0 %v2812_v28  ;;  %v2822_v8 = vpack.c.bf16 %v380_v7, %v379_v6  ;;  %v363_v9 = vld [vmem:[%s5007_s1 + $0x260] sm:$0xff]  ;;  %v364_v10 = vld [vmem:[%s5007_s1 + $0x268] sm:$0xff]  ;;  %v381_v22 = vld [vmem:[%s5007_s1 + $0x2f0] sm:$0xff] }
  0x32   :  { %775 = vmatmul.mubr.f32.gmra.mrb[6].mxu1 %v81_v17  ;;  %2815 = vmatprep.subr.bf16.mxu0 %v2814_v40  ;;  %v411_v11 = vld [vmem:[%s5007_s1 + $0x3e0] sm:$0xff]  ;;  %v2824_v12 = vpack.c.bf16 %v364_v10, %v363_v9  ;;  %v412_v13 = vld [vmem:[%s5007_s1 + $0x3e8] sm:$0xff]  ;;  %v145_v17 = vld [vmem:[%s5008_s0 + $0x390] sm:$0xff] }
  0x33   :  { %779 = vmatprep.mubr.f32.mxu1 %v98_v21  ;;  %2845 = vmatpush3.bf16.msra.mxu1 %v2844_v36  ;;  %v395_v14 = vld [vmem:[%s5007_s1 + $0x360] sm:$0xff]  ;;  %v396_v15 = vld [vmem:[%s5007_s1 + $0x368] sm:$0xff]  ;;  %v2854_v19 = vpack.c.bf16 %v412_v13, %v411_v11  ;;  %v162_v21 = vld [vmem:[%s5008_s0 + $0x418] sm:$0xff] }
  0x34   :  { %635 = vmatmul.mubr.f32.gmra.mrb[8].mxu0 %v95_v32  ;;  %2847 = vmatprep.subr.bf16.mxu1 %v2846_v51  ;;  %v143_v16 = vld [vmem:[%s5008_s0 + $0x380] sm:$0xff]  ;;  %v160_v18 = vld [vmem:[%s5008_s0 + $0x408] sm:$0xff]  ;;  %v2856_v20 = vpack.c.bf16 %v396_v15, %v395_v14  ;;  %v382_v23 = vld [vmem:[%s5007_s1 + $0x2f8] sm:$0xff] }
  0x35   :  { %639 = vmatprep.mubr.f32.mxu0 %v112_v34  ;;  %2817 = vmatpush3.bf16.msra.mxu0 %v2816_v44  ;;  %v2826_v24 = vpack.c.bf16 %v382_v23, %v381_v22  ;;  %v365_v25 = vld [vmem:[%s5007_s1 + $0x270] sm:$0xff]  ;;  %v366_v26 = vld [vmem:[%s5007_s1 + $0x278] sm:$0xff]  ;;  %v159_v32 = vld [vmem:[%s5008_s0 + $0x400] sm:$0xff] }
  0x36   :  { %780 = vmatmul.mubr.f32.gmra.mrb[8].mxu1 %v97_v33  ;;  %2819 = vmatprep.subr.bf16.mxu0 %v2818_v56  ;;  %v413_v27 = vld [vmem:[%s5007_s1 + $0x3f0] sm:$0xff]  ;;  %v2828_v28 = vpack.c.bf16 %v366_v26, %v365_v25  ;;  %v414_v29 = vld [vmem:[%s5007_s1 + $0x3f8] sm:$0xff]  ;;  %v176_v36 = vld [vmem:[%s5008_s0 + $0x488] sm:$0xff] }
  0x37   :  { %784 = vmatprep.mubr.f32.mxu1 %v114_v37  ;;  %2849 = vmatpush3.bf16.msra.mxu1 %v2848_v52  ;;  %v397_v30 = vld [vmem:[%s5007_s1 + $0x370] sm:$0xff]  ;;  %v398_v31 = vld [vmem:[%s5007_s1 + $0x378] sm:$0xff]  ;;  %v2858_v33 = vpack.c.bf16 %v414_v29, %v413_v27  ;;  %v175_v38 = vld [vmem:[%s5008_s0 + $0x480] sm:$0xff] }
  0x38   :  { %640 = vmatmul.mubr.f32.gmra.mrb[10].mxu0 %v111_v48  ;;  %2851 = vmatprep.subr.bf16.mxu1 %v2850_v3  ;;  %v2860_v34 = vpack.c.bf16 %v398_v31, %v397_v30  ;;  %v161_v35 = vld [vmem:[%s5008_s0 + $0x410] sm:$0xff]  ;;  %v178_v37 = vld [vmem:[%s5008_s0 + $0x498] sm:$0xff]  ;;  %v192_v40 = vld [vmem:[%s5008_s0 + $0x508] sm:$0xff] }
  0x39   :  { %644 = vmatprep.mubr.f32.mxu0 %v128_v50  ;;  %2821 = vmatpush3.bf16.msra.mxu0 %v2820_v60  ;;  %v177_v39 = vld [vmem:[%s5008_s0 + $0x490] sm:$0xff]  ;;  %v194_v41 = vld [vmem:[%s5008_s0 + $0x518] sm:$0xff]  ;;  %v191_v42 = vld [vmem:[%s5008_s0 + $0x500] sm:$0xff] }
  0x3a   :  { %785 = vmatmul.mubr.f32.gmra.mrb[10].mxu1 %v113_v49  ;;  %2823 = vmatprep.subr.bf16.mxu0 %v2822_v8  ;;  %v193_v43 = vld [vmem:[%s5008_s0 + $0x510] sm:$0xff]  ;;  %v208_v44 = vld [vmem:[%s5008_s0 + $0x588] sm:$0xff]  ;;  %v210_v45 = vld [vmem:[%s5008_s0 + $0x598] sm:$0xff] }
  0x3b   :  { %789 = vmatprep.mubr.f32.mxu1 %v130_v53  ;;  %2853 = vmatpush3.bf16.msra.mxu1 %v2852_v4  ;;  %v431_v46 = vld [vmem:[%s5007_s1 + $0x480] sm:$0xff]  ;;  %v209_v48 = vld [vmem:[%s5008_s0 + $0x590] sm:$0xff]  ;;  %v432_v49 = vld [vmem:[%s5007_s1 + $0x488] sm:$0xff] }
  0x3c   :  { %645 = vmatmul.mubr.f32.gmra.mrb[12].mxu0 %v127_v0  ;;  %2855 = vmatprep.subr.bf16.mxu1 %v2854_v19  ;;  %v207_v47 = vld [vmem:[%s5008_s0 + $0x580] sm:$0xff]  ;;  %v224_v50 = vld [vmem:[%s5008_s0 + $0x608] sm:$0xff]  ;;  %v2862_v51 = vpack.c.bf16 %v432_v49, %v431_v46  ;;  %v226_v54 = vld [vmem:[%s5008_s0 + $0x618] sm:$0xff] }
  0x3d   :  { %649 = vmatprep.mubr.f32.mxu0 %v144_v2  ;;  %2825 = vmatpush3.bf16.msra.mxu0 %v2824_v12  ;;  %v463_v52 = vld [vmem:[%s5007_s1 + $0x580] sm:$0xff]  ;;  %v464_v53 = vld [vmem:[%s5007_s1 + $0x588] sm:$0xff]  ;;  %v225_v57 = vld [vmem:[%s5008_s0 + $0x610] sm:$0xff] }
  0x3e   :  { %790 = vmatmul.mubr.f32.gmra.mrb[12].mxu1 %v129_v1  ;;  %2827 = vmatprep.subr.bf16.mxu0 %v2826_v24  ;;  %v2894_v55 = vpack.c.bf16 %v464_v53, %v463_v52  ;;  %v223_v56 = vld [vmem:[%s5008_s0 + $0x600] sm:$0xff]  ;;  %v240_v58 = vld [vmem:[%s5008_s0 + $0x688] sm:$0xff]  ;;  %v242_v59 = vld [vmem:[%s5008_s0 + $0x698] sm:$0xff] }
  0x3f   :  { %794 = vmatprep.mubr.f32.mxu1 %v146_v5  ;;  %2857 = vmatpush3.bf16.msra.mxu1 %v2856_v20  ;;  %v239_v60 = vld [vmem:[%s5008_s0 + $0x680] sm:$0xff]  ;;  %v241_v61 = vld [vmem:[%s5008_s0 + $0x690] sm:$0xff]  ;;  %v256_v62 = vld [vmem:[%s5008_s0 + $0x708] sm:$0xff] }
  0x40   :  { %650 = vmatmul.mubr.f32.gmra.mrb[14].mxu0 %v143_v16  ;;  %2859 = vmatprep.subr.bf16.mxu1 %v2858_v33  ;;  %v258_v63 = vld [vmem:[%s5008_s0 + $0x718] sm:$0xff]  ;;  %v255_v0 = vld [vmem:[%s5008_s0 + $0x700] sm:$0xff]  ;;  %v257_v1 = vld [vmem:[%s5008_s0 + $0x710] sm:$0xff] }
  0x41   :  { %654 = vmatprep.mubr.f32.mxu0 %v160_v18  ;;  %2829 = vmatpush3.bf16.msra.mxu0 %v2828_v28  ;;  %v272_v2 = vld [vmem:[%s5008_s0 + $0x788] sm:$0xff]  ;;  %v274_v3 = vld [vmem:[%s5008_s0 + $0x798] sm:$0xff]  ;;  %v271_v4 = vld [vmem:[%s5008_s0 + $0x780] sm:$0xff] }
  0x42   :  { %795 = vmatmul.mubr.f32.gmra.mrb[14].mxu1 %v145_v17  ;;  %2863 = vmatprep.subr.bf16.mxu0 %v2862_v51  ;;  %v273_v5 = vld [vmem:[%s5008_s0 + $0x790] sm:$0xff]  ;;  %v36_v6 = vld [vmem:[%s5008_s0 + $0x28] sm:$0xff]  ;;  %v38_v7 = vld [vmem:[%s5008_s0 + $0x38] sm:$0xff] }
  0x43   :  { %799 = vmatprep.mubr.f32.mxu1 %v162_v21  ;;  %2861 = vmatpush3.bf16.msra.mxu1 %v2860_v34  ;;  %v415_v8 = vld [vmem:[%s5007_s1 + $0x400] sm:$0xff]  ;;  %v416_v9 = vld [vmem:[%s5007_s1 + $0x408] sm:$0xff]  ;;  %v433_v12 = vld [vmem:[%s5007_s1 + $0x490] sm:$0xff] }
  0x44   :  { %655 = vmatmul.mubr.f32.gmra.mrb[16].mxu0 %v159_v32  ;;  %2895 = vmatprep.subr.bf16.mxu1 %v2894_v55  ;;  %v447_v10 = vld [vmem:[%s5007_s1 + $0x500] sm:$0xff]  ;;  %v448_v11 = vld [vmem:[%s5007_s1 + $0x508] sm:$0xff]  ;;  %v434_v13 = vld [vmem:[%s5007_s1 + $0x498] sm:$0xff]  ;;  %v2864_v20 = vpack.c.bf16 %v416_v9, %v415_v8 }
  0x45   :  { %659 = vmatprep.mubr.f32.mxu0 %v176_v36  ;;  %v35_v14 = vld [vmem:[%s5008_s0 + $0x20] sm:$0xff]  ;;  %v465_v15 = vld [vmem:[%s5007_s1 + $0x590] sm:$0xff]  ;;  %v466_v16 = vld [vmem:[%s5007_s1 + $0x598] sm:$0xff]  ;;  %v2896_v21 = vpack.c.bf16 %v448_v11, %v447_v10  ;;  %v2866_v22 = vpack.c.bf16 %v434_v13, %v433_v12 }
  0x46   :  { %800 = vmatmul.mubr.f32.gmra.mrb[16].mxu1 %v161_v35  ;;  %v37_v17 = vld [vmem:[%s5008_s0 + $0x30] sm:$0xff]  ;;  %v52_v18 = vld [vmem:[%s5008_s0 + $0xa8] sm:$0xff]  ;;  %v54_v19 = vld [vmem:[%s5008_s0 + $0xb8] sm:$0xff]  ;;  %v2898_v26 = vpack.c.bf16 %v466_v16, %v465_v15 }
  0x47   :  { %804 = vmatprep.mubr.f32.mxu1 %v178_v37  ;;  %v417_v23 = vld [vmem:[%s5007_s1 + $0x410] sm:$0xff]  ;;  %v418_v24 = vld [vmem:[%s5007_s1 + $0x418] sm:$0xff]  ;;  %v435_v28 = vld [vmem:[%s5007_s1 + $0x4a0] sm:$0xff] }
  0x48   :  { %660 = vmatmul.mubr.f32.gmra.mrb[18].mxu0 %v175_v38  ;;  %v449_v25 = vld [vmem:[%s5007_s1 + $0x510] sm:$0xff]  ;;  %v450_v27 = vld [vmem:[%s5007_s1 + $0x518] sm:$0xff]  ;;  %v436_v29 = vld [vmem:[%s5007_s1 + $0x4a8] sm:$0xff]  ;;  %v2868_v36 = vpack.c.bf16 %v418_v24, %v417_v23 }
  0x49   :  { %664 = vmatprep.mubr.f32.mxu0 %v192_v40  ;;  %v51_v30 = vld [vmem:[%s5008_s0 + $0xa0] sm:$0xff]  ;;  %v468_v32 = vld [vmem:[%s5007_s1 + $0x5a8] sm:$0xff]  ;;  %v53_v33 = vld [vmem:[%s5008_s0 + $0xb0] sm:$0xff]  ;;  %v2900_v37 = vpack.c.bf16 %v450_v27, %v449_v25  ;;  %v2870_v38 = vpack.c.bf16 %v436_v29, %v435_v28 }
  0x4a   :  { %805 = vmatmul.mubr.f32.gmra.mrb[18].mxu1 %v177_v39  ;;  %v467_v31 = vld [vmem:[%s5007_s1 + $0x5a0] sm:$0xff]  ;;  %v68_v34 = vld [vmem:[%s5008_s0 + $0x128] sm:$0xff]  ;;  %v70_v35 = vld [vmem:[%s5008_s0 + $0x138] sm:$0xff] }
  0x4b   :  { %809 = vmatprep.mubr.f32.mxu1 %v194_v41  ;;  %v419_v39 = vld [vmem:[%s5007_s1 + $0x420] sm:$0xff]  ;;  %v420_v40 = vld [vmem:[%s5007_s1 + $0x428] sm:$0xff]  ;;  %v69_v49 = vld [vmem:[%s5008_s0 + $0x130] sm:$0xff] }
  0x4c   :  { %665 = vmatmul.mubr.f32.gmra.mrb[20].mxu0 %v191_v42  ;;  %v451_v41 = vld [vmem:[%s5007_s1 + $0x520] sm:$0xff]  ;;  %v2902_v42 = vpack.c.bf16 %v468_v32, %v467_v31  ;;  %v86_v51 = vld [vmem:[%s5008_s0 + $0x1b8] sm:$0xff]  ;;  %v2872_v52 = vpack.c.bf16 %v420_v40, %v419_v39  ;;  %v421_v55 = vld [vmem:[%s5007_s1 + $0x430] sm:$0xff] }
  0x4d   :  { %669 = vmatprep.mubr.f32.mxu0 %v208_v44  ;;  %v437_v44 = vld [vmem:[%s5007_s1 + $0x4b0] sm:$0xff]  ;;  %v67_v46 = vld [vmem:[%s5008_s0 + $0x120] sm:$0xff]  ;;  %v424_v8 = vld [vmem:[%s5007_s1 + $0x448] sm:$0xff] }
  0x4e   :  { %810 = vmatmul.mubr.f32.gmra.mrb[20].mxu1 %v193_v43  ;;  %v452_v43 = vld [vmem:[%s5007_s1 + $0x528] sm:$0xff]  ;;  %v455_v9 = vld [vmem:[%s5007_s1 + $0x540] sm:$0xff]  ;;  %v441_v12 = vld [vmem:[%s5007_s1 + $0x4d0] sm:$0xff] }
  0x4f   :  { %814 = vmatprep.mubr.f32.mxu1 %v210_v45  ;;  %v438_v45 = vld [vmem:[%s5007_s1 + $0x4b8] sm:$0xff]  ;;  %v2904_v53 = vpack.c.bf16 %v452_v43, %v451_v41  ;;  %v456_v11 = vld [vmem:[%s5007_s1 + $0x548] sm:$0xff]  ;;  %v473_v15 = vld [vmem:[%s5007_s1 + $0x5d0] sm:$0xff] }
  0x50   :  { %670 = vmatmul.mubr.f32.gmra.mrb[22].mxu0 %v207_v47  ;;  %v469_v47 = vld [vmem:[%s5007_s1 + $0x5b0] sm:$0xff]  ;;  %v442_v13 = vld [vmem:[%s5007_s1 + $0x4d8] sm:$0xff]  ;;  %v443_v28 = vld [vmem:[%s5007_s1 + $0x4e0] sm:$0xff] }
  0x51   :  { %674 = vmatprep.mubr.f32.mxu0 %v224_v50  ;;  %v84_v50 = vld [vmem:[%s5008_s0 + $0x1a8] sm:$0xff]  ;;  %v474_v16 = vld [vmem:[%s5007_s1 + $0x5d8] sm:$0xff]  ;;  %v425_v23 = vld [vmem:[%s5007_s1 + $0x450] sm:$0xff] }
  0x52   :  { %815 = vmatmul.mubr.f32.gmra.mrb[22].mxu1 %v209_v48  ;;  %v470_v48 = vld [vmem:[%s5007_s1 + $0x5b8] sm:$0xff]  ;;  %v457_v25 = vld [vmem:[%s5007_s1 + $0x550] sm:$0xff]  ;;  %v444_v29 = vld [vmem:[%s5007_s1 + $0x4e8] sm:$0xff] }
  0x53   :  { %819 = vmatprep.mubr.f32.mxu1 %v226_v54  ;;  %v2874_v54 = vpack.c.bf16 %v438_v45, %v437_v44  ;;  %v426_v24 = vld [vmem:[%s5007_s1 + $0x458] sm:$0xff]  ;;  %v475_v31 = vld [vmem:[%s5007_s1 + $0x5e0] sm:$0xff]  ;;  %v476_v32 = vld [vmem:[%s5007_s1 + $0x5e8] sm:$0xff] }
  0x54   :  { %675 = vmatmul.mubr.f32.gmra.mrb[24].mxu0 %v223_v56  ;;  %v422_v56 = vld [vmem:[%s5007_s1 + $0x438] sm:$0xff]  ;;  %v427_v39 = vld [vmem:[%s5007_s1 + $0x460] sm:$0xff]  ;;  %v428_v40 = vld [vmem:[%s5007_s1 + $0x468] sm:$0xff] }
  0x55   :  { %679 = vmatprep.mubr.f32.mxu0 %v240_v58  ;;  %v2906_v58 = vpack.c.bf16 %v470_v48, %v469_v47  ;;  %v458_v27 = vld [vmem:[%s5007_s1 + $0x558] sm:$0xff]  ;;  %v459_v41 = vld [vmem:[%s5007_s1 + $0x560] sm:$0xff]  ;;  %v460_v43 = vld [vmem:[%s5007_s1 + $0x568] sm:$0xff] }
  0x56   :  { %820 = vmatmul.mubr.f32.gmra.mrb[24].mxu1 %v225_v57  ;;  %v453_v57 = vld [vmem:[%s5007_s1 + $0x530] sm:$0xff]  ;;  %v446_v45 = vld [vmem:[%s5007_s1 + $0x4f8] sm:$0xff] }
  0x57   :  { %824 = vmatprep.mubr.f32.mxu1 %v242_v59  ;;  %v454_v59 = vld [vmem:[%s5007_s1 + $0x538] sm:$0xff]  ;;  %v445_v44 = vld [vmem:[%s5007_s1 + $0x4f0] sm:$0xff] }
  0x58   :  { %680 = vmatmul.mubr.f32.gmra.mrb[26].mxu0 %v239_v60  ;;  %v439_v60 = vld [vmem:[%s5007_s1 + $0x4c0] sm:$0xff]  ;;  %v477_v47 = vld [vmem:[%s5007_s1 + $0x5f0] sm:$0xff]  ;;  %v478_v48 = vld [vmem:[%s5007_s1 + $0x5f8] sm:$0xff] }
  0x59   :  { %684 = vmatprep.mubr.f32.mxu0 %v256_v62  ;;  %v83_v62 = vld [vmem:[%s5008_s0 + $0x1a0] sm:$0xff] }
  0x5a   :  { %825 = vmatmul.mubr.f32.gmra.mrb[26].mxu1 %v241_v61  ;;  %v440_v61 = vld [vmem:[%s5007_s1 + $0x4c8] sm:$0xff] }
  0x5b   :  { %829 = vmatprep.mubr.f32.mxu1 %v258_v63  ;;  %v471_v63 = vld [vmem:[%s5007_s1 + $0x5c0] sm:$0xff] }
  0x5c   :  { %685 = vmatmul.mubr.f32.gmra.mrb[28].mxu0 %v255_v0  ;;  %v472_v0 = vld [vmem:[%s5007_s1 + $0x5c8] sm:$0xff] }
  0x5d   :  { %689 = vmatprep.mubr.f32.mxu0 %v272_v2  ;;  %v100_v2 = vld [vmem:[%s5008_s0 + $0x228] sm:$0xff]  ;;  %v2910_v10 = vpack.c.bf16 %v472_v0, %v471_v63  ;;  %v527_v63 = vld [vmem:[%s5007_s1 + $0x780] sm:$0xff] }
  0x5e   :  { %830 = vmatmul.mubr.f32.gmra.mrb[28].mxu1 %v257_v1  ;;  %v85_v1 = vld [vmem:[%s5008_s0 + $0x1b0] sm:$0xff]  ;;  %v528_v0 = vld [vmem:[%s5007_s1 + $0x788] sm:$0xff] }
  0x5f   :  { %834 = vmatprep.mubr.f32.mxu1 %v274_v3  ;;  %v102_v3 = vld [vmem:[%s5008_s0 + $0x238] sm:$0xff] }
  0x60   :  { %690 = vmatmul.mubr.f32.gmra.mrb[30].mxu0 %v271_v4  ;;  %v2876_v4 = vpack.c.bf16 %v422_v56, %v421_v55  ;;  %v429_v55 = vld [vmem:[%s5007_s1 + $0x470] sm:$0xff]  ;;  %v430_v56 = vld [vmem:[%s5007_s1 + $0x478] sm:$0xff] }
  0x61   :  { %904 = vmatprep.mubr.f32.mxu0 %v36_v6  ;;  %v2878_v6 = vpack.c.bf16 %v440_v61, %v439_v60  ;;  %v495_v60 = vld [vmem:[%s5007_s1 + $0x680] sm:$0xff]  ;;  %v496_v61 = vld [vmem:[%s5007_s1 + $0x688] sm:$0xff] }
  0x62   :  { %835 = vmatmul.mubr.f32.gmra.mrb[30].mxu1 %v273_v5  ;;  %v2908_v5 = vpack.c.bf16 %v454_v59, %v453_v57  ;;  %v461_v57 = vld [vmem:[%s5007_s1 + $0x570] sm:$0xff]  ;;  %v462_v59 = vld [vmem:[%s5007_s1 + $0x578] sm:$0xff] }
  0x63   :  { %1049 = vmatprep.mubr.f32.mxu1 %v38_v7  ;;  %v423_v7 = vld [vmem:[%s5007_s1 + $0x440] sm:$0xff] }
  0x64   :  { %905 = vmatmul.mubr.f32.vlgmr.msra.gmra.mrb[32].mxu0 %v35_v14  ;;  %v99_v14 = vld [vmem:[%s5008_s0 + $0x220] sm:$0xff] }
  0x65   :  { %909 = vmatprep.mubr.f32.mxu0 %v52_v18  ;;  %2865 = vmatpush3.bf16.msra.mxu0 %v2864_v20  ;;  %v116_v18 = vld [vmem:[%s5008_s0 + $0x2a8] sm:$0xff]  ;;  %v2880_v20 = vpack.c.bf16 %v424_v8, %v423_v7  ;;  %v2958_v7 = vpack.c.bf16 %v528_v0, %v527_v63  ;;  %v163_v8 = vld [vmem:[%s5008_s0 + $0x420] sm:$0xff] }
  0x66   :  { %1050 = vmatmul.mubr.f32.vlgmr.msra.gmra.mrb[32].mxu1 %v37_v17  ;;  %2867 = vmatprep.subr.bf16.mxu0 %v2866_v22  ;;  %v101_v17 = vld [vmem:[%s5008_s0 + $0x230] sm:$0xff]  ;;  %v2882_v22 = vpack.c.bf16 %v442_v13, %v441_v12  ;;  %v179_v12 = vld [vmem:[%s5008_s0 + $0x4a0] sm:$0xff]  ;;  %v532_v0 = vld [vmem:[%s5007_s1 + $0x7a8] sm:$0xff] }
  0x67   :  { %1054 = vmatprep.mubr.f32.mxu1 %v54_v19  ;;  %2897 = vmatpush3.bf16.msra.mxu1 %v2896_v21  ;;  %v118_v19 = vld [vmem:[%s5008_s0 + $0x2b8] sm:$0xff]  ;;  %v2912_v21 = vpack.c.bf16 %v456_v11, %v455_v9  ;;  %v165_v9 = vld [vmem:[%s5008_s0 + $0x430] sm:$0xff]  ;;  %v531_v63 = vld [vmem:[%s5007_s1 + $0x7a0] sm:$0xff] }
  0x68   :  { %910 = vmatmul.mubr.f32.gmra.mrb[34].mxu0 %v51_v30  ;;  %2899 = vmatprep.subr.bf16.mxu1 %v2898_v26  ;;  %v2914_v26 = vpack.c.bf16 %v474_v16, %v473_v15  ;;  %v115_v30 = vld [vmem:[%s5008_s0 + $0x2a0] sm:$0xff]  ;;  %v182_v11 = vld [vmem:[%s5008_s0 + $0x4b8] sm:$0xff]  ;;  %v181_v13 = vld [vmem:[%s5008_s0 + $0x4b0] sm:$0xff] }
  0x69   :  { %914 = vmatprep.mubr.f32.mxu0 %v68_v34  ;;  %2869 = vmatpush3.bf16.msra.mxu0 %v2868_v36  ;;  %v132_v34 = vld [vmem:[%s5008_s0 + $0x328] sm:$0xff]  ;;  %v2884_v36 = vpack.c.bf16 %v426_v24, %v425_v23  ;;  %v198_v15 = vld [vmem:[%s5008_s0 + $0x538] sm:$0xff]  ;;  %v195_v16 = vld [vmem:[%s5008_s0 + $0x520] sm:$0xff] }
  0x6a   :  { %1055 = vmatmul.mubr.f32.gmra.mrb[34].mxu1 %v53_v33  ;;  %2871 = vmatprep.subr.bf16.mxu0 %v2870_v38  ;;  %v117_v33 = vld [vmem:[%s5008_s0 + $0x2b0] sm:$0xff]  ;;  %v2886_v38 = vpack.c.bf16 %v444_v29, %v443_v28  ;;  %v230_v23 = vld [vmem:[%s5008_s0 + $0x638] sm:$0xff]  ;;  %v227_v24 = vld [vmem:[%s5008_s0 + $0x620] sm:$0xff] }
  0x6b   :  { %1059 = vmatprep.mubr.f32.mxu1 %v70_v35  ;;  %2901 = vmatpush3.bf16.msra.mxu1 %v2900_v37  ;;  %v134_v35 = vld [vmem:[%s5008_s0 + $0x338] sm:$0xff]  ;;  %v2916_v37 = vpack.c.bf16 %v458_v27, %v457_v25  ;;  %v229_v25 = vld [vmem:[%s5008_s0 + $0x630] sm:$0xff]  ;;  %v243_v28 = vld [vmem:[%s5008_s0 + $0x6a0] sm:$0xff] }
  0x6c   :  { %915 = vmatmul.mubr.f32.gmra.mrb[36].mxu0 %v67_v46  ;;  %2903 = vmatprep.subr.bf16.mxu1 %v2902_v42  ;;  %v2918_v42 = vpack.c.bf16 %v476_v32, %v475_v31  ;;  %v131_v46 = vld [vmem:[%s5008_s0 + $0x320] sm:$0xff]  ;;  %v246_v27 = vld [vmem:[%s5008_s0 + $0x6b8] sm:$0xff]  ;;  %v245_v29 = vld [vmem:[%s5008_s0 + $0x6b0] sm:$0xff] }
  0x6d   :  { %919 = vmatprep.mubr.f32.mxu0 %v84_v50  ;;  %2873 = vmatpush3.bf16.msra.mxu0 %v2872_v52  ;;  %v148_v50 = vld [vmem:[%s5008_s0 + $0x3a8] sm:$0xff]  ;;  %v2888_v52 = vpack.c.bf16 %v428_v40, %v427_v39  ;;  %v262_v31 = vld [vmem:[%s5008_s0 + $0x738] sm:$0xff]  ;;  %v259_v32 = vld [vmem:[%s5008_s0 + $0x720] sm:$0xff] }
  0x6e   :  { %1060 = vmatmul.mubr.f32.gmra.mrb[36].mxu1 %v69_v49  ;;  %2875 = vmatprep.subr.bf16.mxu0 %v2874_v54  ;;  %v133_v49 = vld [vmem:[%s5008_s0 + $0x330] sm:$0xff]  ;;  %v2890_v54 = vpack.c.bf16 %v446_v45, %v445_v44  ;;  %v42_v39 = vld [vmem:[%s5008_s0 + $0x58] sm:$0xff]  ;;  %v479_v40 = vld [vmem:[%s5007_s1 + $0x600] sm:$0xff] }
  0x6f   :  { %1064 = vmatprep.mubr.f32.mxu1 %v86_v51  ;;  %2905 = vmatpush3.bf16.msra.mxu1 %v2904_v53  ;;  %v150_v51 = vld [vmem:[%s5008_s0 + $0x3b8] sm:$0xff]  ;;  %v2920_v53 = vpack.c.bf16 %v460_v43, %v459_v41  ;;  %v480_v41 = vld [vmem:[%s5007_s1 + $0x608] sm:$0xff]  ;;  %v497_v44 = vld [vmem:[%s5007_s1 + $0x690] sm:$0xff] }
  0x70   :  { %920 = vmatmul.mubr.f32.gmra.mrb[38].mxu0 %v83_v62  ;;  %2907 = vmatprep.subr.bf16.mxu1 %v2906_v58  ;;  %v2922_v58 = vpack.c.bf16 %v478_v48, %v477_v47  ;;  %v147_v62 = vld [vmem:[%s5008_s0 + $0x3a0] sm:$0xff]  ;;  %v512_v43 = vld [vmem:[%s5007_s1 + $0x708] sm:$0xff]  ;;  %v498_v45 = vld [vmem:[%s5007_s1 + $0x698] sm:$0xff] }
  0x71   :  { %924 = vmatprep.mubr.f32.mxu0 %v100_v2  ;;  %2877 = vmatpush3.bf16.msra.mxu0 %v2876_v4  ;;  %v164_v2 = vld [vmem:[%s5008_s0 + $0x428] sm:$0xff]  ;;  %v166_v4 = vld [vmem:[%s5008_s0 + $0x438] sm:$0xff]  ;;  %v529_v47 = vld [vmem:[%s5007_s1 + $0x790] sm:$0xff] }
  0x72   :  { %1065 = vmatmul.mubr.f32.gmra.mrb[38].mxu1 %v85_v1  ;;  %2879 = vmatprep.subr.bf16.mxu0 %v2878_v6  ;;  %v149_v1 = vld [vmem:[%s5008_s0 + $0x3b0] sm:$0xff]  ;;  %v2926_v6 = vpack.c.bf16 %v496_v61, %v495_v60  ;;  %v530_v48 = vld [vmem:[%s5007_s1 + $0x798] sm:$0xff]  ;;  %v499_v60 = vld [vmem:[%s5007_s1 + $0x6a0] sm:$0xff] }
  0x73   :  { %1069 = vmatprep.mubr.f32.mxu1 %v102_v3  ;;  %2909 = vmatpush3.bf16.msra.mxu1 %v2908_v5  ;;  %v2892_v3 = vpack.c.bf16 %v430_v56, %v429_v55  ;;  %v2924_v5 = vpack.c.bf16 %v462_v59, %v461_v57  ;;  %v481_v55 = vld [vmem:[%s5007_s1 + $0x610] sm:$0xff]  ;;  %v482_v56 = vld [vmem:[%s5007_s1 + $0x618] sm:$0xff]  ;;  %v500_v61 = vld [vmem:[%s5007_s1 + $0x6a8] sm:$0xff] }
  0x74   :  { %925 = vmatmul.mubr.f32.gmra.mrb[40].mxu0 %v99_v14  ;;  %2911 = vmatprep.subr.bf16.mxu1 %v2910_v10  ;;  %v180_v10 = vld [vmem:[%s5008_s0 + $0x4a8] sm:$0xff]  ;;  %v513_v57 = vld [vmem:[%s5007_s1 + $0x710] sm:$0xff]  ;;  %v514_v59 = vld [vmem:[%s5007_s1 + $0x718] sm:$0xff] }
  0x75   :  { %929 = vmatprep.mubr.f32.mxu0 %v116_v18  ;;  %2881 = vmatpush3.bf16.msra.mxu0 %v2880_v20  ;;  %v196_v14 = vld [vmem:[%s5008_s0 + $0x528] sm:$0xff]  ;;  %v211_v20 = vld [vmem:[%s5008_s0 + $0x5a0] sm:$0xff] }
  0x76   :  { %1070 = vmatmul.mubr.f32.gmra.mrb[40].mxu1 %v101_v17  ;;  %2883 = vmatprep.subr.bf16.mxu0 %v2882_v22  ;;  %v197_v17 = vld [vmem:[%s5008_s0 + $0x530] sm:$0xff]  ;;  %v212_v18 = vld [vmem:[%s5008_s0 + $0x5a8] sm:$0xff] }
  0x77   :  { %1074 = vmatprep.mubr.f32.mxu1 %v118_v19  ;;  %2913 = vmatpush3.bf16.msra.mxu1 %v2912_v21  ;;  %v214_v19 = vld [vmem:[%s5008_s0 + $0x5b8] sm:$0xff]  ;;  %v213_v21 = vld [vmem:[%s5008_s0 + $0x5b0] sm:$0xff]  ;;  %v228_v22 = vld [vmem:[%s5008_s0 + $0x628] sm:$0xff] }
  0x78   :  { %930 = vmatmul.mubr.f32.gmra.mrb[42].mxu0 %v115_v30  ;;  %2915 = vmatprep.subr.bf16.mxu1 %v2914_v26  ;;  %v244_v26 = vld [vmem:[%s5008_s0 + $0x6a8] sm:$0xff] }
  0x79   :  { %934 = vmatprep.mubr.f32.mxu0 %v132_v34  ;;  %2885 = vmatpush3.bf16.msra.mxu0 %v2884_v36  ;;  %v260_v30 = vld [vmem:[%s5008_s0 + $0x728] sm:$0xff]  ;;  %v275_v36 = vld [vmem:[%s5008_s0 + $0x7a0] sm:$0xff] }
  0x7a   :  { %1075 = vmatmul.mubr.f32.gmra.mrb[42].mxu1 %v117_v33  ;;  %2887 = vmatprep.subr.bf16.mxu0 %v2886_v38  ;;  %v261_v33 = vld [vmem:[%s5008_s0 + $0x730] sm:$0xff]  ;;  %v276_v34 = vld [vmem:[%s5008_s0 + $0x7a8] sm:$0xff] }
  0x7b   :  { %1079 = vmatprep.mubr.f32.mxu1 %v134_v35  ;;  %2917 = vmatpush3.bf16.msra.mxu1 %v2916_v37  ;;  %v278_v35 = vld [vmem:[%s5008_s0 + $0x7b8] sm:$0xff]  ;;  %v277_v37 = vld [vmem:[%s5008_s0 + $0x7b0] sm:$0xff]  ;;  %v40_v38 = vld [vmem:[%s5008_s0 + $0x48] sm:$0xff] }
  0x7c   :  { %935 = vmatmul.mubr.f32.gmra.mrb[44].mxu0 %v131_v46  ;;  %2919 = vmatprep.subr.bf16.mxu1 %v2918_v42  ;;  %v511_v42 = vld [vmem:[%s5007_s1 + $0x700] sm:$0xff] }
  0x7d   :  { %939 = vmatprep.mubr.f32.mxu0 %v148_v50  ;;  %2889 = vmatpush3.bf16.msra.mxu0 %v2888_v52  ;;  %v39_v46 = vld [vmem:[%s5008_s0 + $0x40] sm:$0xff]  ;;  %v56_v50 = vld [vmem:[%s5008_s0 + $0xc8] sm:$0xff]  ;;  %v2928_v52 = vpack.c.bf16 %v480_v41, %v479_v40 }
  0x7e   :  { %1080 = vmatmul.mubr.f32.gmra.mrb[44].mxu1 %v133_v49  ;;  %2891 = vmatprep.subr.bf16.mxu0 %v2890_v54  ;;  %v41_v49 = vld [vmem:[%s5008_s0 + $0x50] sm:$0xff]  ;;  %v2930_v54 = vpack.c.bf16 %v498_v45, %v497_v44  ;;  %v488_v40 = vld [vmem:[%s5007_s1 + $0x648] sm:$0xff]  ;;  %v519_v41 = vld [vmem:[%s5007_s1 + $0x740] sm:$0xff] }
  0x7f   :  { %1084 = vmatprep.mubr.f32.mxu1 %v150_v51  ;;  %2921 = vmatpush3.bf16.msra.mxu1 %v2920_v53  ;;  %v58_v51 = vld [vmem:[%s5008_s0 + $0xd8] sm:$0xff]  ;;  %v2960_v53 = vpack.c.bf16 %v512_v43, %v511_v42  ;;  %v520_v43 = vld [vmem:[%s5007_s1 + $0x748] sm:$0xff]  ;;  %v505_v44 = vld [vmem:[%s5007_s1 + $0x6d0] sm:$0xff] }
  0x80   :  { %940 = vmatmul.mubr.f32.gmra.mrb[46].mxu0 %v147_v62  ;;  %2923 = vmatprep.subr.bf16.mxu1 %v2922_v58  ;;  %v2962_v58 = vpack.c.bf16 %v530_v48, %v529_v47  ;;  %v55_v62 = vld [vmem:[%s5008_s0 + $0xc0] sm:$0xff]  ;;  %v506_v45 = vld [vmem:[%s5007_s1 + $0x6d8] sm:$0xff]  ;;  %v537_v47 = vld [vmem:[%s5007_s1 + $0x7d0] sm:$0xff] }
  0x81   :  { %944 = vmatprep.mubr.f32.mxu0 %v164_v2  ;;  %2893 = vmatpush3.bf16.msra.mxu0 %v2892_v3  ;;  %v72_v2 = vld [vmem:[%s5008_s0 + $0x148] sm:$0xff]  ;;  %v74_v3 = vld [vmem:[%s5008_s0 + $0x158] sm:$0xff] }
  0x82   :  { %1085 = vmatmul.mubr.f32.gmra.mrb[46].mxu1 %v149_v1  ;;  %2927 = vmatprep.subr.bf16.mxu0 %v2926_v6  ;;  %v57_v1 = vld [vmem:[%s5008_s0 + $0xd0] sm:$0xff]  ;;  %v2934_v6 = vpack.c.bf16 %v500_v61, %v499_v60  ;;  %v538_v48 = vld [vmem:[%s5007_s1 + $0x7d8] sm:$0xff]  ;;  %v507_v60 = vld [vmem:[%s5007_s1 + $0x6e0] sm:$0xff] }
  0x83   :  { %1089 = vmatprep.mubr.f32.mxu1 %v166_v4  ;;  %2925 = vmatpush3.bf16.msra.mxu1 %v2924_v5  ;;  %v2932_v4 = vpack.c.bf16 %v482_v56, %v481_v55  ;;  %v2964_v5 = vpack.c.bf16 %v514_v59, %v513_v57  ;;  %v489_v55 = vld [vmem:[%s5007_s1 + $0x650] sm:$0xff]  ;;  %v490_v56 = vld [vmem:[%s5007_s1 + $0x658] sm:$0xff]  ;;  %v508_v61 = vld [vmem:[%s5007_s1 + $0x6e8] sm:$0xff] }
  0x84   :  { %945 = vmatmul.mubr.f32.gmra.mrb[48].mxu0 %v163_v8  ;;  %2959 = vmatprep.subr.bf16.mxu1 %v2958_v7  ;;  %v483_v7 = vld [vmem:[%s5007_s1 + $0x620] sm:$0xff]  ;;  %v484_v8 = vld [vmem:[%s5007_s1 + $0x628] sm:$0xff]  ;;  %v521_v57 = vld [vmem:[%s5007_s1 + $0x750] sm:$0xff] }
  0x85   :  { %949 = vmatprep.mubr.f32.mxu0 %v180_v10  ;;  %v2966_v10 = vpack.c.bf16 %v532_v0, %v531_v63  ;;  %v522_v59 = vld [vmem:[%s5007_s1 + $0x758] sm:$0xff]  ;;  %v539_v63 = vld [vmem:[%s5007_s1 + $0x7e0] sm:$0xff]  ;;  %v540_v0 = vld [vmem:[%s5007_s1 + $0x7e8] sm:$0xff] }
  0x86   :  { %1090 = vmatmul.mubr.f32.gmra.mrb[48].mxu1 %v165_v9  ;;  %v515_v9 = vld [vmem:[%s5007_s1 + $0x720] sm:$0xff] }
  0x87   :  { %1094 = vmatprep.mubr.f32.mxu1 %v182_v11  ;;  %v516_v11 = vld [vmem:[%s5007_s1 + $0x728] sm:$0xff] }
  0x88   :  { %950 = vmatmul.mubr.f32.gmra.mrb[50].mxu0 %v179_v12  ;;  %v501_v12 = vld [vmem:[%s5007_s1 + $0x6b0] sm:$0xff] }
  0x89   :  { %954 = vmatprep.mubr.f32.mxu0 %v196_v14  ;;  %v71_v14 = vld [vmem:[%s5008_s0 + $0x140] sm:$0xff] }
  0x8a   :  { %1095 = vmatmul.mubr.f32.gmra.mrb[50].mxu1 %v181_v13  ;;  %v502_v13 = vld [vmem:[%s5007_s1 + $0x6b8] sm:$0xff] }
  0x8b   :  { %1099 = vmatprep.mubr.f32.mxu1 %v198_v15  ;;  %v533_v15 = vld [vmem:[%s5007_s1 + $0x7b0] sm:$0xff] }
  0x8c   :  { %955 = vmatmul.mubr.f32.gmra.mrb[52].mxu0 %v195_v16  ;;  %v534_v16 = vld [vmem:[%s5007_s1 + $0x7b8] sm:$0xff] }
  0x8d   :  { %959 = vmatprep.mubr.f32.mxu0 %v212_v18  ;;  %v88_v18 = vld [vmem:[%s5008_s0 + $0x1c8] sm:$0xff] }
  0x8e   :  { %1100 = vmatmul.mubr.f32.gmra.mrb[52].mxu1 %v197_v17  ;;  %v73_v17 = vld [vmem:[%s5008_s0 + $0x150] sm:$0xff] }
  0x8f   :  { %1104 = vmatprep.mubr.f32.mxu1 %v214_v19  ;;  %v90_v19 = vld [vmem:[%s5008_s0 + $0x1d8] sm:$0xff] }
  0x90   :  { %960 = vmatmul.mubr.f32.gmra.mrb[54].mxu0 %v211_v20  ;;  %v2936_v20 = vpack.c.bf16 %v484_v8, %v483_v7  ;;  %v491_v7 = vld [vmem:[%s5007_s1 + $0x660] sm:$0xff]  ;;  %v492_v8 = vld [vmem:[%s5007_s1 + $0x668] sm:$0xff] }
  0x91   :  { %964 = vmatprep.mubr.f32.mxu0 %v228_v22  ;;  %v2938_v22 = vpack.c.bf16 %v502_v13, %v501_v12  ;;  %v509_v12 = vld [vmem:[%s5007_s1 + $0x6f0] sm:$0xff]  ;;  %v510_v13 = vld [vmem:[%s5007_s1 + $0x6f8] sm:$0xff] }
  0x92   :  { %1105 = vmatmul.mubr.f32.gmra.mrb[54].mxu1 %v213_v21  ;;  %v2968_v21 = vpack.c.bf16 %v516_v11, %v515_v9  ;;  %v523_v9 = vld [vmem:[%s5007_s1 + $0x760] sm:$0xff]  ;;  %v524_v11 = vld [vmem:[%s5007_s1 + $0x768] sm:$0xff] }
  0x93   :  { %1109 = vmatprep.mubr.f32.mxu1 %v230_v23  ;;  %v485_v23 = vld [vmem:[%s5007_s1 + $0x630] sm:$0xff] }
  0x94   :  { %965 = vmatmul.mubr.f32.gmra.mrb[56].mxu0 %v227_v24  ;;  %v486_v24 = vld [vmem:[%s5007_s1 + $0x638] sm:$0xff] }
  0x95   :  { %969 = vmatprep.mubr.f32.mxu0 %v244_v26  ;;  %v2970_v26 = vpack.c.bf16 %v534_v16, %v533_v15  ;;  %v541_v15 = vld [vmem:[%s5007_s1 + $0x7f0] sm:$0xff]  ;;  %v542_v16 = vld [vmem:[%s5007_s1 + $0x7f8] sm:$0xff] }
  0x96   :  { %1110 = vmatmul.mubr.f32.gmra.mrb[56].mxu1 %v229_v25  ;;  %v517_v25 = vld [vmem:[%s5007_s1 + $0x730] sm:$0xff] }
  0x97   :  { %1114 = vmatprep.mubr.f32.mxu1 %v246_v27  ;;  %v518_v27 = vld [vmem:[%s5007_s1 + $0x738] sm:$0xff] }
  0x98   :  { %970 = vmatmul.mubr.f32.gmra.mrb[58].mxu0 %v243_v28  ;;  %v503_v28 = vld [vmem:[%s5007_s1 + $0x6c0] sm:$0xff] }
  0x99   :  { %974 = vmatprep.mubr.f32.mxu0 %v260_v30  ;;  %v87_v30 = vld [vmem:[%s5008_s0 + $0x1c0] sm:$0xff] }
  0x9a   :  { %1115 = vmatmul.mubr.f32.gmra.mrb[58].mxu1 %v245_v29  ;;  %v504_v29 = vld [vmem:[%s5007_s1 + $0x6c8] sm:$0xff] }
  0x9b   :  { %1119 = vmatprep.mubr.f32.mxu1 %v262_v31  ;;  %v535_v31 = vld [vmem:[%s5007_s1 + $0x7c0] sm:$0xff] }
  0x9c   :  { %975 = vmatmul.mubr.f32.gmra.mrb[60].mxu0 %v259_v32  ;;  %v536_v32 = vld [vmem:[%s5007_s1 + $0x7c8] sm:$0xff] }
  0x9d   :  { %979 = vmatprep.mubr.f32.mxu0 %v276_v34  ;;  %v104_v34 = vld [vmem:[%s5008_s0 + $0x248] sm:$0xff]  ;;  %v2974_v42 = vpack.c.bf16 %v536_v32, %v535_v31  ;;  %v170_v32 = vld [vmem:[%s5008_s0 + $0x458] sm:$0xff] }
  0x9e   :  { %1120 = vmatmul.mubr.f32.gmra.mrb[60].mxu1 %v261_v33  ;;  %v89_v33 = vld [vmem:[%s5008_s0 + $0x1d0] sm:$0xff] }
  0x9f   :  { %1124 = vmatprep.mubr.f32.mxu1 %v278_v35  ;;  %v106_v35 = vld [vmem:[%s5008_s0 + $0x258] sm:$0xff] }
  0xa0   :  { %980 = vmatmul.mubr.f32.gmra.mrb[62].mxu0 %v275_v36  ;;  %v2940_v36 = vpack.c.bf16 %v486_v24, %v485_v23  ;;  %v493_v23 = vld [vmem:[%s5007_s1 + $0x670] sm:$0xff]  ;;  %v494_v24 = vld [vmem:[%s5007_s1 + $0x678] sm:$0xff] }
  0xa1   :  { %1194 = vmatprep.mubr.f32.mxu0 %v40_v38  ;;  %v2942_v38 = vpack.c.bf16 %v504_v29, %v503_v28  ;;  %v151_v28 = vld [vmem:[%s5008_s0 + $0x3c0] sm:$0xff]  ;;  %v153_v29 = vld [vmem:[%s5008_s0 + $0x3d0] sm:$0xff]  ;;  %v2956_v31 = vpack.c.bf16 %v494_v24, %v493_v23  ;;  %v140_v24 = vld [vmem:[%s5008_s0 + $0x368] sm:$0xff] }
  0xa2   :  { %1125 = vmatmul.mubr.f32.gmra.mrb[62].mxu1 %v277_v37  ;;  %v2972_v37 = vpack.c.bf16 %v518_v27, %v517_v25  ;;  %v2986_v25 = vpack.c.bf16 %v542_v16, %v541_v15  ;;  %v526_v27 = vld [vmem:[%s5007_s1 + $0x778] sm:$0xff]  ;;  %v93_v15 = vld [vmem:[%s5008_s0 + $0x1f0] sm:$0xff]  ;;  %v108_v16 = vld [vmem:[%s5008_s0 + $0x268] sm:$0xff] }
  0xa3   :  { %1339 = vmatprep.mubr.f32.mxu1 %v42_v39  ;;  %v487_v39 = vld [vmem:[%s5007_s1 + $0x640] sm:$0xff]  ;;  %v125_v23 = vld [vmem:[%s5008_s0 + $0x2f0] sm:$0xff] }
  0xa4   :  { %1195 = vmatmul.mubr.f32.vlgmr.msra.gmra.mrb[64].mxu0 %v39_v46  ;;  %v103_v46 = vld [vmem:[%s5008_s0 + $0x240] sm:$0xff] }
  0xa5   :  { %1199 = vmatprep.mubr.f32.mxu0 %v56_v50  ;;  %2929 = vmatpush3.bf16.msra.mxu0 %v2928_v52  ;;  %v120_v50 = vld [vmem:[%s5008_s0 + $0x2c8] sm:$0xff]  ;;  %v2944_v52 = vpack.c.bf16 %v488_v40, %v487_v39  ;;  %v185_v39 = vld [vmem:[%s5008_s0 + $0x4d0] sm:$0xff] }
  0xa6   :  { %1340 = vmatmul.mubr.f32.vlgmr.msra.gmra.mrb[64].mxu1 %v41_v49  ;;  %2931 = vmatprep.subr.bf16.mxu0 %v2930_v54  ;;  %v105_v49 = vld [vmem:[%s5008_s0 + $0x250] sm:$0xff]  ;;  %v2946_v54 = vpack.c.bf16 %v506_v45, %v505_v44  ;;  %v200_v40 = vld [vmem:[%s5008_s0 + $0x548] sm:$0xff]  ;;  %v218_v45 = vld [vmem:[%s5008_s0 + $0x5d8] sm:$0xff] }
  0xa7   :  { %1344 = vmatprep.mubr.f32.mxu1 %v58_v51  ;;  %2961 = vmatpush3.bf16.msra.mxu1 %v2960_v53  ;;  %v122_v51 = vld [vmem:[%s5008_s0 + $0x2d8] sm:$0xff]  ;;  %v2976_v53 = vpack.c.bf16 %v520_v43, %v519_v41  ;;  %v201_v43 = vld [vmem:[%s5008_s0 + $0x550] sm:$0xff]  ;;  %v216_v44 = vld [vmem:[%s5008_s0 + $0x5c8] sm:$0xff] }
  0xa8   :  { %1200 = vmatmul.mubr.f32.gmra.mrb[66].mxu0 %v55_v62  ;;  %2963 = vmatprep.subr.bf16.mxu1 %v2962_v58  ;;  %v2978_v58 = vpack.c.bf16 %v538_v48, %v537_v47  ;;  %v119_v62 = vld [vmem:[%s5008_s0 + $0x2c0] sm:$0xff]  ;;  %v202_v41 = vld [vmem:[%s5008_s0 + $0x558] sm:$0xff]  ;;  %v217_v47 = vld [vmem:[%s5008_s0 + $0x5d0] sm:$0xff] }
  0xa9   :  { %1204 = vmatprep.mubr.f32.mxu0 %v72_v2  ;;  %2933 = vmatpush3.bf16.msra.mxu0 %v2932_v4  ;;  %v136_v2 = vld [vmem:[%s5008_s0 + $0x348] sm:$0xff]  ;;  %v2948_v4 = vpack.c.bf16 %v490_v56, %v489_v55  ;;  %v249_v55 = vld [vmem:[%s5008_s0 + $0x6d0] sm:$0xff] }
  0xaa   :  { %1345 = vmatmul.mubr.f32.gmra.mrb[66].mxu1 %v57_v1  ;;  %2935 = vmatprep.subr.bf16.mxu0 %v2934_v6  ;;  %v121_v1 = vld [vmem:[%s5008_s0 + $0x2d0] sm:$0xff]  ;;  %v2950_v6 = vpack.c.bf16 %v508_v61, %v507_v60  ;;  %v232_v48 = vld [vmem:[%s5008_s0 + $0x648] sm:$0xff]  ;;  %v282_v61 = vld [vmem:[%s5008_s0 + $0x7d8] sm:$0xff] }
  0xab   :  { %1349 = vmatprep.mubr.f32.mxu1 %v74_v3  ;;  %2965 = vmatpush3.bf16.msra.mxu1 %v2964_v5  ;;  %v138_v3 = vld [vmem:[%s5008_s0 + $0x358] sm:$0xff]  ;;  %v2980_v5 = vpack.c.bf16 %v522_v59, %v521_v57  ;;  %v264_v56 = vld [vmem:[%s5008_s0 + $0x748] sm:$0xff]  ;;  %v265_v59 = vld [vmem:[%s5008_s0 + $0x750] sm:$0xff] }
  0xac   :  { %1205 = vmatmul.mubr.f32.gmra.mrb[68].mxu0 %v71_v14  ;;  %2967 = vmatprep.subr.bf16.mxu1 %v2966_v10  ;;  %v2982_v10 = vpack.c.bf16 %v540_v0, %v539_v63  ;;  %v135_v14 = vld [vmem:[%s5008_s0 + $0x340] sm:$0xff]  ;;  %v266_v57 = vld [vmem:[%s5008_s0 + $0x758] sm:$0xff]  ;;  %v280_v60 = vld [vmem:[%s5008_s0 + $0x7c8] sm:$0xff] }
  0xad   :  { %1209 = vmatprep.mubr.f32.mxu0 %v88_v18  ;;  %2937 = vmatpush3.bf16.msra.mxu0 %v2936_v20  ;;  %v152_v18 = vld [vmem:[%s5008_s0 + $0x3c8] sm:$0xff]  ;;  %v154_v20 = vld [vmem:[%s5008_s0 + $0x3d8] sm:$0xff]  ;;  %v281_v63 = vld [vmem:[%s5008_s0 + $0x7d0] sm:$0xff] }
  0xae   :  { %1350 = vmatmul.mubr.f32.gmra.mrb[68].mxu1 %v73_v17  ;;  %2939 = vmatprep.subr.bf16.mxu0 %v2938_v22  ;;  %v137_v17 = vld [vmem:[%s5008_s0 + $0x350] sm:$0xff]  ;;  %v2954_v22 = vpack.c.bf16 %v510_v13, %v509_v12  ;;  %v44_v0 = vld [vmem:[%s5008_s0 + $0x68] sm:$0xff]  ;;  %v94_v13 = vld [vmem:[%s5008_s0 + $0x1f8] sm:$0xff] }
  0xaf   :  { %1354 = vmatprep.mubr.f32.mxu1 %v90_v19  ;;  %2969 = vmatpush3.bf16.msra.mxu1 %v2968_v21  ;;  %v2952_v19 = vpack.c.bf16 %v492_v8, %v491_v7  ;;  %v2984_v21 = vpack.c.bf16 %v524_v11, %v523_v9  ;;  %v61_v7 = vld [vmem:[%s5008_s0 + $0xf0] sm:$0xff]  ;;  %v76_v8 = vld [vmem:[%s5008_s0 + $0x168] sm:$0xff]  ;;  %v78_v9 = vld [vmem:[%s5008_s0 + $0x178] sm:$0xff] }
  0xb0   :  { %1210 = vmatmul.mubr.f32.gmra.mrb[70].mxu0 %v87_v30  ;;  %2971 = vmatprep.subr.bf16.mxu1 %v2970_v26  ;;  %v525_v26 = vld [vmem:[%s5007_s1 + $0x770] sm:$0xff]  ;;  %v168_v30 = vld [vmem:[%s5008_s0 + $0x448] sm:$0xff] }
  0xb1   :  { %1214 = vmatprep.mubr.f32.mxu0 %v104_v34  ;;  %2941 = vmatpush3.bf16.msra.mxu0 %v2940_v36  ;;  %v167_v34 = vld [vmem:[%s5008_s0 + $0x440] sm:$0xff]  ;;  %v184_v36 = vld [vmem:[%s5008_s0 + $0x4c8] sm:$0xff]  ;;  %v77_v11 = vld [vmem:[%s5008_s0 + $0x170] sm:$0xff] }
  0xb2   :  { %1355 = vmatmul.mubr.f32.gmra.mrb[70].mxu1 %v89_v33  ;;  %2943 = vmatprep.subr.bf16.mxu0 %v2942_v38  ;;  %v2988_v33 = vpack.c.bf16 %v526_v27, %v525_v26  ;;  %v183_v38 = vld [vmem:[%s5008_s0 + $0x4c0] sm:$0xff]  ;;  %v92_v12 = vld [vmem:[%s5008_s0 + $0x1e8] sm:$0xff]  ;;  %v142_v26 = vld [vmem:[%s5008_s0 + $0x378] sm:$0xff] }
  0xb3   :  { %1359 = vmatprep.mubr.f32.mxu1 %v106_v35  ;;  %2973 = vmatpush3.bf16.msra.mxu1 %v2972_v37  ;;  %v169_v35 = vld [vmem:[%s5008_s0 + $0x450] sm:$0xff]  ;;  %v186_v37 = vld [vmem:[%s5008_s0 + $0x4d8] sm:$0xff]  ;;  %v4492_v27 = vld [vmem:[%s5009_s2] ss:$0 sm:$0xff] }
  0xb4   :  { %1215 = vmatmul.mubr.f32.gmra.mrb[72].mxu0 %v103_v46  ;;  %2975 = vmatprep.subr.bf16.mxu1 %v2974_v42  ;;  %v199_v42 = vld [vmem:[%s5008_s0 + $0x540] sm:$0xff] }
  0xb5   :  { %1219 = vmatprep.mubr.f32.mxu0 %v120_v50  ;;  %2945 = vmatpush3.bf16.msra.mxu0 %v2944_v52  ;;  %v215_v46 = vld [vmem:[%s5008_s0 + $0x5c0] sm:$0xff]  ;;  %v248_v52 = vld [vmem:[%s5008_s0 + $0x6c8] sm:$0xff] }
  0xb6   :  { %1360 = vmatmul.mubr.f32.gmra.mrb[72].mxu1 %v105_v49  ;;  %2947 = vmatprep.subr.bf16.mxu0 %v2946_v54  ;;  %v234_v49 = vld [vmem:[%s5008_s0 + $0x658] sm:$0xff]  ;;  %v231_v50 = vld [vmem:[%s5008_s0 + $0x640] sm:$0xff] }
  0xb7   :  { %1364 = vmatprep.mubr.f32.mxu1 %v122_v51  ;;  %2977 = vmatpush3.bf16.msra.mxu1 %v2976_v53  ;;  %v233_v51 = vld [vmem:[%s5008_s0 + $0x650] sm:$0xff]  ;;  %v250_v53 = vld [vmem:[%s5008_s0 + $0x6d8] sm:$0xff]  ;;  %v247_v54 = vld [vmem:[%s5008_s0 + $0x6c0] sm:$0xff] }
  0xb8   :  { %1220 = vmatmul.mubr.f32.gmra.mrb[74].mxu0 %v119_v62  ;;  %2979 = vmatprep.subr.bf16.mxu1 %v2978_v58  ;;  %v263_v58 = vld [vmem:[%s5008_s0 + $0x740] sm:$0xff] }
  0xb9   :  { %1224 = vmatprep.mubr.f32.mxu0 %v136_v2  ;;  %2949 = vmatpush3.bf16.msra.mxu0 %v2948_v4  ;;  %v279_v62 = vld [vmem:[%s5008_s0 + $0x7c0] sm:$0xff]  ;;  %v60_v4 = vld [vmem:[%s5008_s0 + $0xe8] sm:$0xff] }
  0xba   :  { %1365 = vmatmul.mubr.f32.gmra.mrb[74].mxu1 %v121_v1  ;;  %2951 = vmatprep.subr.bf16.mxu0 %v2950_v6  ;;  %v46_v1 = vld [vmem:[%s5008_s0 + $0x78] sm:$0xff]  ;;  %v43_v2 = vld [vmem:[%s5008_s0 + $0x60] sm:$0xff] }
  0xbb   :  { %1369 = vmatprep.mubr.f32.mxu1 %v138_v3  ;;  %2981 = vmatpush3.bf16.msra.mxu1 %v2980_v5  ;;  %v45_v3 = vld [vmem:[%s5008_s0 + $0x70] sm:$0xff]  ;;  %v62_v5 = vld [vmem:[%s5008_s0 + $0xf8] sm:$0xff]  ;;  %v59_v6 = vld [vmem:[%s5008_s0 + $0xe0] sm:$0xff] }
  0xbc   :  { %1225 = vmatmul.mubr.f32.gmra.mrb[76].mxu0 %v135_v14  ;;  %2983 = vmatprep.subr.bf16.mxu1 %v2982_v10  ;;  %v75_v10 = vld [vmem:[%s5008_s0 + $0x160] sm:$0xff] }
  0xbd   :  { %1229 = vmatprep.mubr.f32.mxu0 %v152_v18  ;;  %2953 = vmatpush3.bf16.msra.mxu0 %v2952_v19  ;;  %v91_v14 = vld [vmem:[%s5008_s0 + $0x1e0] sm:$0xff]  ;;  %v109_v19 = vld [vmem:[%s5008_s0 + $0x270] sm:$0xff] }
  0xbe   :  { %1370 = vmatmul.mubr.f32.gmra.mrb[76].mxu1 %v137_v17  ;;  %2955 = vmatprep.subr.bf16.mxu0 %v2954_v22  ;;  %v110_v17 = vld [vmem:[%s5008_s0 + $0x278] sm:$0xff]  ;;  %v107_v18 = vld [vmem:[%s5008_s0 + $0x260] sm:$0xff] }
  0xbf   :  { %1374 = vmatprep.mubr.f32.mxu1 %v154_v20  ;;  %2985 = vmatpush3.bf16.msra.mxu1 %v2984_v21  ;;  %v124_v20 = vld [vmem:[%s5008_s0 + $0x2e8] sm:$0xff]  ;;  %v126_v21 = vld [vmem:[%s5008_s0 + $0x2f8] sm:$0xff]  ;;  %v123_v22 = vld [vmem:[%s5008_s0 + $0x2e0] sm:$0xff] }
  0xc0   :  { %1230 = vmatmul.mubr.f32.gmra.mrb[78].mxu0 %v151_v28  ;;  %2987 = vmatprep.subr.bf16.mxu1 %v2986_v25 }
  0xc1   :  { %1234 = vmatprep.mubr.f32.mxu0 %v168_v30  ;;  %2957 = vmatpush3.bf16.msra.mxu0 %v2956_v31 }
  0xc2   :  { %1375 = vmatmul.mubr.f32.gmra.mrb[78].mxu1 %v153_v29 }
  0xc3   :  { %1379 = vmatprep.mubr.f32.mxu1 %v170_v32  ;;  %2989 = vmatpush3.bf16.msra.mxu1 %v2988_v33  ;;  %v139_v32 = vld [vmem:[%s5008_s0 + $0x360] sm:$0xff] }
  0xc4   :  { %1235 = vmatmul.mubr.f32.gmra.mrb[80].mxu0 %v167_v34  ;;  %v141_v34 = vld [vmem:[%s5008_s0 + $0x370] sm:$0xff] }
  0xc5   :  { %1239 = vmatprep.mubr.f32.mxu0 %v184_v36 }
  0xc6   :  { %1380 = vmatmul.mubr.f32.gmra.mrb[80].mxu1 %v169_v35  ;;  %v156_v35 = vld [vmem:[%s5008_s0 + $0x3e8] sm:$0xff] }
  0xc7   :  { %1384 = vmatprep.mubr.f32.mxu1 %v186_v37 }
  0xc8   :  { %1240 = vmatmul.mubr.f32.gmra.mrb[82].mxu0 %v183_v38  ;;  %v158_v38 = vld [vmem:[%s5008_s0 + $0x3f8] sm:$0xff] }
  0xc9   :  { %1244 = vmatprep.mubr.f32.mxu0 %v200_v40 }
  0xca   :  { %1385 = vmatmul.mubr.f32.gmra.mrb[82].mxu1 %v185_v39 }
  0xcb   :  { %1389 = vmatprep.mubr.f32.mxu1 %v202_v41 }
  0xcc   :  { %1245 = vmatmul.mubr.f32.gmra.mrb[84].mxu0 %v199_v42 }
  0xcd   :  { %1249 = vmatprep.mubr.f32.mxu0 %v216_v44  ;;  %v155_v44 = vld [vmem:[%s5008_s0 + $0x3e0] sm:$0xff] }
  0xce   :  { %1390 = vmatmul.mubr.f32.gmra.mrb[84].mxu1 %v201_v43 }
  0xcf   :  { %1394 = vmatprep.mubr.f32.mxu1 %v218_v45 }
  0xd0   :  { %1250 = vmatmul.mubr.f32.gmra.mrb[86].mxu0 %v215_v46  ;;  %v157_v46 = vld [vmem:[%s5008_s0 + $0x3f0] sm:$0xff] }
  0xd1   :  { %1254 = vmatprep.mubr.f32.mxu0 %v232_v48 }
  0xd2   :  { %1395 = vmatmul.mubr.f32.gmra.mrb[86].mxu1 %v217_v47  ;;  %v172_v47 = vld [vmem:[%s5008_s0 + $0x468] sm:$0xff] }
  0xd3   :  { %1399 = vmatprep.mubr.f32.mxu1 %v234_v49 }
  0xd4   :  { %1255 = vmatmul.mubr.f32.gmra.mrb[88].mxu0 %v231_v50  ;;  %v174_v50 = vld [vmem:[%s5008_s0 + $0x478] sm:$0xff] }
  0xd5   :  { %1259 = vmatprep.mubr.f32.mxu0 %v248_v52 }
  0xd6   :  { %1400 = vmatmul.mubr.f32.gmra.mrb[88].mxu1 %v233_v51 }
  0xd7   :  { %1404 = vmatprep.mubr.f32.mxu1 %v250_v53 }
  0xd8   :  { %1260 = vmatmul.mubr.f32.gmra.mrb[90].mxu0 %v247_v54 }
  0xd9   :  { %1264 = vmatprep.mubr.f32.mxu0 %v264_v56  ;;  %v171_v56 = vld [vmem:[%s5008_s0 + $0x460] sm:$0xff] }
  0xda   :  { %1405 = vmatmul.mubr.f32.gmra.mrb[90].mxu1 %v249_v55 }
  0xdb   :  { %1409 = vmatprep.mubr.f32.mxu1 %v266_v57 }
  0xdc   :  { %1265 = vmatmul.mubr.f32.gmra.mrb[92].mxu0 %v263_v58  ;;  %v173_v58 = vld [vmem:[%s5008_s0 + $0x470] sm:$0xff] }
  0xdd   :  { %1269 = vmatprep.mubr.f32.mxu0 %v280_v60 }
  0xde   :  { %1410 = vmatmul.mubr.f32.gmra.mrb[92].mxu1 %v265_v59  ;;  %v188_v59 = vld [vmem:[%s5008_s0 + $0x4e8] sm:$0xff] }
  0xdf   :  { %1414 = vmatprep.mubr.f32.mxu1 %v282_v61 }
  0xe0   :  { %1270 = vmatmul.mubr.f32.gmra.mrb[94].mxu0 %v279_v62  ;;  %v190_v62 = vld [vmem:[%s5008_s0 + $0x4f8] sm:$0xff] }
  0xe1   :  { %1484 = vmatprep.mubr.f32.mxu0 %v44_v0 }
  0xe2   :  { %1415 = vmatmul.mubr.f32.gmra.mrb[94].mxu1 %v281_v63 }
  0xe3   :  { %1629 = vmatprep.mubr.f32.mxu1 %v46_v1 }
  0xe4   :  { %1485 = vmatmul.mubr.f32.vlgmr.msra.gmra.mrb[96].mxu0 %v43_v2 }
  0xe5   :  { %1489 = vmatprep.mubr.f32.mxu0 %v60_v4  ;;  %v187_v4 = vld [vmem:[%s5008_s0 + $0x4e0] sm:$0xff] }
  0xe6   :  { %1630 = vmatmul.mubr.f32.vlgmr.msra.gmra.mrb[96].mxu1 %v45_v3 }
  0xe7   :  { %1634 = vmatprep.mubr.f32.mxu1 %v62_v5 }
  0xe8   :  { %1490 = vmatmul.mubr.f32.gmra.mrb[98].mxu0 %v59_v6  ;;  %v189_v6 = vld [vmem:[%s5008_s0 + $0x4f0] sm:$0xff] }
  0xe9   :  { %1494 = vmatprep.mubr.f32.mxu0 %v76_v8 }
  0xea   :  { %1635 = vmatmul.mubr.f32.gmra.mrb[98].mxu1 %v61_v7  ;;  %v204_v7 = vld [vmem:[%s5008_s0 + $0x568] sm:$0xff] }
  0xeb   :  { %1639 = vmatprep.mubr.f32.mxu1 %v78_v9 }
  0xec   :  { %1495 = vmatmul.mubr.f32.gmra.mrb[100].mxu0 %v75_v10  ;;  %v206_v10 = vld [vmem:[%s5008_s0 + $0x578] sm:$0xff] }
  0xed   :  { %1499 = vmatprep.mubr.f32.mxu0 %v92_v12 }
  0xee   :  { %1640 = vmatmul.mubr.f32.gmra.mrb[100].mxu1 %v77_v11 }
  0xef   :  { %1644 = vmatprep.mubr.f32.mxu1 %v94_v13 }
  0xf0   :  { %1500 = vmatmul.mubr.f32.gmra.mrb[102].mxu0 %v91_v14 }
  0xf1   :  { %1504 = vmatprep.mubr.f32.mxu0 %v108_v16  ;;  %v203_v16 = vld [vmem:[%s5008_s0 + $0x560] sm:$0xff] }
  0xf2   :  { %1645 = vmatmul.mubr.f32.gmra.mrb[102].mxu1 %v93_v15 }
  0xf3   :  { %1649 = vmatprep.mubr.f32.mxu1 %v110_v17 }
  0xf4   :  { %1505 = vmatmul.mubr.f32.gmra.mrb[104].mxu0 %v107_v18  ;;  %v205_v18 = vld [vmem:[%s5008_s0 + $0x570] sm:$0xff] }
  0xf5   :  { %1509 = vmatprep.mubr.f32.mxu0 %v124_v20 }
  0xf6   :  { %1650 = vmatmul.mubr.f32.gmra.mrb[104].mxu1 %v109_v19  ;;  %v220_v19 = vld [vmem:[%s5008_s0 + $0x5e8] sm:$0xff] }
  0xf7   :  { %1654 = vmatprep.mubr.f32.mxu1 %v126_v21  ;;  %v2074_v25 = vpop.f32.mrb[0].mxu0 }
  0xf8   :  { %v2075_v28 = vpop.f32.mrb[1].mxu0  ;;  %1510 = vmatmul.mubr.f32.gmra.mrb[106].mxu0 %v123_v22  ;;  %v222_v22 = vld [vmem:[%s5008_s0 + $0x5f8] sm:$0xff] }
  0xf9   :  { %v2154_v29 = vpop.f32.mrb[0].mxu1  ;;  %v2076_v30 = vadd.f32 %v2075_v28, %v2074_v25  ;;  %1514 = vmatprep.mubr.f32.mxu0 %v140_v24 }
  0xfa   :  { %v2155_v31 = vpop.f32.mrb[1].mxu1  ;;  %1655 = vmatmul.mubr.f32.gmra.mrb[106].mxu1 %v125_v23 }
  0xfb   :  { %v2156_v33 = vadd.f32 %v2155_v31, %v2154_v29  ;;  %1659 = vmatprep.mubr.f32.mxu1 %v142_v26  ;;  %v617_v36 = vadd.f32 %v2076_v30, %v4492_v27  ;;  %v2077_v37 = vpop.f32.mrb[2].mxu0  ;;  %v219_v29 = vld [vmem:[%s5008_s0 + $0x5e0] sm:$0xff]  ;;  %v221_v31 = vld [vmem:[%s5008_s0 + $0x5f0] sm:$0xff] }
  0xfc   :  { %v2078_v39 = vpop.f32.mrb[3].mxu0  ;;  %1515 = vmatmul.mubr.f32.gmra.mrb[108].mxu0 %v139_v32  ;;  %v236_v32 = vld [vmem:[%s5008_s0 + $0x668] sm:$0xff] }
  0xfd   :  { %v2157_v40 = vpop.f32.mrb[2].mxu1  ;;  %v4507_v41 = vadd.f32 %v2156_v33, %v617_v36  ;;  %v2079_v42 = vadd.f32 %v2078_v39, %v2077_v37  ;;  %1519 = vmatprep.mubr.f32.mxu0 %v156_v35  ;;  %v238_v35 = vld [vmem:[%s5008_s0 + $0x678] sm:$0xff] }
  0xfe   :  { %v2158_v43 = vpop.f32.mrb[3].mxu1  ;;  %1660 = vmatmul.mubr.f32.gmra.mrb[108].mxu1 %v141_v34 }
  0xff   :  { %v2159_v45 = vadd.f32 %v2158_v43, %v2157_v40  ;;  %1664 = vmatprep.mubr.f32.mxu1 %v158_v38  ;;  %v622_v48 = vadd.f32 %v2079_v42, %v4492_v27  ;;  %v2080_v49 = vpop.f32.mrb[4].mxu0  ;;  %v235_v42 = vld [vmem:[%s5008_s0 + $0x660] sm:$0xff] }
 0x100   :  { %v2081_v51 = vpop.f32.mrb[5].mxu0  ;;  %1520 = vmatmul.mubr.f32.gmra.mrb[110].mxu0 %v155_v44  ;;  %v237_v44 = vld [vmem:[%s5008_s0 + $0x670] sm:$0xff] }
 0x101   :  { %v2160_v52 = vpop.f32.mrb[4].mxu1  ;;  %v4522_v53 = vadd.f32 %v2159_v45, %v622_v48  ;;  %v2082_v54 = vadd.f32 %v2081_v51, %v2080_v49  ;;  %1524 = vmatprep.mubr.f32.mxu0 %v172_v47  ;;  %v252_v45 = vld [vmem:[%s5008_s0 + $0x6e8] sm:$0xff]  ;;  %v254_v48 = vld [vmem:[%s5008_s0 + $0x6f8] sm:$0xff] }
 0x102   :  { %v2161_v55 = vpop.f32.mrb[5].mxu1  ;;  %1665 = vmatmul.mubr.f32.gmra.mrb[110].mxu1 %v157_v46 }
 0x103   :  { %v2162_v57 = vadd.f32 %v2161_v55, %v2160_v52  ;;  %1669 = vmatprep.mubr.f32.mxu1 %v174_v50  ;;  %v627_v60 = vadd.f32 %v2082_v54, %v4492_v27  ;;  %v2083_v61 = vpop.f32.mrb[6].mxu0  ;;  %v251_v55 = vld [vmem:[%s5008_s0 + $0x6e0] sm:$0xff] }
 0x104   :  { %v2084_v63 = vpop.f32.mrb[7].mxu0  ;;  %1525 = vmatmul.mubr.f32.gmra.mrb[112].mxu0 %v171_v56 }
 0x105   :  { %v2163_v0 = vpop.f32.mrb[6].mxu1  ;;  %v4537_v1 = vadd.f32 %v2162_v57, %v627_v60  ;;  %v2085_v2 = vadd.f32 %v2084_v63, %v2083_v61  ;;  %1529 = vmatprep.mubr.f32.mxu0 %v188_v59  ;;  %v253_v57 = vld [vmem:[%s5008_s0 + $0x6f0] sm:$0xff]  ;;  %v270_v61 = vld [vmem:[%s5008_s0 + $0x778] sm:$0xff] }
 0x106   :  { %v2164_v3 = vpop.f32.mrb[7].mxu1  ;;  %1670 = vmatmul.mubr.f32.gmra.mrb[112].mxu1 %v173_v58  ;;  %v268_v58 = vld [vmem:[%s5008_s0 + $0x768] sm:$0xff] }
 0x107   :  { %v2165_v5 = vadd.f32 %v2164_v3, %v2163_v0  ;;  %1674 = vmatprep.mubr.f32.mxu1 %v190_v62  ;;  %v632_v8 = vadd.f32 %v2085_v2, %v4492_v27  ;;  %v2086_v9 = vpop.f32.mrb[8].mxu0 }
 0x108   :  { %v2087_v11 = vpop.f32.mrb[9].mxu0  ;;  %1530 = vmatmul.mubr.f32.gmra.mrb[114].mxu0 %v187_v4  ;;  %v267_v4 = vld [vmem:[%s5008_s0 + $0x760] sm:$0xff] }
 0x109   :  { %v2166_v12 = vpop.f32.mrb[8].mxu1  ;;  %v4552_v13 = vadd.f32 %v2165_v5, %v632_v8  ;;  %v2088_v14 = vadd.f32 %v2087_v11, %v2086_v9  ;;  %1534 = vmatprep.mubr.f32.mxu0 %v204_v7  ;;  %v284_v7 = vld [vmem:[%s5008_s0 + $0x7e8] sm:$0xff] }
 0x10a   :  { %v2167_v15 = vpop.f32.mrb[9].mxu1  ;;  %1675 = vmatmul.mubr.f32.gmra.mrb[114].mxu1 %v189_v6  ;;  %v269_v6 = vld [vmem:[%s5008_s0 + $0x770] sm:$0xff] }
 0x10b   :  { %v2168_v17 = vadd.f32 %v2167_v15, %v2166_v12  ;;  %1679 = vmatprep.mubr.f32.mxu1 %v206_v10  ;;  %v637_v20 = vadd.f32 %v2088_v14, %v4492_v27  ;;  %v2089_v21 = vpop.f32.mrb[10].mxu0  ;;  %v286_v10 = vld [vmem:[%s5008_s0 + $0x7f8] sm:$0xff] }
 0x10c   :  { %v2090_v23 = vpop.f32.mrb[11].mxu0  ;;  %1535 = vmatmul.mubr.f32.gmra.mrb[116].mxu0 %v203_v16 }
 0x10d   :  { %v2169_v24 = vpop.f32.mrb[10].mxu1  ;;  %v4567_v25 = vadd.f32 %v2168_v17, %v637_v20  ;;  %v2091_v26 = vadd.f32 %v2090_v23, %v2089_v21  ;;  %1539 = vmatprep.mubr.f32.mxu0 %v220_v19  ;;  %v283_v17 = vld [vmem:[%s5008_s0 + $0x7e0] sm:$0xff]  ;;  %v285_v19 = vld [vmem:[%s5008_s0 + $0x7f0] sm:$0xff] }
 0x10e   :  { %v2170_v28 = vpop.f32.mrb[11].mxu1  ;;  %1680 = vmatmul.mubr.f32.gmra.mrb[116].mxu1 %v205_v18 }
 0x10f   :  { %v2171_v30 = vadd.f32 %v2170_v28, %v2169_v24  ;;  %1684 = vmatprep.mubr.f32.mxu1 %v222_v22  ;;  %v642_v33 = vadd.f32 %v2091_v26, %v4492_v27  ;;  %v2092_v34 = vpop.f32.mrb[12].mxu0 }
 0x110   :  { %v2093_v36 = vpop.f32.mrb[13].mxu0  ;;  %1540 = vmatmul.mubr.f32.gmra.mrb[118].mxu0 %v219_v29 }
 0x111   :  { %v2172_v37 = vpop.f32.mrb[12].mxu1  ;;  %v4582_v38 = vadd.f32 %v2171_v30, %v642_v33  ;;  %v2094_v39 = vadd.f32 %v2093_v36, %v2092_v34  ;;  %1544 = vmatprep.mubr.f32.mxu0 %v236_v32 }
 0x112   :  { %v2173_v40 = vpop.f32.mrb[13].mxu1  ;;  %1685 = vmatmul.mubr.f32.gmra.mrb[118].mxu1 %v221_v31 }
 0x113   :  { %v2174_v43 = vadd.f32 %v2173_v40, %v2172_v37  ;;  %1689 = vmatprep.mubr.f32.mxu1 %v238_v35  ;;  %v647_v46 = vadd.f32 %v2094_v39, %v4492_v27  ;;  %v2095_v47 = vpop.f32.mrb[14].mxu0 }
 0x114   :  { %v2096_v49 = vpop.f32.mrb[15].mxu0  ;;  %1545 = vmatmul.mubr.f32.gmra.mrb[120].mxu0 %v235_v42 }
 0x115   :  { %v2175_v50 = vpop.f32.mrb[14].mxu1  ;;  %v4597_v51 = vadd.f32 %v2174_v43, %v647_v46  ;;  %v2097_v52 = vadd.f32 %v2096_v49, %v2095_v47  ;;  %1549 = vmatprep.mubr.f32.mxu0 %v252_v45 }
 0x116   :  { %v2176_v54 = vpop.f32.mrb[15].mxu1  ;;  %1690 = vmatmul.mubr.f32.gmra.mrb[120].mxu1 %v237_v44 }
 0x117   :  { %v2177_v56 = vadd.f32 %v2176_v54, %v2175_v50  ;;  %1694 = vmatprep.mubr.f32.mxu1 %v254_v48  ;;  %v652_v59 = vadd.f32 %v2097_v52, %v4492_v27  ;;  %v2098_v60 = vpop.f32.mrb[16].mxu0 }
 0x118   :  { %v2099_v62 = vpop.f32.mrb[17].mxu0  ;;  %1550 = vmatmul.mubr.f32.gmra.mrb[122].mxu0 %v251_v55 }
 0x119   :  { %v2178_v63 = vpop.f32.mrb[16].mxu1  ;;  %v4612_v0 = vadd.f32 %v2177_v56, %v652_v59  ;;  %v2100_v2 = vadd.f32 %v2099_v62, %v2098_v60  ;;  %1554 = vmatprep.mubr.f32.mxu0 %v268_v58 }
 0x11a   :  { %v2179_v3 = vpop.f32.mrb[17].mxu1  ;;  %1695 = vmatmul.mubr.f32.gmra.mrb[122].mxu1 %v253_v57 }
 0x11b   :  { %v2180_v5 = vadd.f32 %v2179_v3, %v2178_v63  ;;  %1699 = vmatprep.mubr.f32.mxu1 %v270_v61  ;;  %v657_v8 = vadd.f32 %v2100_v2, %v4492_v27  ;;  %v2101_v9 = vpop.f32.mrb[18].mxu0 }
 0x11c   :  { %v2102_v11 = vpop.f32.mrb[19].mxu0  ;;  %1555 = vmatmul.mubr.f32.gmra.mrb[124].mxu0 %v267_v4 }
 0x11d   :  { %v2181_v12 = vpop.f32.mrb[18].mxu1  ;;  %v4627_v14 = vadd.f32 %v2180_v5, %v657_v8  ;;  %v2103_v15 = vadd.f32 %v2102_v11, %v2101_v9  ;;  %1559 = vmatprep.mubr.f32.mxu0 %v284_v7 }
 0x11e   :  { %v2182_v16 = vpop.f32.mrb[19].mxu1  ;;  %1700 = vmatmul.mubr.f32.gmra.mrb[124].mxu1 %v269_v6 }
 0x11f   :  { %v2183_v18 = vadd.f32 %v2182_v16, %v2181_v12  ;;  %1704 = vmatprep.mubr.f32.mxu1 %v286_v10  ;;  %v662_v20 = vadd.f32 %v2103_v15, %v4492_v27  ;;  %v2104_v21 = vpop.f32.mrb[20].mxu0 }
 0x120   :  { %v2105_v22 = vpop.f32.mrb[21].mxu0  ;;  %1560 = vmatmul.mubr.f32.gmra.mrb[126].mxu0 %v283_v17 }
 0x121   :  { %v2184_v23 = vpop.f32.mrb[20].mxu1  ;;  %v4636_v24 = vadd.f32 %v2183_v18, %v662_v20  ;;  %v2106_v26 = vadd.f32 %v2105_v22, %v2104_v21 }
 0x122   :  { %v2185_v28 = vpop.f32.mrb[21].mxu1  ;;  %1705 = vmatmul.mubr.f32.gmra.mrb[126].mxu1 %v285_v19 }
 0x123   :  { %v2186_v29 = vadd.f32 %v2185_v28, %v2184_v23  ;;  %v667_v30 = vadd.f32 %v2106_v26, %v4492_v27  ;;  %v2107_v31 = vpop.f32.mrb[22].mxu0 }
 0x124   :  { %v2108_v32 = vpop.f32.mrb[23].mxu0 }
 0x125   :  { %v2187_v33 = vpop.f32.mrb[22].mxu1  ;;  %v4639_v34 = vadd.f32 %v2186_v29, %v667_v30  ;;  %v2109_v35 = vadd.f32 %v2108_v32, %v2107_v31 }
 0x126   :  { %v2188_v36 = vpop.f32.mrb[23].mxu1 }
 0x127   :  { %v2189_v37 = vadd.f32 %v2188_v36, %v2187_v33  ;;  %v672_v39 = vadd.f32 %v2109_v35, %v4492_v27  ;;  %v2110_v40 = vpop.f32.mrb[24].mxu0 }
 0x128   :  { %v2111_v42 = vpop.f32.mrb[25].mxu0 }
 0x129   :  { %v2190_v43 = vpop.f32.mrb[24].mxu1  ;;  %v4642_v44 = vadd.f32 %v2189_v37, %v672_v39  ;;  %v2112_v45 = vadd.f32 %v2111_v42, %v2110_v40 }
 0x12a   :  { %v2191_v46 = vpop.f32.mrb[25].mxu1 }
 0x12b   :  { %v2192_v47 = vadd.f32 %v2191_v46, %v2190_v43  ;;  %v677_v48 = vadd.f32 %v2112_v45, %v4492_v27  ;;  %v2113_v49 = vpop.f32.mrb[26].mxu0 }
 0x12c   :  { %v2114_v50 = vpop.f32.mrb[27].mxu0 }
 0x12d   :  { %v2193_v52 = vpop.f32.mrb[26].mxu1  ;;  %v4645_v54 = vadd.f32 %v2192_v47, %v677_v48  ;;  %v2115_v55 = vadd.f32 %v2114_v50, %v2113_v49 }
 0x12e   :  { %v2194_v56 = vpop.f32.mrb[27].mxu1 }
 0x12f   :  { %v2195_v57 = vadd.f32 %v2194_v56, %v2193_v52  ;;  %v682_v58 = vadd.f32 %v2115_v55, %v4492_v27  ;;  %v2116_v59 = vpop.f32.mrb[28].mxu0 }
 0x130   :  { %v2117_v60 = vpop.f32.mrb[29].mxu0 }
 0x131   :  { %v2196_v61 = vpop.f32.mrb[28].mxu1  ;;  %v4648_v62 = vadd.f32 %v2195_v57, %v682_v58  ;;  %v2118_v63 = vadd.f32 %v2117_v60, %v2116_v59 }
 0x132   :  { %v2197_v2 = vpop.f32.mrb[29].mxu1 }
 0x133   :  { %v2198_v3 = vadd.f32 %v2197_v2, %v2196_v61  ;;  %v687_v4 = vadd.f32 %v2118_v63, %v4492_v27  ;;  %v2119_v5 = vpop.f32.mrb[30].mxu0 }
 0x134   :  { %v2120_v6 = vpop.f32.mrb[31].mxu0 }
 0x135   :  { %v2199_v7 = vpop.f32.mrb[30].mxu1  ;;  %v4651_v8 = vadd.f32 %v2198_v3, %v687_v4  ;;  %v2121_v9 = vadd.f32 %v2120_v6, %v2119_v5 }
 0x136   :  { %v2200_v10 = vpop.f32.mrb[31].mxu1 }
 0x137   :  { %v2201_v11 = vadd.f32 %v2200_v10, %v2199_v7  ;;  %v692_v12 = vadd.f32 %v2121_v9, %v4492_v27  ;;  %v2234_v15 = vpop.f32.mrb[32].mxu0 }
 0x138   :  { %v2235_v16 = vpop.f32.mrb[33].mxu0 }
 0x139   :  { %v2314_v17 = vpop.f32.mrb[32].mxu1  ;;  %v4654_v18 = vadd.f32 %v2201_v11, %v692_v12  ;;  %v2236_v19 = vadd.f32 %v2235_v16, %v2234_v15 }
 0x13a   :  { %v2315_v20 = vpop.f32.mrb[33].mxu1 }
 0x13b   :  { %v2316_v21 = vadd.f32 %v2315_v20, %v2314_v17  ;;  %v907_v22 = vadd.f32 %v2236_v19, %v4507_v41  ;;  %v2237_v23 = vpop.f32.mrb[34].mxu0 }
 0x13c   :  { %v2238_v26 = vpop.f32.mrb[35].mxu0 }
 0x13d   :  { %v2317_v28 = vpop.f32.mrb[34].mxu1  ;;  %v4657_v29 = vadd.f32 %v2316_v21, %v907_v22  ;;  %v2239_v30 = vadd.f32 %v2238_v26, %v2237_v23 }
 0x13e   :  { %v2318_v31 = vpop.f32.mrb[35].mxu1 }
 0x13f   :  { %v2319_v32 = vadd.f32 %v2318_v31, %v2317_v28  ;;  %v912_v27 = vadd.f32 %v2239_v30, %v4522_v53  ;;  %v2240_v33 = vpop.f32.mrb[36].mxu0 }
 0x140   :  { %v2241_v35 = vpop.f32.mrb[37].mxu0 }
 0x141   :  { %v2320_v36 = vpop.f32.mrb[36].mxu1  ;;  %v4660_v37 = vadd.f32 %v2319_v32, %v912_v27  ;;  %v2242_v39 = vadd.f32 %v2241_v35, %v2240_v33 }
 0x142   :  { %v2321_v40 = vpop.f32.mrb[37].mxu1 }
 0x143   :  { %v2322_v42 = vadd.f32 %v2321_v40, %v2320_v36  ;;  %v917_v41 = vadd.f32 %v2242_v39, %v4537_v1  ;;  %v2243_v43 = vpop.f32.mrb[38].mxu0 }
 0x144   :  { %v2244_v45 = vpop.f32.mrb[39].mxu0 }
 0x145   :  { %v2323_v46 = vpop.f32.mrb[38].mxu1  ;;  %v4663_v47 = vadd.f32 %v2322_v42, %v917_v41  ;;  %v2245_v48 = vadd.f32 %v2244_v45, %v2243_v43 }
 0x146   :  { %v2324_v49 = vpop.f32.mrb[39].mxu1 }
 0x147   :  { %v2325_v50 = vadd.f32 %v2324_v49, %v2323_v46  ;;  %v922_v53 = vadd.f32 %v2245_v48, %v4552_v13  ;;  %v2246_v52 = vpop.f32.mrb[40].mxu0 }
 0x148   :  { %v2247_v55 = vpop.f32.mrb[41].mxu0 }
 0x149   :  { %v2326_v56 = vpop.f32.mrb[40].mxu1  ;;  %v4666_v57 = vadd.f32 %v2325_v50, %v922_v53  ;;  %v2248_v58 = vadd.f32 %v2247_v55, %v2246_v52 }
 0x14a   :  { %v2327_v59 = vpop.f32.mrb[41].mxu1 }
 0x14b   :  { %v2328_v60 = vadd.f32 %v2327_v59, %v2326_v56  ;;  %v927_v1 = vadd.f32 %v2248_v58, %v4567_v25  ;;  %v2249_v61 = vpop.f32.mrb[42].mxu0 }
 0x14c   :  { %v2250_v63 = vpop.f32.mrb[43].mxu0 }
 0x14d   :  { %v2329_v2 = vpop.f32.mrb[42].mxu1  ;;  %v4669_v3 = vadd.f32 %v2328_v60, %v927_v1  ;;  %v2251_v4 = vadd.f32 %v2250_v63, %v2249_v61 }
 0x14e   :  { %v2330_v5 = vpop.f32.mrb[43].mxu1 }
 0x14f   :  { %v2331_v6 = vadd.f32 %v2330_v5, %v2329_v2  ;;  %v932_v13 = vadd.f32 %v2251_v4, %v4582_v38  ;;  %v2252_v7 = vpop.f32.mrb[44].mxu0 }
 0x150   :  { %v2253_v9 = vpop.f32.mrb[45].mxu0 }
 0x151   :  { %v2332_v10 = vpop.f32.mrb[44].mxu1  ;;  %v4672_v11 = vadd.f32 %v2331_v6, %v932_v13  ;;  %v2254_v12 = vadd.f32 %v2253_v9, %v2252_v7 }
 0x152   :  { %v2333_v15 = vpop.f32.mrb[45].mxu1 }
 0x153   :  { %v2334_v16 = vadd.f32 %v2333_v15, %v2332_v10  ;;  %v937_v25 = vadd.f32 %v2254_v12, %v4597_v51  ;;  %v2255_v17 = vpop.f32.mrb[46].mxu0 }
 0x154   :  { %v2256_v19 = vpop.f32.mrb[47].mxu0 }
 0x155   :  { %v2335_v20 = vpop.f32.mrb[46].mxu1  ;;  %v4675_v21 = vadd.f32 %v2334_v16, %v937_v25  ;;  %v2257_v22 = vadd.f32 %v2256_v19, %v2255_v17 }
 0x156   :  { %v2336_v23 = vpop.f32.mrb[47].mxu1 }
 0x157   :  { %v2337_v26 = vadd.f32 %v2336_v23, %v2335_v20  ;;  %v942_v38 = vadd.f32 %v2257_v22, %v4612_v0  ;;  %v2258_v28 = vpop.f32.mrb[48].mxu0 }
 0x158   :  { %v2259_v30 = vpop.f32.mrb[49].mxu0 }
 0x159   :  { %v2338_v31 = vpop.f32.mrb[48].mxu1  ;;  %v4678_v32 = vadd.f32 %v2337_v26, %v942_v38  ;;  %v2260_v27 = vadd.f32 %v2259_v30, %v2258_v28 }
 0x15a   :  { %v2339_v33 = vpop.f32.mrb[49].mxu1 }
 0x15b   :  { %v2340_v35 = vadd.f32 %v2339_v33, %v2338_v31  ;;  %v947_v51 = vadd.f32 %v2260_v27, %v4627_v14  ;;  %v2261_v36 = vpop.f32.mrb[50].mxu0 }
 0x15c   :  { %v2262_v39 = vpop.f32.mrb[51].mxu0 }
 0x15d   :  { %v2341_v40 = vpop.f32.mrb[50].mxu1  ;;  %v4681_v42 = vadd.f32 %v2340_v35, %v947_v51  ;;  %v2263_v41 = vadd.f32 %v2262_v39, %v2261_v36 }
 0x15e   :  { %v2342_v43 = vpop.f32.mrb[51].mxu1 }
 0x15f   :  { %v2343_v45 = vadd.f32 %v2342_v43, %v2341_v40  ;;  %v952_v0 = vadd.f32 %v2263_v41, %v4636_v24  ;;  %v2264_v46 = vpop.f32.mrb[52].mxu0 }
 0x160   :  { %v2265_v48 = vpop.f32.mrb[53].mxu0 }
 0x161   :  { %v2344_v49 = vpop.f32.mrb[52].mxu1  ;;  %v4684_v50 = vadd.f32 %v2343_v45, %v952_v0  ;;  %v2266_v53 = vadd.f32 %v2265_v48, %v2264_v46 }
 0x162   :  { %v2345_v52 = vpop.f32.mrb[53].mxu1 }
 0x163   :  { %v2346_v55 = vadd.f32 %v2345_v52, %v2344_v49  ;;  %v957_v14 = vadd.f32 %v2266_v53, %v4639_v34  ;;  %v2267_v56 = vpop.f32.mrb[54].mxu0 }
 0x164   :  { %v2268_v58 = vpop.f32.mrb[55].mxu0 }
 0x165   :  { %v2347_v59 = vpop.f32.mrb[54].mxu1  ;;  %v4687_v60 = vadd.f32 %v2346_v55, %v957_v14  ;;  %v2269_v1 = vadd.f32 %v2268_v58, %v2267_v56 }
 0x166   :  { %v2348_v61 = vpop.f32.mrb[55].mxu1 }
 0x167   :  { %v2349_v63 = vadd.f32 %v2348_v61, %v2347_v59  ;;  %v962_v24 = vadd.f32 %v2269_v1, %v4642_v44  ;;  %v2270_v2 = vpop.f32.mrb[56].mxu0 }
 0x168   :  { %v2271_v4 = vpop.f32.mrb[57].mxu0 }
 0x169   :  { %v2350_v5 = vpop.f32.mrb[56].mxu1  ;;  %v4690_v6 = vadd.f32 %v2349_v63, %v962_v24  ;;  %v2272_v13 = vadd.f32 %v2271_v4, %v2270_v2 }
 0x16a   :  { %v2351_v7 = vpop.f32.mrb[57].mxu1 }
 0x16b   :  { %v2352_v9 = vadd.f32 %v2351_v7, %v2350_v5  ;;  %v967_v34 = vadd.f32 %v2272_v13, %v4645_v54  ;;  %v2273_v10 = vpop.f32.mrb[58].mxu0 }
 0x16c   :  { %v2274_v12 = vpop.f32.mrb[59].mxu0 }
 0x16d   :  { %v2353_v15 = vpop.f32.mrb[58].mxu1  ;;  %v4693_v16 = vadd.f32 %v2352_v9, %v967_v34  ;;  %v2275_v25 = vadd.f32 %v2274_v12, %v2273_v10 }
 0x16e   :  { %v2354_v17 = vpop.f32.mrb[59].mxu1 }
 0x16f   :  { %v2355_v19 = vadd.f32 %v2354_v17, %v2353_v15  ;;  %v972_v44 = vadd.f32 %v2275_v25, %v4648_v62  ;;  %v2276_v20 = vpop.f32.mrb[60].mxu0 }
 0x170   :  { %v2277_v22 = vpop.f32.mrb[61].mxu0 }
 0x171   :  { %v2356_v23 = vpop.f32.mrb[60].mxu1  ;;  %v4696_v26 = vadd.f32 %v2355_v19, %v972_v44  ;;  %v2278_v38 = vadd.f32 %v2277_v22, %v2276_v20 }
 0x172   :  { %v2357_v28 = vpop.f32.mrb[61].mxu1 }
 0x173   :  { %v2358_v30 = vadd.f32 %v2357_v28, %v2356_v23  ;;  %v977_v54 = vadd.f32 %v2278_v38, %v4651_v8  ;;  %v2279_v31 = vpop.f32.mrb[62].mxu0 }
 0x174   :  { %v2280_v27 = vpop.f32.mrb[63].mxu0 }
 0x175   :  { %v2359_v33 = vpop.f32.mrb[62].mxu1  ;;  %v4699_v35 = vadd.f32 %v2358_v30, %v977_v54  ;;  %v2281_v51 = vadd.f32 %v2280_v27, %v2279_v31 }
 0x176   :  { %v2360_v36 = vpop.f32.mrb[63].mxu1 }
 0x177   :  { %v2361_v39 = vadd.f32 %v2360_v36, %v2359_v33  ;;  %v982_v62 = vadd.f32 %v2281_v51, %v4654_v18  ;;  %v2394_v40 = vpop.f32.mrb[64].mxu0 }
 0x178   :  { %v2395_v41 = vpop.f32.mrb[65].mxu0 }
 0x179   :  { %v2474_v43 = vpop.f32.mrb[64].mxu1  ;;  %v4702_v45 = vadd.f32 %v2361_v39, %v982_v62  ;;  %v2396_v0 = vadd.f32 %v2395_v41, %v2394_v40 }
 0x17a   :  { %v2475_v46 = vpop.f32.mrb[65].mxu1 }
 0x17b   :  { %v2476_v48 = vadd.f32 %v2475_v46, %v2474_v43  ;;  %v1197_v8 = vadd.f32 %v2396_v0, %v4657_v29  ;;  %v2397_v49 = vpop.f32.mrb[66].mxu0 }
 0x17c   :  { %v2398_v53 = vpop.f32.mrb[67].mxu0 }
 0x17d   :  { %v2477_v52 = vpop.f32.mrb[66].mxu1  ;;  %v4705_v55 = vadd.f32 %v2476_v48, %v1197_v8  ;;  %v2399_v14 = vadd.f32 %v2398_v53, %v2397_v49 }
 0x17e   :  { %v2478_v56 = vpop.f32.mrb[67].mxu1 }
 0x17f   :  { %v2479_v58 = vadd.f32 %v2478_v56, %v2477_v52  ;;  %v1202_v18 = vadd.f32 %v2399_v14, %v4660_v37  ;;  %v2400_v59 = vpop.f32.mrb[68].mxu0 }
 0x180   :  { %v2401_v1 = vpop.f32.mrb[69].mxu0 }
 0x181   :  { %v2480_v61 = vpop.f32.mrb[68].mxu1  ;;  %v4708_v63 = vadd.f32 %v2479_v58, %v1202_v18  ;;  %v2402_v24 = vadd.f32 %v2401_v1, %v2400_v59 }
 0x182   :  { %v2481_v2 = vpop.f32.mrb[69].mxu1 }
 0x183   :  { %v2482_v4 = vadd.f32 %v2481_v2, %v2480_v61  ;;  %v1207_v29 = vadd.f32 %v2402_v24, %v4663_v47  ;;  %v2403_v5 = vpop.f32.mrb[70].mxu0 }
 0x184   :  { %v2404_v13 = vpop.f32.mrb[71].mxu0 }
 0x185   :  { %v2483_v7 = vpop.f32.mrb[70].mxu1  ;;  %v4711_v9 = vadd.f32 %v2482_v4, %v1207_v29  ;;  %v2405_v34 = vadd.f32 %v2404_v13, %v2403_v5 }
 0x186   :  { %v2484_v10 = vpop.f32.mrb[71].mxu1 }
 0x187   :  { %v2485_v12 = vadd.f32 %v2484_v10, %v2483_v7  ;;  %v1212_v37 = vadd.f32 %v2405_v34, %v4666_v57  ;;  %v2406_v15 = vpop.f32.mrb[72].mxu0 }
 0x188   :  { %v2407_v25 = vpop.f32.mrb[73].mxu0 }
 0x189   :  { %v2486_v17 = vpop.f32.mrb[72].mxu1  ;;  %v4714_v19 = vadd.f32 %v2485_v12, %v1212_v37  ;;  %v2408_v44 = vadd.f32 %v2407_v25, %v2406_v15 }
 0x18a   :  { %v2487_v20 = vpop.f32.mrb[73].mxu1 }
 0x18b   :  { %v2488_v22 = vadd.f32 %v2487_v20, %v2486_v17  ;;  %v1217_v47 = vadd.f32 %v2408_v44, %v4669_v3  ;;  %v2409_v23 = vpop.f32.mrb[74].mxu0 }
 0x18c   :  { %v2410_v38 = vpop.f32.mrb[75].mxu0 }
 0x18d   :  { %v2489_v28 = vpop.f32.mrb[74].mxu1  ;;  %v4717_v30 = vadd.f32 %v2488_v22, %v1217_v47  ;;  %v2411_v54 = vadd.f32 %v2410_v38, %v2409_v23 }
 0x18e   :  { %v2490_v31 = vpop.f32.mrb[75].mxu1 }
 0x18f   :  { %v2491_v27 = vadd.f32 %v2490_v31, %v2489_v28  ;;  %v1222_v57 = vadd.f32 %v2411_v54, %v4672_v11  ;;  %v2412_v33 = vpop.f32.mrb[76].mxu0 }
 0x190   :  { %v2413_v51 = vpop.f32.mrb[77].mxu0 }
 0x191   :  { %v2492_v36 = vpop.f32.mrb[76].mxu1  ;;  %v4720_v39 = vadd.f32 %v2491_v27, %v1222_v57  ;;  %v2414_v62 = vadd.f32 %v2413_v51, %v2412_v33 }
 0x192   :  { %v2493_v40 = vpop.f32.mrb[77].mxu1 }
 0x193   :  { %v2494_v41 = vadd.f32 %v2493_v40, %v2492_v36  ;;  %v1227_v3 = vadd.f32 %v2414_v62, %v4675_v21  ;;  %v2415_v43 = vpop.f32.mrb[78].mxu0 }
 0x194   :  { %v2416_v0 = vpop.f32.mrb[79].mxu0 }
 0x195   :  { %v2495_v46 = vpop.f32.mrb[78].mxu1  ;;  %v4723_v48 = vadd.f32 %v2494_v41, %v1227_v3  ;;  %v2417_v8 = vadd.f32 %v2416_v0, %v2415_v43 }
 0x196   :  { %v2496_v49 = vpop.f32.mrb[79].mxu1 }
 0x197   :  { %v2497_v53 = vadd.f32 %v2496_v49, %v2495_v46  ;;  %v1232_v11 = vadd.f32 %v2417_v8, %v4678_v32  ;;  %v2418_v52 = vpop.f32.mrb[80].mxu0 }
 0x198   :  { %v2419_v14 = vpop.f32.mrb[81].mxu0 }
 0x199   :  { %v2498_v56 = vpop.f32.mrb[80].mxu1  ;;  %v4726_v58 = vadd.f32 %v2497_v53, %v1232_v11  ;;  %v2420_v18 = vadd.f32 %v2419_v14, %v2418_v52 }
 0x19a   :  { %v2499_v59 = vpop.f32.mrb[81].mxu1 }
 0x19b   :  { %v2500_v1 = vadd.f32 %v2499_v59, %v2498_v56  ;;  %v1237_v21 = vadd.f32 %v2420_v18, %v4681_v42  ;;  %v2421_v61 = vpop.f32.mrb[82].mxu0 }
 0x19c   :  { %v2422_v24 = vpop.f32.mrb[83].mxu0 }
 0x19d   :  { %v2501_v2 = vpop.f32.mrb[82].mxu1  ;;  %v4729_v4 = vadd.f32 %v2500_v1, %v1237_v21  ;;  %v2423_v29 = vadd.f32 %v2422_v24, %v2421_v61 }
 0x19e   :  { %v2502_v5 = vpop.f32.mrb[83].mxu1 }
 0x19f   :  { %v2503_v13 = vadd.f32 %v2502_v5, %v2501_v2  ;;  %v1242_v32 = vadd.f32 %v2423_v29, %v4684_v50  ;;  %v2424_v7 = vpop.f32.mrb[84].mxu0 }
 0x1a0   :  { %v2425_v34 = vpop.f32.mrb[85].mxu0 }
 0x1a1   :  { %v2504_v10 = vpop.f32.mrb[84].mxu1  ;;  %v4732_v12 = vadd.f32 %v2503_v13, %v1242_v32  ;;  %v2426_v37 = vadd.f32 %v2425_v34, %v2424_v7 }
 0x1a2   :  { %v2505_v15 = vpop.f32.mrb[85].mxu1 }
 0x1a3   :  { %v2506_v25 = vadd.f32 %v2505_v15, %v2504_v10  ;;  %v1247_v42 = vadd.f32 %v2426_v37, %v4687_v60  ;;  %v2427_v17 = vpop.f32.mrb[86].mxu0 }
 0x1a4   :  { %v2428_v44 = vpop.f32.mrb[87].mxu0 }
 0x1a5   :  { %v2507_v20 = vpop.f32.mrb[86].mxu1  ;;  %v4735_v22 = vadd.f32 %v2506_v25, %v1247_v42  ;;  %v2429_v47 = vadd.f32 %v2428_v44, %v2427_v17 }
 0x1a6   :  { %v2508_v23 = vpop.f32.mrb[87].mxu1 }
 0x1a7   :  { %v2509_v38 = vadd.f32 %v2508_v23, %v2507_v20  ;;  %v1252_v50 = vadd.f32 %v2429_v47, %v4690_v6  ;;  %v2430_v28 = vpop.f32.mrb[88].mxu0 }
 0x1a8   :  { %v2431_v54 = vpop.f32.mrb[89].mxu0 }
 0x1a9   :  { %v2510_v31 = vpop.f32.mrb[88].mxu1  ;;  %v4738_v27 = vadd.f32 %v2509_v38, %v1252_v50  ;;  %v2432_v57 = vadd.f32 %v2431_v54, %v2430_v28 }
 0x1aa   :  { %v2511_v33 = vpop.f32.mrb[89].mxu1 }
 0x1ab   :  { %v2512_v51 = vadd.f32 %v2511_v33, %v2510_v31  ;;  %v1257_v60 = vadd.f32 %v2432_v57, %v4693_v16  ;;  %v2433_v36 = vpop.f32.mrb[90].mxu0 }
 0x1ac   :  { %v2434_v62 = vpop.f32.mrb[91].mxu0 }
 0x1ad   :  { %v2513_v40 = vpop.f32.mrb[90].mxu1  ;;  %v4741_v41 = vadd.f32 %v2512_v51, %v1257_v60  ;;  %v2435_v3 = vadd.f32 %v2434_v62, %v2433_v36 }
 0x1ae   :  { %v2514_v43 = vpop.f32.mrb[91].mxu1 }
 0x1af   :  { %v2515_v0 = vadd.f32 %v2514_v43, %v2513_v40  ;;  %v1262_v6 = vadd.f32 %v2435_v3, %v4696_v26  ;;  %v2436_v46 = vpop.f32.mrb[92].mxu0 }
 0x1b0   :  { %v2437_v8 = vpop.f32.mrb[93].mxu0 }
 0x1b1   :  { %v2516_v49 = vpop.f32.mrb[92].mxu1  ;;  %v4744_v53 = vadd.f32 %v2515_v0, %v1262_v6  ;;  %v2438_v11 = vadd.f32 %v2437_v8, %v2436_v46 }
 0x1b2   :  { %v2517_v52 = vpop.f32.mrb[93].mxu1 }
 0x1b3   :  { %v2518_v14 = vadd.f32 %v2517_v52, %v2516_v49  ;;  %v1267_v16 = vadd.f32 %v2438_v11, %v4699_v35  ;;  %v2439_v56 = vpop.f32.mrb[94].mxu0 }
 0x1b4   :  { %v2440_v18 = vpop.f32.mrb[95].mxu0 }
 0x1b5   :  { %v2519_v59 = vpop.f32.mrb[94].mxu1  ;;  %v4747_v1 = vadd.f32 %v2518_v14, %v1267_v16  ;;  %v2441_v21 = vadd.f32 %v2440_v18, %v2439_v56 }
 0x1b6   :  { %v2520_v61 = vpop.f32.mrb[95].mxu1 }
 0x1b7   :  { %v2521_v24 = vadd.f32 %v2520_v61, %v2519_v59  ;;  %v1272_v26 = vadd.f32 %v2441_v21, %v4702_v45  ;;  %v2554_v2 = vpop.f32.mrb[96].mxu0 }
 0x1b8   :  { %v2555_v29 = vpop.f32.mrb[97].mxu0 }
 0x1b9   :  { %v2634_v5 = vpop.f32.mrb[96].mxu1  ;;  %v4750_v13 = vadd.f32 %v2521_v24, %v1272_v26  ;;  %v2556_v32 = vadd.f32 %v2555_v29, %v2554_v2 }
 0x1ba   :  { %v2635_v7 = vpop.f32.mrb[97].mxu1 }
 0x1bb   :  { %v2636_v34 = vadd.f32 %v2635_v7, %v2634_v5  ;;  %v1487_v35 = vadd.f32 %v2556_v32, %v4705_v55  ;;  %v2557_v10 = vpop.f32.mrb[98].mxu0 }
 0x1bc   :  { %v2558_v37 = vpop.f32.mrb[99].mxu0 }
 0x1bd   :  { %v2637_v15 = vpop.f32.mrb[98].mxu1  ;;  %v4753_v25 = vadd.f32 %v2636_v34, %v1487_v35  ;;  %v2559_v42 = vadd.f32 %v2558_v37, %v2557_v10 }
 0x1be   :  { %v2638_v17 = vpop.f32.mrb[99].mxu1 }
 0x1bf   :  { %v2639_v44 = vadd.f32 %v2638_v17, %v2637_v15  ;;  %v1492_v45 = vadd.f32 %v2559_v42, %v4708_v63  ;;  %v2560_v20 = vpop.f32.mrb[100].mxu0 }
 0x1c0   :  { %v2561_v47 = vpop.f32.mrb[101].mxu0 }
 0x1c1   :  { %v2640_v23 = vpop.f32.mrb[100].mxu1  ;;  %v4756_v38 = vadd.f32 %v2639_v44, %v1492_v45  ;;  %v2562_v50 = vadd.f32 %v2561_v47, %v2560_v20  ;;  %v3019_v47 = vmov 0.0|0.0  }
 0x1c2   :  { %v2641_v28 = vpop.f32.mrb[101].mxu1  ;;  %2990 = vmatprep.subr.bf16.mxu0 %v3019_v47 }
 0x1c3   :  { %v2642_v54 = vadd.f32 %v2641_v28, %v2640_v23  ;;  %v1497_v55 = vadd.f32 %v2562_v50, %v4711_v9  ;;  %v2563_v31 = vpop.f32.mrb[102].mxu0 }
 0x1c4   :  { %v2564_v57 = vpop.f32.mrb[103].mxu0 }
 0x1c5   :  { %v2643_v33 = vpop.f32.mrb[102].mxu1  ;;  %v4759_v51 = vadd.f32 %v2642_v54, %v1497_v55  ;;  %v2565_v60 = vadd.f32 %v2564_v57, %v2563_v31 }
 0x1c6   :  { %v2644_v36 = vpop.f32.mrb[103].mxu1 }
 0x1c7   :  { %v2645_v62 = vadd.f32 %v2644_v36, %v2643_v33  ;;  %v1502_v63 = vadd.f32 %v2565_v60, %v4714_v19  ;;  %v2566_v40 = vpop.f32.mrb[104].mxu0  ;;  %v1711_v60 = vsel %vm1710_vm0, %v4753_v25, 0.0  ;;  %v1714_v36 = vsel %vm1710_vm0, %v4759_v51, 0.0 }
 0x1c8   :  { %v2567_v3 = vpop.f32.mrb[105].mxu0 }
 0x1c9   :  { %v2646_v43 = vpop.f32.mrb[104].mxu1  ;;  %v4762_v0 = vadd.f32 %v2645_v62, %v1502_v63  ;;  %v2568_v6 = vadd.f32 %v2567_v3, %v2566_v40 }
 0x1ca   :  { %v2647_v46 = vpop.f32.mrb[105].mxu1 }
 0x1cb   :  { %v2648_v8 = vadd.f32 %v2647_v46, %v2646_v43  ;;  %v1507_v9 = vadd.f32 %v2568_v6, %v4717_v30  ;;  %v2569_v49 = vpop.f32.mrb[106].mxu0  ;;  %v1716_v43 = vsel %vm1710_vm0, %v4762_v0, 0.0 }
 0x1cc   :  { %v2570_v11 = vpop.f32.mrb[107].mxu0 }
 0x1cd   :  { %v2649_v52 = vpop.f32.mrb[106].mxu1  ;;  %v4765_v14 = vadd.f32 %v2648_v8, %v1507_v9  ;;  %v2571_v16 = vadd.f32 %v2570_v11, %v2569_v49 }
 0x1ce   :  { %v2650_v56 = vpop.f32.mrb[107].mxu1 }
 0x1cf   :  { %v2651_v18 = vadd.f32 %v2650_v56, %v2649_v52  ;;  %v1512_v19 = vadd.f32 %v2571_v16, %v4720_v39  ;;  %v2572_v59 = vpop.f32.mrb[108].mxu0  ;;  %v1718_v11 = vsel %vm1710_vm0, %v4765_v14, 0.0 }
 0x1d0   :  { %v2573_v21 = vpop.f32.mrb[109].mxu0 }
 0x1d1   :  { %v2652_v61 = vpop.f32.mrb[108].mxu1  ;;  %v4768_v24 = vadd.f32 %v2651_v18, %v1512_v19  ;;  %v2574_v26 = vadd.f32 %v2573_v21, %v2572_v59 }
 0x1d2   :  { %v2653_v2 = vpop.f32.mrb[109].mxu1 }
 0x1d3   :  { %v2654_v29 = vadd.f32 %v2653_v2, %v2652_v61  ;;  %v1517_v30 = vadd.f32 %v2574_v26, %v4723_v48  ;;  %v2575_v5 = vpop.f32.mrb[110].mxu0  ;;  %v1720_v19 = vsel %vm1710_vm0, %v4768_v24, 0.0 }
 0x1d4   :  { %v2576_v32 = vpop.f32.mrb[111].mxu0 }
 0x1d5   :  { %v2655_v7 = vpop.f32.mrb[110].mxu1  ;;  %v4771_v34 = vadd.f32 %v2654_v29, %v1517_v30  ;;  %v2577_v35 = vadd.f32 %v2576_v32, %v2575_v5 }
 0x1d6   :  { %v2656_v10 = vpop.f32.mrb[111].mxu1 }
 0x1d7   :  { %v2657_v37 = vadd.f32 %v2656_v10, %v2655_v7  ;;  %v1522_v39 = vadd.f32 %v2577_v35, %v4726_v58  ;;  %v2578_v15 = vpop.f32.mrb[112].mxu0  ;;  %v1712_v58 = vsel %vm1710_vm0, %v4756_v38, 0.0  ;;  %v1722_v29 = vsel %vm1710_vm0, %v4771_v34, 0.0 }
 0x1d8   :  { %v2579_v42 = vpop.f32.mrb[113].mxu0  ;;  %v1713_v63 = vadd.f32 %v1712_v58, %v1711_v60 }
 0x1d9   :  { %v2658_v17 = vpop.f32.mrb[112].mxu1  ;;  %v4774_v44 = vadd.f32 %v2657_v37, %v1522_v39  ;;  %v2580_v45 = vadd.f32 %v2579_v42, %v2578_v15 }
 0x1da   :  { %v2659_v20 = vpop.f32.mrb[113].mxu1  ;;  %v1715_v9 = vadd.f32 %v1714_v36, %v1713_v63 }
 0x1db   :  { %v2660_v48 = vadd.f32 %v2659_v20, %v2658_v17  ;;  %v1527_v23 = vadd.f32 %v2580_v45, %v4729_v4  ;;  %v2581_v50 = vpop.f32.mrb[114].mxu0  ;;  %v1724_v35 = vsel %vm1710_vm0, %v4774_v44, 0.0 }
 0x1dc   :  { %v2582_v28 = vpop.f32.mrb[115].mxu0 }
 0x1dd   :  { %v2661_v54 = vpop.f32.mrb[114].mxu1  ;;  %v4780_v55 = vadd.f32 %v2660_v48, %v1527_v23  ;;  %v2583_v31 = vadd.f32 %v2582_v28, %v2581_v50 }
 0x1de   :  { %v2662_v57 = vpop.f32.mrb[115].mxu1 }
 0x1df   :  { %v2663_v33 = vadd.f32 %v2662_v57, %v2661_v54  ;;  %v1532_v4 = vadd.f32 %v2583_v31, %v4732_v12  ;;  %v2584_v62 = vpop.f32.mrb[116].mxu0  ;;  %v1717_v12 = vadd.f32 %v1716_v43, %v1715_v9  ;;  %v1726_v17 = vsel %vm1710_vm0, %v4780_v55, 0.0 }
 0x1e0   :  { %v2585_v40 = vpop.f32.mrb[117].mxu0 }
 0x1e1   :  { %v2664_v3 = vpop.f32.mrb[116].mxu1  ;;  %v4789_v6 = vadd.f32 %v2663_v33, %v1532_v4  ;;  %v2586_v46 = vadd.f32 %v2585_v40, %v2584_v62  ;;  %v1719_v26 = vadd.f32 %v1718_v11, %v1717_v12 }
 0x1e2   :  { %v2665_v8 = vpop.f32.mrb[117].mxu1 }
 0x1e3   :  { %v2666_v49 = vadd.f32 %v2665_v8, %v2664_v3  ;;  %v1537_v52 = vadd.f32 %v2586_v46, %v4735_v22  ;;  %v2587_v16 = vpop.f32.mrb[118].mxu0  ;;  %v1721_v22 = vadd.f32 %v1720_v19, %v1719_v26  ;;  %v1728_v50 = vsel %vm1710_vm0, %v4789_v6, 0.0 }
 0x1e4   :  { %v2588_v56 = vpop.f32.mrb[119].mxu0 }
 0x1e5   :  { %v2667_v18 = vpop.f32.mrb[118].mxu1  ;;  %v4796_v59 = vadd.f32 %v2666_v49, %v1537_v52  ;;  %v2589_v21 = vadd.f32 %v2588_v56, %v2587_v16  ;;  %v1723_v15 = vadd.f32 %v1722_v29, %v1721_v22 }
 0x1e6   :  { %v2668_v61 = vpop.f32.mrb[119].mxu1 }
 0x1e7   :  { %v2669_v2 = vadd.f32 %v2668_v61, %v2667_v18  ;;  %v1542_v30 = vadd.f32 %v2589_v21, %v4738_v27  ;;  %v2590_v5 = vpop.f32.mrb[120].mxu0  ;;  %v1725_v27 = vadd.f32 %v1724_v35, %v1723_v15  ;;  %v1730_v33 = vsel %vm1710_vm0, %v4796_v59, 0.0 }
 0x1e8   :  { %v2591_v32 = vpop.f32.mrb[121].mxu0 }
 0x1e9   :  { %v2670_v7 = vpop.f32.mrb[120].mxu1  ;;  %v4803_v10 = vadd.f32 %v2669_v2, %v1542_v30  ;;  %v2592_v37 = vadd.f32 %v2591_v32, %v2590_v5  ;;  %v1727_v31 = vadd.f32 %v1726_v17, %v1725_v27  ;;  %v3021_v32 = vmov 0.0  }
 0x1ea   :  { %v2671_v39 = vpop.f32.mrb[121].mxu1  ;;  %2731 = vmatprep.mubr.msk.f32.mxu0 %vm3020_vm1, %v3021_v32 }
 0x1eb   :  { %v2672_v42 = vadd.f32 %v2671_v39, %v2670_v7  ;;  %v1547_v45 = vadd.f32 %v2592_v37, %v4741_v41  ;;  %v2593_v20 = vpop.f32.mrb[122].mxu0  ;;  %v1729_v41 = vadd.f32 %v1728_v50, %v1727_v31  ;;  %v1732_v63 = vsel %vm1710_vm0, %v4803_v10, 0.0 }
 0x1ec   :  { %v2594_v48 = vpop.f32.mrb[123].mxu0 }
 0x1ed   :  { %v2673_v23 = vpop.f32.mrb[122].mxu1  ;;  %v4810_v28 = vadd.f32 %v2672_v42, %v1547_v45  ;;  %v2595_v54 = vadd.f32 %v2594_v48, %v2593_v20  ;;  %v1731_v46 = vadd.f32 %v1730_v33, %v1729_v41 }
 0x1ee   :  { %v2674_v58 = vpop.f32.mrb[123].mxu1 }
 0x1ef   :  { %v2675_v57 = vadd.f32 %v2674_v58, %v2673_v23  ;;  %v1552_v60 = vadd.f32 %v2595_v54, %v4744_v53  ;;  %v2596_v36 = vpop.f32.mrb[124].mxu0  ;;  %v1734_v9 = vsel %vm1710_vm0, %v4810_v28, 0.0  ;;  %v1733_v53 = vadd.f32 %v1732_v63, %v1731_v46 }
 0x1f0   :  { %v2597_v4 = vpop.f32.mrb[125].mxu0 }
 0x1f1   :  { %v2676_v62 = vpop.f32.mrb[124].mxu1  ;;  %v4817_v40 = vadd.f32 %v2675_v57, %v1552_v60  ;;  %v2598_v3 = vadd.f32 %v2597_v4, %v2596_v36  ;;  %v1735_v21 = vadd.f32 %v1734_v9, %v1733_v53 }
 0x1f2   :  { %v2677_v43 = vpop.f32.mrb[125].mxu1 }
 0x1f3   :  { %v2678_v8 = vadd.f32 %v2677_v43, %v2676_v62  ;;  %v1557_v49 = vadd.f32 %v2598_v3, %v4747_v1  ;;  %v2599_v11 = vpop.f32.mrb[126].mxu0  ;;  %v1736_v12 = vsel %vm1710_vm0, %v4817_v40, 0.0 }
 0x1f4   :  { %v2600_v52 = vpop.f32.mrb[127].mxu0  ;;  %v1737_v29 = vadd.f32 %v1736_v12, %v1735_v21 }
 0x1f5   :  { %v2679_v16 = vpop.f32.mrb[126].mxu1  ;;  %v4824_v56 = vadd.f32 %v2678_v8, %v1557_v49  ;;  %v2601_v18 = vadd.f32 %v2600_v52, %v2599_v11 }
 0x1f6   :  { %v2680_v19 = vpop.f32.mrb[127].mxu1 }
 0x1f7   :  { %v2681_v61 = vadd.f32 %v2680_v19, %v2679_v16  ;;  %v1738_v26 = vsel %vm1710_vm0, %v4824_v56, 0.0  ;;  %v1562_v2 = vadd.f32 %v2601_v18, %v4750_v13 }
 0x1f8   :  { %v1739_v30 = vadd.f32 %v1738_v26, %v1737_v29 }
 0x1f9   :  { %v4829_v1 = vadd.f32 %v2681_v61, %v1562_v2 }
 0x1fb   :  { %v1740_v5 = vsel %vm1710_vm0, %v4829_v1, 0.0 }
 0x1fc   :  { %v1741_v22 = vadd.f32 %v1740_v5, %v1739_v30 }
 0x1fe   :  { %v1742_v7 = vrot.slane %v1741_v22, 4 }
 0x200   :  { %v1743_v35 = vadd.f32 %v1742_v7, %v1741_v22 }
 0x202   :  { %v1744_v37 = vrot.slane %v1743_v35, 2 }
 0x204   :  { %v1745_v39 = vadd.f32 %v1744_v37, %v1743_v35 }
 0x206   :  { %v1746_v15 = vrot.slane %v1745_v39, 1 }
 0x208   :  { %v1747_v42 = vadd.f32 %v1746_v15, %v1745_v39 }
 0x20a   :  { %v4833_v17 = vmul.f32 0.0078125, %v1747_v42 }
 0x20c   :  { %v1750_v13 = vsub.f32 %v4753_v25, %v4833_v17  ;;  %v1751_v45 = vsub.f32 %v4756_v38, %v4833_v17  ;;  %v1752_v20 = vsub.f32 %v4759_v51, %v4833_v17  ;;  %v1753_v27 = vsub.f32 %v4762_v0, %v4833_v17 }
 0x20d   :  { %v1754_v50 = vsub.f32 %v4765_v14, %v4833_v17  ;;  %v1755_v58 = vsub.f32 %v4768_v24, %v4833_v17  ;;  %v1756_v36 = vsub.f32 %v4771_v34, %v4833_v17  ;;  %v1757_v63 = vsub.f32 %v4774_v44, %v4833_v17 }
 0x20e   :  { %v1766_v48 = vmul.f32 %v1750_v13, %v1750_v13  ;;  %v1767_v23 = vmul.f32 %v1751_v45, %v1751_v45  ;;  %v1768_v54 = vmul.f32 %v1752_v20, %v1752_v20  ;;  %v1769_v31 = vmul.f32 %v1753_v27, %v1753_v27 }
 0x20f   :  { %v1770_v41 = vmul.f32 %v1754_v50, %v1754_v50  ;;  %v1771_v3 = vmul.f32 %v1755_v58, %v1755_v58  ;;  %v1758_v8 = vsub.f32 %v4780_v55, %v4833_v17  ;;  %v1772_v9 = vmul.f32 %v1756_v36, %v1756_v36 }
 0x210   :  { %v1782_v57 = vsel %vm1710_vm0, %v1766_v48, 0.0  ;;  %v1783_v33 = vsel %vm1710_vm0, %v1767_v23, 0.0  ;;  %v1785_v4 = vsel %vm1710_vm0, %v1768_v54, 0.0  ;;  %v1787_v43 = vsel %vm1710_vm0, %v1769_v31, 0.0 }
 0x211   :  { %v1784_v60 = vadd.f32 %v1783_v33, %v1782_v57  ;;  %v1789_v49 = vsel %vm1710_vm0, %v1770_v41, 0.0  ;;  %v1759_v53 = vsub.f32 %v4789_v6, %v4833_v17  ;;  %v1773_v52 = vmul.f32 %v1757_v63, %v1757_v63 }
 0x212   :  { %v1791_v16 = vsel %vm1710_vm0, %v1771_v3, 0.0  ;;  %v1760_v18 = vsub.f32 %v4796_v59, %v4833_v17  ;;  %v1774_v19 = vmul.f32 %v1758_v8, %v1758_v8  ;;  %v1793_v21 = vsel %vm1710_vm0, %v1772_v9, 0.0 }
 0x213   :  { %v1786_v62 = vadd.f32 %v1785_v4, %v1784_v60  ;;  %v1761_v26 = vsub.f32 %v4803_v10, %v4833_v17  ;;  %v1775_v2 = vmul.f32 %v1759_v53, %v1759_v53  ;;  %v1795_v29 = vsel %vm1710_vm0, %v1773_v52, 0.0 }
 0x214   :  { %v1762_v5 = vsub.f32 %v4810_v28, %v4833_v17  ;;  %v1776_v22 = vmul.f32 %v1760_v18, %v1760_v18  ;;  %v1797_v32 = vsel %vm1710_vm0, %v1774_v19, 0.0  ;;  %v1763_v35 = vsub.f32 %v4817_v40, %v4833_v17 }
 0x215   :  { %v1788_v46 = vadd.f32 %v1787_v43, %v1786_v62  ;;  %v1777_v37 = vmul.f32 %v1761_v26, %v1761_v26  ;;  %v1799_v39 = vsel %vm1710_vm0, %v1775_v2, 0.0  ;;  %v1764_v42 = vsub.f32 %v4824_v56, %v4833_v17 }
 0x216   :  { %v1778_v13 = vmul.f32 %v1762_v5, %v1762_v5  ;;  %v1801_v45 = vsel %vm1710_vm0, %v1776_v22, 0.0  ;;  %v1765_v27 = vsub.f32 %v4829_v1, %v4833_v17  ;;  %v1779_v48 = vmul.f32 %v1763_v35, %v1763_v35 }
 0x217   :  { %v1790_v11 = vadd.f32 %v1789_v49, %v1788_v46  ;;  %v1803_v23 = vsel %vm1710_vm0, %v1777_v37, 0.0  ;;  %v1780_v54 = vmul.f32 %v1764_v42, %v1764_v42  ;;  %v1828_v53 = vlaneseq }
 0x218   :  { %v1805_v58 = vsel %vm1710_vm0, %v1778_v13, 0.0  ;;  %v1781_v57 = vmul.f32 %v1765_v27, %v1765_v27  ;;  %v1807_v33 = vsel %vm1710_vm0, %v1779_v48, 0.0  ;;  %v1922_v48 = vld [vmem:[%s5012_s5 + $0x18] sm:$0xff] }
 0x219   :  { %v1792_v12 = vadd.f32 %v1791_v16, %v1790_v11  ;;  %v1809_v36 = vsel %vm1710_vm0, %v1780_v54, 0.0  ;;  %v1829_v52 = vshrl.u32 %v1828_v53, 7  ;;  %v1820_v16 = vld [vmem:[%s5010_s3] sm:$0x1] }
 0x21a   :  { %v1811_v4 = vsel %vm1710_vm0, %v1781_v57, 0.0 }
 0x21b   :  { %v1794_v61 = vadd.f32 %v1793_v21, %v1792_v12  ;;  %v1830_v12 = vsub.s32 0, %v1829_v52  ;;  %v1824_v21 = vld [vmem:[%s5011_s4] sm:$0x1] }
 0x21d   :  { %v1796_v30 = vadd.f32 %v1795_v29, %v1794_v61 }
 0x21f   :  { %v1798_v7 = vadd.f32 %v1797_v32, %v1796_v30 }
 0x221   :  { %v1800_v15 = vadd.f32 %v1799_v39, %v1798_v7 }
 0x223   :  { %v1802_v20 = vadd.f32 %v1801_v45, %v1800_v15  ;;  %v1919_v15 = vld [vmem:[%s5012_s5] sm:$0xff] }
 0x225   :  { %v1804_v50 = vadd.f32 %v1803_v23, %v1802_v20 }
 0x227   :  { %v1806_v31 = vadd.f32 %v1805_v58, %v1804_v50 }
 0x229   :  { %v1808_v60 = vadd.f32 %v1807_v33, %v1806_v31 }
 0x22b   :  { %v1810_v41 = vadd.f32 %v1809_v36, %v1808_v60 }
 0x22d   :  { %v1812_v62 = vadd.f32 %v1811_v4, %v1810_v41 }
 0x22f   :  { %v1813_v63 = vrot.slane %v1812_v62, 4 }
 0x231   :  { %v1814_v3 = vadd.f32 %v1813_v63, %v1812_v62 }
 0x233   :  { %v1815_v43 = vrot.slane %v1814_v3, 2 }
 0x235   :  { %v1816_v46 = vadd.f32 %v1815_v43, %v1814_v3 }
 0x237   :  { %v1817_v8 = vrot.slane %v1816_v46, 1 }
 0x239   :  { %v1818_v9 = vadd.f32 %v1817_v8, %v1816_v46  ;;  %v1923_v46 = vld [vmem:[%s5012_s5 + $0x20] sm:$0xff]  ;;  %v1924_v8 = vld [vmem:[%s5012_s5 + $0x28] sm:$0xff] }
 0x23b   :  { %v1819_v49 = vmul.f32 0.0078125, %v1818_v9 }
 0x23d   :  { %v1821_v11 = vadd.f32 1e-05, %v1819_v49 }
 0x23f   :  { %3017 = vrsqrt.f32 %v1821_v11 }
 0x249   :  { %v3018_v18 = vpop.eup %3017 }
 0x24a   :  { %v1823_v19 = vmul.f32 %v3018_v18, %v1820_v16 }
 0x24c   :  { %v1825_v61 = vmul.f32 %v1823_v19, %v4833_v17  ;;  %v4890_v26 = vrot.slane %v1823_v19, %v1830_v12  ;;  %v1925_v19 = vld [vmem:[%s5012_s5 + $0x30] sm:$0xff] }
 0x24e   :  { %v1826_v2 = vsub.f32 %v1824_v21, %v1825_v61  ;;  %v1833_v30 = vmul.f32 %v4890_v26, %v4753_v25  ;;  %v1834_v5 = vmul.f32 %v4890_v26, %v4756_v38  ;;  %v1835_v22 = vmul.f32 %v4890_v26, %v4759_v51 }
 0x24f   :  { %v1836_v32 = vmul.f32 %v4890_v26, %v4762_v0  ;;  %v1837_v17 = vmul.f32 %v4890_v26, %v4765_v14  ;;  %v1838_v7 = vmul.f32 %v4890_v26, %v4768_v24  ;;  %v1839_v38 = vmul.f32 %v4890_v26, %v4771_v34  ;;  %v1920_v34 = vld [vmem:[%s5012_s5 + $0x8] sm:$0xff] }
 0x250   :  { %v4892_v29 = vrot.slane %v1826_v2, %v1830_v12  ;;  %v1840_v14 = vmul.f32 %v4890_v26, %v4774_v44  ;;  %v1921_v44 = vld [vmem:[%s5012_s5 + $0x10] sm:$0xff]  ;;  %v1841_v60 = vmul.f32 %v4890_v26, %v4780_v55  ;;  %v1842_v62 = vmul.f32 %v4890_v26, %v4789_v6 }
 0x251   :  { %v1843_v11 = vmul.f32 %v4890_v26, %v4796_v59  ;;  %v1844_v16 = vmul.f32 %v4890_v26, %v4803_v10  ;;  %v1926_v59 = vld [vmem:[%s5012_s5 + $0x38] sm:$0xff]  ;;  %v1848_v10 = vmul.f32 %v4890_v26, %v4829_v1  ;;  %v1927_v1 = vld [vmem:[%s5012_s5 + $0x40] sm:$0xff] }
 0x252   :  { %v1855_v35 = vadd.f32 %v4892_v29, %v1833_v30  ;;  %v1856_v37 = vadd.f32 %v4892_v29, %v1834_v5  ;;  %v1857_v25 = vadd.f32 %v4892_v29, %v1835_v22  ;;  %v1858_v51 = vadd.f32 %v4892_v29, %v1836_v32 }
 0x253   :  { %v1859_v39 = vadd.f32 %v4892_v29, %v1837_v17  ;;  %v1860_v0 = vadd.f32 %v4892_v29, %v1838_v7  ;;  %v1861_v42 = vadd.f32 %v4892_v29, %v1839_v38  ;;  %v1862_v4 = vadd.f32 %v4892_v29, %v1840_v14 }
 0x254   :  { %vm1871_vm2 = vcmp.ge.f32.partialorder %v1855_v35, 0.0  ;;  %vm1872_vm3 = vcmp.ge.f32.partialorder %v1856_v37, 0.0  ;;  %v1887_v24 = vmul.f32 0.2, %v1855_v35  ;;  %v1888_v13 = vmul.f32 0.2, %v1856_v37 }
 0x255   :  { %vm1873_vm4 = vcmp.ge.f32.partialorder %v1857_v25, 0.0  ;;  %vm1874_vm5 = vcmp.ge.f32.partialorder %v1858_v51, 0.0  ;;  %v1889_v45 = vmul.f32 0.2, %v1857_v25  ;;  %v1890_v27 = vmul.f32 0.2, %v1858_v51 }
 0x256   :  { %v1903_v20 = vsel %vm1871_vm2, %v1855_v35, %v1887_v24  ;;  %vm1875_vm6 = vcmp.ge.f32.partialorder %v1859_v39, 0.0  ;;  %vm1876_vm7 = vcmp.ge.f32.partialorder %v1860_v0, 0.0  ;;  %v1904_v23 = vsel %vm1872_vm3, %v1856_v37, %v1888_v13 }
 0x257   :  { %v1935_v50 = vmul.f32 %v1919_v15, %v1903_v20  ;;  %v1905_v54 = vsel %vm1873_vm4, %v1857_v25, %v1889_v45  ;;  %v1891_v58 = vmul.f32 0.2, %v1859_v39  ;;  %v1936_v31 = vmul.f32 %v1920_v34, %v1904_v23  ;;  %v1929_v45 = vld [vmem:[%s5012_s5 + $0x50] sm:$0xff]  ;;  %v1930_v20 = vld [vmem:[%s5012_s5 + $0x58] sm:$0xff] }
 0x258   :  { %v1906_v57 = vsel %vm1874_vm5, %v1858_v51, %v1890_v27  ;;  %v1892_v33 = vmul.f32 0.2, %v1860_v0  ;;  %v1937_v36 = vmul.f32 %v1921_v44, %v1905_v54  ;;  %v1893_v9 = vmul.f32 0.2, %v1861_v42  ;;  %v1928_v51 = vld [vmem:[%s5012_s5 + $0x48] sm:$0xff] }
 0x259   :  { %v1938_v41 = vmul.f32 %v1922_v48, %v1906_v57  ;;  %v2991_v63 = vpack.c.bf16 %v1936_v31, %v1935_v50  ;;  %v1907_v3 = vsel %vm1875_vm6, %v1859_v39, %v1891_v58  ;;  %vm1877_vm8 = vcmp.ge.f32.partialorder %v1861_v42, 0.0  ;;  %v1931_v31 = vld [vmem:[%s5012_s5 + $0x60] sm:$0xff]  ;;  %v1932_v57 = vld [vmem:[%s5012_s5 + $0x68] sm:$0xff] }
 0x25a   :  { %v1908_v43 = vsel %vm1876_vm7, %v1860_v0, %v1892_v33  ;;  %v1894_v55 = vmul.f32 0.2, %v1862_v4  ;;  %vm1878_vm9 = vcmp.ge.f32.partialorder %v1862_v4, 0.0  ;;  %v1863_v49 = vadd.f32 %v4892_v29, %v1841_v60 }
 0x25b   :  { %2992 = vmatpush3.bf16.msra.mxu0 %v2991_v63  ;;  %v1864_v6 = vadd.f32 %v4892_v29, %v1842_v62  ;;  %v1939_v53 = vmul.f32 %v1923_v46, %v1907_v3  ;;  %v1940_v52 = vmul.f32 %v1924_v8, %v1908_v43  ;;  %v2994_v12 = vpack.c.bf16 %v1938_v41, %v1937_v36  ;;  %v1933_v62 = vld [vmem:[%s5012_s5 + $0x70] sm:$0xff]  ;;  %v1934_v63 = vld [vmem:[%s5012_s5 + $0x78] sm:$0xff] }
 0x25c   :  { %2993 = vmatprep.subr.bf16.mxu0 %v3019_v47  ;;  %v1909_v18 = vsel %vm1877_vm8, %v1861_v42, %v1893_v9  ;;  %v1895_v21 = vmul.f32 0.2, %v1863_v49  ;;  %v1865_v61 = vadd.f32 %v4892_v29, %v1843_v11  ;;  %v1910_v2 = vsel %vm1878_vm9, %v1862_v4, %v1894_v55  ;;  %v1951_v9 = vld [vmem:[%s5013_s6] sm:$0x3] }
 0x25d   :  { %vm1879_vm10 = vcmp.ge.f32.partialorder %v1863_v49, 0.0  ;;  %v1896_v30 = vmul.f32 0.2, %v1864_v6  ;;  %v1866_v5 = vadd.f32 %v4892_v29, %v1844_v16  ;;  %vm1880_vm11 = vcmp.ge.f32.partialorder %v1864_v6, 0.0 }
 0x25e   :  { %v2997_v22 = vpack.c.bf16 %v1940_v52, %v1939_v53  ;;  %v1941_v32 = vmul.f32 %v1925_v19, %v1909_v18  ;;  %v1845_v17 = vmul.f32 %v4890_v26, %v4810_v28  ;;  %v1846_v7 = vmul.f32 %v4890_v26, %v4817_v40 }
 0x25f   :  { %2995 = vmatpush3.bf16.msra.mxu0 %v2994_v12  ;;  %v1942_v35 = vmul.f32 %v1926_v59, %v1910_v2  ;;  %v1911_v37 = vsel %vm1879_vm10, %v1863_v49, %v1895_v21  ;;  %vm1881_vm12 = vcmp.ge.f32.partialorder %v1865_v61, 0.0  ;;  %v1897_v25 = vmul.f32 0.2, %v1865_v61 }
 0x260   :  { %2996 = vmatprep.subr.bf16.mxu0 %v3019_v47  ;;  %v1912_v38 = vsel %vm1880_vm11, %v1864_v6, %v1896_v30  ;;  %v1898_v39 = vmul.f32 0.2, %v1866_v5  ;;  %v1867_v0 = vadd.f32 %v4892_v29, %v1845_v17  ;;  %v1868_v28 = vadd.f32 %v4892_v29, %v1846_v7 }
 0x261   :  { %vm1882_vm13 = vcmp.ge.f32.partialorder %v1866_v5, 0.0  ;;  %v1870_v40 = vadd.f32 %v4892_v29, %v1848_v10  ;;  %v1847_v14 = vmul.f32 %v4890_v26, %v4824_v56  ;;  %v3000_v24 = vpack.c.bf16 %v1942_v35, %v1941_v32 }
 0x262   :  { %v1943_v15 = vmul.f32 %v1927_v1, %v1911_v37  ;;  %v1944_v34 = vmul.f32 %v1928_v51, %v1912_v38  ;;  %v1913_v42 = vsel %vm1881_vm12, %v1865_v61, %v1897_v25  ;;  %v1914_v13 = vsel %vm1882_vm13, %v1866_v5, %v1898_v39 }
 0x263   :  { %2998 = vmatpush3.bf16.msra.mxu0 %v2997_v22  ;;  %v1899_v27 = vmul.f32 0.2, %v1867_v0  ;;  %v1900_v44 = vmul.f32 0.2, %v1868_v28  ;;  %v1869_v48 = vadd.f32 %v4892_v29, %v1847_v14  ;;  %vm1883_vm14 = vcmp.ge.f32.partialorder %v1867_v0, 0.0 }
 0x264   :  { %2999 = vmatprep.subr.bf16.mxu0 %v3019_v47  ;;  %vm1884_vm15 = vcmp.ge.f32.partialorder %v1868_v28, 0.0  ;;  %v3003_v56 = vpack.c.bf16 %v1944_v34, %v1943_v15  ;;  %v1945_v26 = vmul.f32 %v1929_v45, %v1913_v42  ;;  %v1946_v23 = vmul.f32 %v1930_v20, %v1914_v13 }
 0x265   :  { %v1902_v50 = vmul.f32 0.2, %v1870_v40  ;;  %v1915_v54 = vsel %vm1883_vm14, %v1867_v0, %v1899_v27  ;;  %v1916_v58 = vsel %vm1884_vm15, %v1868_v28, %v1900_v44  ;;  %v1901_v29 = vmul.f32 0.2, %v1869_v48 }
 0x266   :  { %vm1885_vm0 = vcmp.ge.f32.partialorder %v1869_v48, 0.0  ;;  %vm1886_vm1 = vcmp.ge.f32.partialorder %v1870_v40, 0.0  ;;  %v3006_v33 = vpack.c.bf16 %v1946_v23, %v1945_v26  ;;  %v1947_v60 = vmul.f32 %v1931_v31, %v1915_v54 }
 0x267   :  { %3001 = vmatpush3.bf16.msra.mxu0 %v3000_v24  ;;  %v1948_v36 = vmul.f32 %v1932_v57, %v1916_v58  ;;  %v1917_v41 = vsel %vm1885_vm0, %v1869_v48, %v1901_v29  ;;  %v1918_v4 = vsel %vm1886_vm1, %v1870_v40, %v1902_v50  ;;  %v13_v55 = vstv %s5014_s7 }
 0x268   :  { %3002 = vmatprep.subr.bf16.mxu0 %v3019_v47  ;;  %v1949_v43 = vmul.f32 %v1933_v62, %v1917_v41  ;;  %v1950_v46 = vmul.f32 %v1934_v63, %v1918_v4  ;;  %14 = vst [vmem:[#allocation2] sm:$0x1] %v13_v55  ;;  %vm2022_vm2 = vcmask 517120   ;;  %vm2034_vm3 = vcmask 1024  }
 0x269   :  { %v3009_v3 = vpack.c.bf16 %v1948_v36, %v1947_v60 }
 0x26a   :  { %v3012_v8 = vpack.c.bf16 %v1950_v46, %v1949_v43 }
 0x26b   :  { %3004 = vmatpush3.bf16.msra.mxu0 %v3003_v56 }
 0x26c   :  { %3005 = vmatprep.subr.bf16.mxu0 %v3019_v47 }
 0x26f   :  { %3007 = vmatpush3.bf16.msra.mxu0 %v3006_v33  ;;  %v2041_v53 = vld [vmem:[#allocation2] ss:$0 sm:$0xff] }
 0x270   :  { %3008 = vmatprep.subr.bf16.mxu0 %v3019_v47 }
 0x273   :  { %3010 = vmatpush3.bf16.msra.mxu0 %v3009_v3 }
 0x274   :  { %3011 = vmatprep.subr.bf16.mxu0 %v3019_v47 }
 0x277   :  { %3013 = vmatpush3.bf16.msra.mxu0 %v3012_v8 }
 0x27a   :  { %2732 = vmatmul.mubr.f32.vlgmr.msra.gmra.mrb[128].mxu0 %v1951_v9 }
 0x34d   :  { %v2018_v49 = vpop.f32.mrb[128].mxu0 }
 0x34e   :  { %v2733_v6 = vpop.f32.mrb[129].mxu0  ;;  %v2023_v11 = vsel %vm2022_vm2, %v2018_v49, 0.0 }
 0x34f   :  { %2024 = vadd.xlane.f32.xlu0 %v2023_v11 }
 0x3dc   :  { %v2025_v52 = vpop.xlane.xlu0 %2024 }
 0x3dd   :  { %v2033_v47 = vadd.f32 %v2041_v53, %v2025_v52 }
 0x3df   :  { %2035 = vst.msk [vmem:[%s5015_s8] sm:$0x3] %vm2034_vm3, %v2033_v47 }

</bundles_post_ra>
